<compile_context>
chip_gen: v7x
topology: tpu7x:2x2x1
jax: 0.10.0
libtpu: 0.0.40
codegen_flags: <defaults>
</compile_context>

<pallas_src>
import functools

import jax
import jax.numpy as jnp
from jax import lax
from jax.experimental import pallas as pl
from jax.experimental.pallas import tpu as pltpu

STEP_SIZE = 0.01  # `stepSize` in the reference module


def _odeblock_kernel(x_ref, w1_ref, b1_ref, w2_ref, b2_ref, out_ref,
                     *, f, n_steps, dt, unroll):
    # ---- fc1: (BB, I) @ (I, S) + (1, S) ----
    h = jnp.dot(x_ref[...], w1_ref[...],
                preferred_element_type=jnp.float32,
                precision=lax.Precision.HIGHEST) + b1_ref[...]

    S = h.shape[1]

    # Hoisted splat of the forcing constant: materialized once, reused in all
    # 4 * n_steps Lorenz96 evaluations (no per-use broadcast_in_dim).
    f_splat = jnp.full(h.shape, f, dtype=jnp.float32)

    def lorenz96(s):
        # (roll(x,-1,1) - roll(x,2,1)) * roll(x,+1,1) - x + f
        # Three independent XLU rotations -> they co-issue across XLU units.
        xp1 = pltpu.roll(s, (-1) % S, 1)   # x_{i+1}
        xm2 = pltpu.roll(s, 2 % S, 1)      # x_{i-2}
        xm1 = pltpu.roll(s, 1 % S, 1)      # x_{i-1}
        return (xp1 - xm2) * xm1 - s + f_splat

    # torchdiffeq's method='rk4' fixed-grid solver uses the RK4 3/8-rule
    # (rk4_alt_step_func); reproduced here. The ODE is autonomous so t is
    # unused. Scalar dt constants are folded at trace time (Python floats);
    # k1*dt/3 is computed once and reused for the k2 and k3 arguments.
    dt_third = dt / 3.0
    dt_eighth = dt * 0.125

    def rk4_step(_, s):
        k1 = lorenz96(s)
        k1_third = k1 * dt_third                      # reused below
        k2 = lorenz96(s + k1_third)                   # y + dt*k1/3
        k3 = lorenz96(s + (dt * k2 - k1_third))       # y + dt*(k2 - k1/3)
        k4 = lorenz96(s + dt * (k1 - k2 + k3))
        return s + dt_eighth * (k1 + 3.0 * (k2 + k3) + k4)

    # Unrolled so the serial single-carry dependency chain is visible to the
    # scheduler (no scf.for bookkeeping between RK4 steps).
    # TODO(synk): optional bf16-state experiment on v6e/v7x (2x VALU width)
    # left out; would need re-validation against the accuracy tolerance.
    h = lax.fori_loop(0, n_steps, rk4_step, h, unroll=unroll)

    # ---- fc2 + log_softmax over dim=1 ----
    z = jnp.dot(h, w2_ref[...],
                preferred_element_type=jnp.float32,
                precision=lax.Precision.HIGHEST) + b2_ref[...]
    m = jnp.max(z, axis=1, keepdims=True)
    shifted = z - m
    lse = jnp.log(jnp.sum(jnp.exp(shifted), axis=1, keepdims=True))
    # Output last dim (O=10) is narrow -> masked store, but there are at most
    # a couple of grid steps so it is irrelevant here.
    out_ref[...] = (shifted - lse).astype(out_ref.dtype)


def _pick_batch_block(B):
    """Cap the per-step batch block at 32-48 rows (4-6 f32 vregs of state).

    The unrolled rk4_step keeps ~8 live (rows, 128) values; 32-48 rows keeps
    that comfortably inside the 64-vreg file on all generations. Larger
    batches iterate via the grid axis instead of growing the block.
    """
    if B <= 48:
        return B
    for bb in (32, 48, 40, 24, 16, 8):
        if B % bb == 0:
            return bb
    return B  # irregular batch: fall back to a single block


def odeblock_forward(x, w1, b1, w2, b2, *, f, n_steps, dt=STEP_SIZE,
                     batch_block=None):
    """x: (B, I); w1: (I, S); b1: (1, S); w2: (S, O); b2: (1, O) -> (B, O)."""
    B, I = x.shape
    S = w1.shape[1]
    O = w2.shape[1]

    if batch_block is None:
        batch_block = _pick_batch_block(B)
    assert B % batch_block == 0, "batch must be divisible by batch_block"
    num_blocks = B // batch_block

    # Fully unroll short horizons; partially unroll long ones.
    # (For n_steps > 32 the factor should be swept in {4, 8, 16} per
    # generation; never fall back to a visible un-unrolled loop.)
    n_steps = int(n_steps)
    unroll = True if n_steps <= 32 else 8

    # Only expose the batch axis as megacore-parallel once each core would get
    # enough rows to be throughput-bound (>= 64 rows, i.e. B >= 128).
    # Splitting a 32-row batch across cores does not shorten the serial RK4
    # chain and just halves ILP / duplicates weight DMA.
    semantics = ("parallel",) if B >= 128 else ("arbitrary",)

    kernel = functools.partial(_odeblock_kernel, f=float(f),
                               n_steps=n_steps, dt=float(dt), unroll=unroll)
    return pl.pallas_call(
        kernel,
        out_shape=jax.ShapeDtypeStruct((B, O), jnp.float32),
        grid=(num_blocks,),
        in_specs=[
            pl.BlockSpec((batch_block, I), lambda i: (i, 0)),
            pl.BlockSpec((I, S), lambda i: (0, 0)),
            pl.BlockSpec((1, S), lambda i: (0, 0)),
            pl.BlockSpec((S, O), lambda i: (0, 0)),
            pl.BlockSpec((1, O), lambda i: (0, 0)),
        ],
        out_specs=pl.BlockSpec((batch_block, O), lambda i: (i, 0)),
        compiler_params=pltpu.CompilerParams(dimension_semantics=semantics),
    )(x, w1, b1, w2, b2)


def _reference(x, w1, b1, w2, b2, *, f, n_steps, dt=STEP_SIZE):
    """Pure-JAX reference mirroring the PyTorch forward (for validation)."""
    h = jnp.dot(x, w1, precision=lax.Precision.HIGHEST) + b1

    def lorenz96(s):
        return (jnp.roll(s, -1, 1) - jnp.roll(s, 2, 1)) * jnp.roll(s, 1, 1) - s + f

    def step(_, s):
        k1 = lorenz96(s)
        k2 = lorenz96(s + dt * k1 / 3.0)
        k3 = lorenz96(s + dt * (k2 - k1 / 3.0))
        k4 = lorenz96(s + dt * (k1 - k2 + k3))
        return s + dt * (k1 + 3.0 * (k2 + k3) + k4) / 8.0

    h = lax.fori_loop(0, n_steps, step, h)
    z = jnp.dot(h, w2, precision=lax.Precision.HIGHEST) + b2
    return jax.nn.log_softmax(z, axis=1)


if __name__ == "__main__":
    # Small shapes consistent with the module's forward. Batch = 32
    # (4 f32 vregs of Lorenz96 state) gives the unrolled RK4 chain ILP while
    # staying a single grid step / single TensorCore (latency-bound regime).
    batch, input_size, system_count, output_size = 32, 16, 128, 10
    config = {"f": 8.0, "iteration": 0.1}          # integration_time[-1] > 0
    n_steps = int(round(config["iteration"] / STEP_SIZE))
    # TODO(synk): torchdiffeq's fixed-grid rk4 takes a final partial step when
    # the horizon is not an exact multiple of step_size; this kernel assumes
    # it is (as it is for iteration=0.1, step=0.01).

    key = jax.random.PRNGKey(0)
    kx, k1, k2, k3, k4 = jax.random.split(key, 5)

    x = jax.random.normal(kx, (batch, input_size), dtype=jnp.float32)

    # nn.Linear init: U(-1/sqrt(fan_in), 1/sqrt(fan_in)); weights stored
    # pre-transposed ((in, out)) so the kernel computes x @ W + b.
    lim1 = 1.0 / jnp.sqrt(jnp.float32(input_size))
    lim2 = 1.0 / jnp.sqrt(jnp.float32(system_count))
    w1 = jax.random.uniform(k1, (input_size, system_count),
                            minval=-lim1, maxval=lim1, dtype=jnp.float32)
    b1 = jax.random.uniform(k2, (1, system_count),
                            minval=-lim1, maxval=lim1, dtype=jnp.float32)
    w2 = jax.random.uniform(k3, (system_count, output_size),
                            minval=-lim2, maxval=lim2, dtype=jnp.float32)
    b2 = jax.random.uniform(k4, (1, output_size),
                            minval=-lim2, maxval=lim2, dtype=jnp.float32)

    out = odeblock_forward(x, w1, b1, w2, b2, f=config["f"], n_steps=n_steps)
    out = jax.block_until_ready(out)

    ref = jax.block_until_ready(
        _reference(x, w1, b1, w2, b2, f=config["f"], n_steps=n_steps))

    assert out.shape == (batch, output_size)
    max_err = float(jnp.max(jnp.abs(out - ref)))
    assert max_err < 1e-3, f"mismatch vs reference: {max_err}"

    print("KERNEL_OK")
</pallas_src>

<mosaic_0001>
module attributes {stable_mosaic.version = 11 : i64} {
  func.func @_odeblock_kernel(%arg0: i32, %arg1: memref<32x16xf32, #tpu.memory_space<vmem>>, %arg2: memref<16x128xf32, #tpu.memory_space<vmem>>, %arg3: memref<1x128xf32, #tpu.memory_space<vmem>>, %arg4: memref<128x10xf32, #tpu.memory_space<vmem>>, %arg5: memref<1x10xf32, #tpu.memory_space<vmem>>, %arg6: memref<32x10xf32, #tpu.memory_space<vmem>>) attributes {dimension_semantics = [#tpu.dimension_semantics<arbitrary>], iteration_bounds = array<i64: 1>, scalar_prefetch = 0 : i64, scratch_operands = 0 : i64, tpu.core_type = #tpu.core_type<tc>, window_params = [{transform_indices = @transform_0, window_bounds = array<i64: 32, 16>}, {pipeline_mode = #tpu.pipeline_mode<synchronous>, transform_indices = @transform_1, window_bounds = array<i64: 16, 128>}, {pipeline_mode = #tpu.pipeline_mode<synchronous>, transform_indices = @transform_2, window_bounds = array<i64: 1, 128>}, {pipeline_mode = #tpu.pipeline_mode<synchronous>, transform_indices = @transform_3, window_bounds = array<i64: 128, 10>}, {pipeline_mode = #tpu.pipeline_mode<synchronous>, transform_indices = @transform_4, window_bounds = array<i64: 1, 10>}, {transform_indices = @transform_5, window_bounds = array<i64: 32, 10>}]} {
    %c0 = arith.constant 0 : index
    %c0_0 = arith.constant 0 : index
    %0 = vector.load %arg1[%c0, %c0_0] : memref<32x16xf32, #tpu.memory_space<vmem>>, vector<32x16xf32>
    %c0_1 = arith.constant 0 : index
    %c0_2 = arith.constant 0 : index
    %1 = vector.load %arg2[%c0_1, %c0_2] : memref<16x128xf32, #tpu.memory_space<vmem>>, vector<16x128xf32>
    %cst = arith.constant dense<0.000000e+00> : vector<32x128xf32>
    %2 = tpu.matmul %0, %1, %cst {dimension_numbers = #tpu.dot_dimension_numbers<[1], [0], [0], [1], [0, 0, 1, 1], [], []>, precision = #tpu.contract_precision<fp32>} : vector<32x16xf32>, vector<16x128xf32>, vector<32x128xf32> -> vector<32x128xf32>
    %c0_3 = arith.constant 0 : index
    %c0_4 = arith.constant 0 : index
    %3 = vector.load %arg3[%c0_3, %c0_4] : memref<1x128xf32, #tpu.memory_space<vmem>>, vector<1x128xf32>
    %4 = vector.broadcast %3 : vector<1x128xf32> to vector<32x128xf32>
    %5 = arith.addf %2, %4 : vector<32x128xf32>
    %cst_5 = arith.constant 8.000000e+00 : f32
    %6 = vector.broadcast %cst_5 : f32 to vector<32x128xf32>
    %c0_i32 = arith.constant 0 : i32
    %c127_i32 = arith.constant 127 : i32
    %7 = tpu.dynamic_rotate %5 by %c127_i32 dim 1 : vector<32x128xf32>, i32 -> vector<32x128xf32>
    %c2_i32 = arith.constant 2 : i32
    %8 = tpu.dynamic_rotate %5 by %c2_i32 dim 1 : vector<32x128xf32>, i32 -> vector<32x128xf32>
    %c1_i32 = arith.constant 1 : i32
    %9 = tpu.dynamic_rotate %5 by %c1_i32 dim 1 : vector<32x128xf32>, i32 -> vector<32x128xf32>
    %10 = arith.subf %7, %8 : vector<32x128xf32>
    %11 = arith.mulf %10, %9 : vector<32x128xf32>
    %12 = arith.subf %11, %5 : vector<32x128xf32>
    %13 = arith.addf %12, %6 : vector<32x128xf32>
    %cst_6 = arith.constant 0.00333333341 : f32
    %14 = vector.broadcast %cst_6 : f32 to vector<32x128xf32>
    %15 = arith.mulf %13, %14 : vector<32x128xf32>
    %16 = arith.addf %5, %15 : vector<32x128xf32>
    %c127_i32_7 = arith.constant 127 : i32
    %17 = tpu.dynamic_rotate %16 by %c127_i32_7 dim 1 : vector<32x128xf32>, i32 -> vector<32x128xf32>
    %c2_i32_8 = arith.constant 2 : i32
    %18 = tpu.dynamic_rotate %16 by %c2_i32_8 dim 1 : vector<32x128xf32>, i32 -> vector<32x128xf32>
    %c1_i32_9 = arith.constant 1 : i32
    %19 = tpu.dynamic_rotate %16 by %c1_i32_9 dim 1 : vector<32x128xf32>, i32 -> vector<32x128xf32>
    %20 = arith.subf %17, %18 : vector<32x128xf32>
    %21 = arith.mulf %20, %19 : vector<32x128xf32>
    %22 = arith.subf %21, %16 : vector<32x128xf32>
    %23 = arith.addf %22, %6 : vector<32x128xf32>
    %cst_10 = arith.constant 0.00999999977 : f32
    %24 = vector.broadcast %cst_10 : f32 to vector<32x128xf32>
    %25 = arith.mulf %24, %23 : vector<32x128xf32>
    %26 = arith.subf %25, %15 : vector<32x128xf32>
    %27 = arith.addf %5, %26 : vector<32x128xf32>
    %c127_i32_11 = arith.constant 127 : i32
    %28 = tpu.dynamic_rotate %27 by %c127_i32_11 dim 1 : vector<32x128xf32>, i32 -> vector<32x128xf32>
    %c2_i32_12 = arith.constant 2 : i32
    %29 = tpu.dynamic_rotate %27 by %c2_i32_12 dim 1 : vector<32x128xf32>, i32 -> vector<32x128xf32>
    %c1_i32_13 = arith.constant 1 : i32
    %30 = tpu.dynamic_rotate %27 by %c1_i32_13 dim 1 : vector<32x128xf32>, i32 -> vector<32x128xf32>
    %31 = arith.subf %28, %29 : vector<32x128xf32>
    %32 = arith.mulf %31, %30 : vector<32x128xf32>
    %33 = arith.subf %32, %27 : vector<32x128xf32>
    %34 = arith.addf %33, %6 : vector<32x128xf32>
    %35 = arith.subf %13, %23 : vector<32x128xf32>
    %36 = arith.addf %35, %34 : vector<32x128xf32>
    %cst_14 = arith.constant 0.00999999977 : f32
    %37 = vector.broadcast %cst_14 : f32 to vector<32x128xf32>
    %38 = arith.mulf %37, %36 : vector<32x128xf32>
    %39 = arith.addf %5, %38 : vector<32x128xf32>
    %c127_i32_15 = arith.constant 127 : i32
    %40 = tpu.dynamic_rotate %39 by %c127_i32_15 dim 1 : vector<32x128xf32>, i32 -> vector<32x128xf32>
    %c2_i32_16 = arith.constant 2 : i32
    %41 = tpu.dynamic_rotate %39 by %c2_i32_16 dim 1 : vector<32x128xf32>, i32 -> vector<32x128xf32>
    %c1_i32_17 = arith.constant 1 : i32
    %42 = tpu.dynamic_rotate %39 by %c1_i32_17 dim 1 : vector<32x128xf32>, i32 -> vector<32x128xf32>
    %43 = arith.subf %40, %41 : vector<32x128xf32>
    %44 = arith.mulf %43, %42 : vector<32x128xf32>
    %45 = arith.subf %44, %39 : vector<32x128xf32>
    %46 = arith.addf %45, %6 : vector<32x128xf32>
    %47 = arith.addf %23, %34 : vector<32x128xf32>
    %cst_18 = arith.constant 3.000000e+00 : f32
    %48 = vector.broadcast %cst_18 : f32 to vector<32x128xf32>
    %49 = arith.mulf %48, %47 : vector<32x128xf32>
    %50 = arith.addf %13, %49 : vector<32x128xf32>
    %51 = arith.addf %50, %46 : vector<32x128xf32>
    %cst_19 = arith.constant 1.250000e-03 : f32
    %52 = vector.broadcast %cst_19 : f32 to vector<32x128xf32>
    %53 = arith.mulf %52, %51 : vector<32x128xf32>
    %54 = arith.addf %5, %53 : vector<32x128xf32>
    %c1_i32_20 = arith.constant 1 : i32
    %c127_i32_21 = arith.constant 127 : i32
    %55 = tpu.dynamic_rotate %54 by %c127_i32_21 dim 1 : vector<32x128xf32>, i32 -> vector<32x128xf32>
    %c2_i32_22 = arith.constant 2 : i32
    %56 = tpu.dynamic_rotate %54 by %c2_i32_22 dim 1 : vector<32x128xf32>, i32 -> vector<32x128xf32>
    %c1_i32_23 = arith.constant 1 : i32
    %57 = tpu.dynamic_rotate %54 by %c1_i32_23 dim 1 : vector<32x128xf32>, i32 -> vector<32x128xf32>
    %58 = arith.subf %55, %56 : vector<32x128xf32>
    %59 = arith.mulf %58, %57 : vector<32x128xf32>
    %60 = arith.subf %59, %54 : vector<32x128xf32>
    %61 = arith.addf %60, %6 : vector<32x128xf32>
    %cst_24 = arith.constant 0.00333333341 : f32
    %62 = vector.broadcast %cst_24 : f32 to vector<32x128xf32>
    %63 = arith.mulf %61, %62 : vector<32x128xf32>
    %64 = arith.addf %54, %63 : vector<32x128xf32>
    %c127_i32_25 = arith.constant 127 : i32
    %65 = tpu.dynamic_rotate %64 by %c127_i32_25 dim 1 : vector<32x128xf32>, i32 -> vector<32x128xf32>
    %c2_i32_26 = arith.constant 2 : i32
    %66 = tpu.dynamic_rotate %64 by %c2_i32_26 dim 1 : vector<32x128xf32>, i32 -> vector<32x128xf32>
    %c1_i32_27 = arith.constant 1 : i32
    %67 = tpu.dynamic_rotate %64 by %c1_i32_27 dim 1 : vector<32x128xf32>, i32 -> vector<32x128xf32>
    %68 = arith.subf %65, %66 : vector<32x128xf32>
    %69 = arith.mulf %68, %67 : vector<32x128xf32>
    %70 = arith.subf %69, %64 : vector<32x128xf32>
    %71 = arith.addf %70, %6 : vector<32x128xf32>
    %cst_28 = arith.constant 0.00999999977 : f32
    %72 = vector.broadcast %cst_28 : f32 to vector<32x128xf32>
    %73 = arith.mulf %72, %71 : vector<32x128xf32>
    %74 = arith.subf %73, %63 : vector<32x128xf32>
    %75 = arith.addf %54, %74 : vector<32x128xf32>
    %c127_i32_29 = arith.constant 127 : i32
    %76 = tpu.dynamic_rotate %75 by %c127_i32_29 dim 1 : vector<32x128xf32>, i32 -> vector<32x128xf32>
    %c2_i32_30 = arith.constant 2 : i32
    %77 = tpu.dynamic_rotate %75 by %c2_i32_30 dim 1 : vector<32x128xf32>, i32 -> vector<32x128xf32>
    %c1_i32_31 = arith.constant 1 : i32
    %78 = tpu.dynamic_rotate %75 by %c1_i32_31 dim 1 : vector<32x128xf32>, i32 -> vector<32x128xf32>
    %79 = arith.subf %76, %77 : vector<32x128xf32>
    %80 = arith.mulf %79, %78 : vector<32x128xf32>
    %81 = arith.subf %80, %75 : vector<32x128xf32>
    %82 = arith.addf %81, %6 : vector<32x128xf32>
    %83 = arith.subf %61, %71 : vector<32x128xf32>
    %84 = arith.addf %83, %82 : vector<32x128xf32>
    %cst_32 = arith.constant 0.00999999977 : f32
    %85 = vector.broadcast %cst_32 : f32 to vector<32x128xf32>
    %86 = arith.mulf %85, %84 : vector<32x128xf32>
    %87 = arith.addf %54, %86 : vector<32x128xf32>
    %c127_i32_33 = arith.constant 127 : i32
    %88 = tpu.dynamic_rotate %87 by %c127_i32_33 dim 1 : vector<32x128xf32>, i32 -> vector<32x128xf32>
    %c2_i32_34 = arith.constant 2 : i32
    %89 = tpu.dynamic_rotate %87 by %c2_i32_34 dim 1 : vector<32x128xf32>, i32 -> vector<32x128xf32>
    %c1_i32_35 = arith.constant 1 : i32
    %90 = tpu.dynamic_rotate %87 by %c1_i32_35 dim 1 : vector<32x128xf32>, i32 -> vector<32x128xf32>
    %91 = arith.subf %88, %89 : vector<32x128xf32>
    %92 = arith.mulf %91, %90 : vector<32x128xf32>
    %93 = arith.subf %92, %87 : vector<32x128xf32>
    %94 = arith.addf %93, %6 : vector<32x128xf32>
    %95 = arith.addf %71, %82 : vector<32x128xf32>
    %cst_36 = arith.constant 3.000000e+00 : f32
    %96 = vector.broadcast %cst_36 : f32 to vector<32x128xf32>
    %97 = arith.mulf %96, %95 : vector<32x128xf32>
    %98 = arith.addf %61, %97 : vector<32x128xf32>
    %99 = arith.addf %98, %94 : vector<32x128xf32>
    %cst_37 = arith.constant 1.250000e-03 : f32
    %100 = vector.broadcast %cst_37 : f32 to vector<32x128xf32>
    %101 = arith.mulf %100, %99 : vector<32x128xf32>
    %102 = arith.addf %54, %101 : vector<32x128xf32>
    %c2_i32_38 = arith.constant 2 : i32
    %c127_i32_39 = arith.constant 127 : i32
    %103 = tpu.dynamic_rotate %102 by %c127_i32_39 dim 1 : vector<32x128xf32>, i32 -> vector<32x128xf32>
    %c2_i32_40 = arith.constant 2 : i32
    %104 = tpu.dynamic_rotate %102 by %c2_i32_40 dim 1 : vector<32x128xf32>, i32 -> vector<32x128xf32>
    %c1_i32_41 = arith.constant 1 : i32
    %105 = tpu.dynamic_rotate %102 by %c1_i32_41 dim 1 : vector<32x128xf32>, i32 -> vector<32x128xf32>
    %106 = arith.subf %103, %104 : vector<32x128xf32>
    %107 = arith.mulf %106, %105 : vector<32x128xf32>
    %108 = arith.subf %107, %102 : vector<32x128xf32>
    %109 = arith.addf %108, %6 : vector<32x128xf32>
    %cst_42 = arith.constant 0.00333333341 : f32
    %110 = vector.broadcast %cst_42 : f32 to vector<32x128xf32>
    %111 = arith.mulf %109, %110 : vector<32x128xf32>
    %112 = arith.addf %102, %111 : vector<32x128xf32>
    %c127_i32_43 = arith.constant 127 : i32
    %113 = tpu.dynamic_rotate %112 by %c127_i32_43 dim 1 : vector<32x128xf32>, i32 -> vector<32x128xf32>
    %c2_i32_44 = arith.constant 2 : i32
    %114 = tpu.dynamic_rotate %112 by %c2_i32_44 dim 1 : vector<32x128xf32>, i32 -> vector<32x128xf32>
    %c1_i32_45 = arith.constant 1 : i32
    %115 = tpu.dynamic_rotate %112 by %c1_i32_45 dim 1 : vector<32x128xf32>, i32 -> vector<32x128xf32>
    %116 = arith.subf %113, %114 : vector<32x128xf32>
    %117 = arith.mulf %116, %115 : vector<32x128xf32>
    %118 = arith.subf %117, %112 : vector<32x128xf32>
    %119 = arith.addf %118, %6 : vector<32x128xf32>
    %cst_46 = arith.constant 0.00999999977 : f32
    %120 = vector.broadcast %cst_46 : f32 to vector<32x128xf32>
    %121 = arith.mulf %120, %119 : vector<32x128xf32>
    %122 = arith.subf %121, %111 : vector<32x128xf32>
    %123 = arith.addf %102, %122 : vector<32x128xf32>
    %c127_i32_47 = arith.constant 127 : i32
    %124 = tpu.dynamic_rotate %123 by %c127_i32_47 dim 1 : vector<32x128xf32>, i32 -> vector<32x128xf32>
    %c2_i32_48 = arith.constant 2 : i32
    %125 = tpu.dynamic_rotate %123 by %c2_i32_48 dim 1 : vector<32x128xf32>, i32 -> vector<32x128xf32>
    %c1_i32_49 = arith.constant 1 : i32
    %126 = tpu.dynamic_rotate %123 by %c1_i32_49 dim 1 : vector<32x128xf32>, i32 -> vector<32x128xf32>
    %127 = arith.subf %124, %125 : vector<32x128xf32>
    %128 = arith.mulf %127, %126 : vector<32x128xf32>
    %129 = arith.subf %128, %123 : vector<32x128xf32>
    %130 = arith.addf %129, %6 : vector<32x128xf32>
    %131 = arith.subf %109, %119 : vector<32x128xf32>
    %132 = arith.addf %131, %130 : vector<32x128xf32>
    %cst_50 = arith.constant 0.00999999977 : f32
    %133 = vector.broadcast %cst_50 : f32 to vector<32x128xf32>
    %134 = arith.mulf %133, %132 : vector<32x128xf32>
    %135 = arith.addf %102, %134 : vector<32x128xf32>
    %c127_i32_51 = arith.constant 127 : i32
    %136 = tpu.dynamic_rotate %135 by %c127_i32_51 dim 1 : vector<32x128xf32>, i32 -> vector<32x128xf32>
    %c2_i32_52 = arith.constant 2 : i32
    %137 = tpu.dynamic_rotate %135 by %c2_i32_52 dim 1 : vector<32x128xf32>, i32 -> vector<32x128xf32>
    %c1_i32_53 = arith.constant 1 : i32
    %138 = tpu.dynamic_rotate %135 by %c1_i32_53 dim 1 : vector<32x128xf32>, i32 -> vector<32x128xf32>
    %139 = arith.subf %136, %137 : vector<32x128xf32>
    %140 = arith.mulf %139, %138 : vector<32x128xf32>
    %141 = arith.subf %140, %135 : vector<32x128xf32>
    %142 = arith.addf %141, %6 : vector<32x128xf32>
    %143 = arith.addf %119, %130 : vector<32x128xf32>
    %cst_54 = arith.constant 3.000000e+00 : f32
    %144 = vector.broadcast %cst_54 : f32 to vector<32x128xf32>
    %145 = arith.mulf %144, %143 : vector<32x128xf32>
    %146 = arith.addf %109, %145 : vector<32x128xf32>
    %147 = arith.addf %146, %142 : vector<32x128xf32>
    %cst_55 = arith.constant 1.250000e-03 : f32
    %148 = vector.broadcast %cst_55 : f32 to vector<32x128xf32>
    %149 = arith.mulf %148, %147 : vector<32x128xf32>
    %150 = arith.addf %102, %149 : vector<32x128xf32>
    %c3_i32 = arith.constant 3 : i32
    %c127_i32_56 = arith.constant 127 : i32
    %151 = tpu.dynamic_rotate %150 by %c127_i32_56 dim 1 : vector<32x128xf32>, i32 -> vector<32x128xf32>
    %c2_i32_57 = arith.constant 2 : i32
    %152 = tpu.dynamic_rotate %150 by %c2_i32_57 dim 1 : vector<32x128xf32>, i32 -> vector<32x128xf32>
    %c1_i32_58 = arith.constant 1 : i32
    %153 = tpu.dynamic_rotate %150 by %c1_i32_58 dim 1 : vector<32x128xf32>, i32 -> vector<32x128xf32>
    %154 = arith.subf %151, %152 : vector<32x128xf32>
    %155 = arith.mulf %154, %153 : vector<32x128xf32>
    %156 = arith.subf %155, %150 : vector<32x128xf32>
    %157 = arith.addf %156, %6 : vector<32x128xf32>
    %cst_59 = arith.constant 0.00333333341 : f32
    %158 = vector.broadcast %cst_59 : f32 to vector<32x128xf32>
    %159 = arith.mulf %157, %158 : vector<32x128xf32>
    %160 = arith.addf %150, %159 : vector<32x128xf32>
    %c127_i32_60 = arith.constant 127 : i32
    %161 = tpu.dynamic_rotate %160 by %c127_i32_60 dim 1 : vector<32x128xf32>, i32 -> vector<32x128xf32>
    %c2_i32_61 = arith.constant 2 : i32
    %162 = tpu.dynamic_rotate %160 by %c2_i32_61 dim 1 : vector<32x128xf32>, i32 -> vector<32x128xf32>
    %c1_i32_62 = arith.constant 1 : i32
    %163 = tpu.dynamic_rotate %160 by %c1_i32_62 dim 1 : vector<32x128xf32>, i32 -> vector<32x128xf32>
    %164 = arith.subf %161, %162 : vector<32x128xf32>
    %165 = arith.mulf %164, %163 : vector<32x128xf32>
    %166 = arith.subf %165, %160 : vector<32x128xf32>
    %167 = arith.addf %166, %6 : vector<32x128xf32>
    %cst_63 = arith.constant 0.00999999977 : f32
    %168 = vector.broadcast %cst_63 : f32 to vector<32x128xf32>
    %169 = arith.mulf %168, %167 : vector<32x128xf32>
    %170 = arith.subf %169, %159 : vector<32x128xf32>
    %171 = arith.addf %150, %170 : vector<32x128xf32>
    %c127_i32_64 = arith.constant 127 : i32
    %172 = tpu.dynamic_rotate %171 by %c127_i32_64 dim 1 : vector<32x128xf32>, i32 -> vector<32x128xf32>
    %c2_i32_65 = arith.constant 2 : i32
    %173 = tpu.dynamic_rotate %171 by %c2_i32_65 dim 1 : vector<32x128xf32>, i32 -> vector<32x128xf32>
    %c1_i32_66 = arith.constant 1 : i32
    %174 = tpu.dynamic_rotate %171 by %c1_i32_66 dim 1 : vector<32x128xf32>, i32 -> vector<32x128xf32>
    %175 = arith.subf %172, %173 : vector<32x128xf32>
    %176 = arith.mulf %175, %174 : vector<32x128xf32>
    %177 = arith.subf %176, %171 : vector<32x128xf32>
    %178 = arith.addf %177, %6 : vector<32x128xf32>
    %179 = arith.subf %157, %167 : vector<32x128xf32>
    %180 = arith.addf %179, %178 : vector<32x128xf32>
    %cst_67 = arith.constant 0.00999999977 : f32
    %181 = vector.broadcast %cst_67 : f32 to vector<32x128xf32>
    %182 = arith.mulf %181, %180 : vector<32x128xf32>
    %183 = arith.addf %150, %182 : vector<32x128xf32>
    %c127_i32_68 = arith.constant 127 : i32
    %184 = tpu.dynamic_rotate %183 by %c127_i32_68 dim 1 : vector<32x128xf32>, i32 -> vector<32x128xf32>
    %c2_i32_69 = arith.constant 2 : i32
    %185 = tpu.dynamic_rotate %183 by %c2_i32_69 dim 1 : vector<32x128xf32>, i32 -> vector<32x128xf32>
    %c1_i32_70 = arith.constant 1 : i32
    %186 = tpu.dynamic_rotate %183 by %c1_i32_70 dim 1 : vector<32x128xf32>, i32 -> vector<32x128xf32>
    %187 = arith.subf %184, %185 : vector<32x128xf32>
    %188 = arith.mulf %187, %186 : vector<32x128xf32>
    %189 = arith.subf %188, %183 : vector<32x128xf32>
    %190 = arith.addf %189, %6 : vector<32x128xf32>
    %191 = arith.addf %167, %178 : vector<32x128xf32>
    %cst_71 = arith.constant 3.000000e+00 : f32
    %192 = vector.broadcast %cst_71 : f32 to vector<32x128xf32>
    %193 = arith.mulf %192, %191 : vector<32x128xf32>
    %194 = arith.addf %157, %193 : vector<32x128xf32>
    %195 = arith.addf %194, %190 : vector<32x128xf32>
    %cst_72 = arith.constant 1.250000e-03 : f32
    %196 = vector.broadcast %cst_72 : f32 to vector<32x128xf32>
    %197 = arith.mulf %196, %195 : vector<32x128xf32>
    %198 = arith.addf %150, %197 : vector<32x128xf32>
    %c4_i32 = arith.constant 4 : i32
    %c127_i32_73 = arith.constant 127 : i32
    %199 = tpu.dynamic_rotate %198 by %c127_i32_73 dim 1 : vector<32x128xf32>, i32 -> vector<32x128xf32>
    %c2_i32_74 = arith.constant 2 : i32
    %200 = tpu.dynamic_rotate %198 by %c2_i32_74 dim 1 : vector<32x128xf32>, i32 -> vector<32x128xf32>
    %c1_i32_75 = arith.constant 1 : i32
    %201 = tpu.dynamic_rotate %198 by %c1_i32_75 dim 1 : vector<32x128xf32>, i32 -> vector<32x128xf32>
    %202 = arith.subf %199, %200 : vector<32x128xf32>
    %203 = arith.mulf %202, %201 : vector<32x128xf32>
    %204 = arith.subf %203, %198 : vector<32x128xf32>
    %205 = arith.addf %204, %6 : vector<32x128xf32>
    %cst_76 = arith.constant 0.00333333341 : f32
    %206 = vector.broadcast %cst_76 : f32 to vector<32x128xf32>
    %207 = arith.mulf %205, %206 : vector<32x128xf32>
    %208 = arith.addf %198, %207 : vector<32x128xf32>
    %c127_i32_77 = arith.constant 127 : i32
    %209 = tpu.dynamic_rotate %208 by %c127_i32_77 dim 1 : vector<32x128xf32>, i32 -> vector<32x128xf32>
    %c2_i32_78 = arith.constant 2 : i32
    %210 = tpu.dynamic_rotate %208 by %c2_i32_78 dim 1 : vector<32x128xf32>, i32 -> vector<32x128xf32>
    %c1_i32_79 = arith.constant 1 : i32
    %211 = tpu.dynamic_rotate %208 by %c1_i32_79 dim 1 : vector<32x128xf32>, i32 -> vector<32x128xf32>
    %212 = arith.subf %209, %210 : vector<32x128xf32>
    %213 = arith.mulf %212, %211 : vector<32x128xf32>
    %214 = arith.subf %213, %208 : vector<32x128xf32>
    %215 = arith.addf %214, %6 : vector<32x128xf32>
    %cst_80 = arith.constant 0.00999999977 : f32
    %216 = vector.broadcast %cst_80 : f32 to vector<32x128xf32>
    %217 = arith.mulf %216, %215 : vector<32x128xf32>
    %218 = arith.subf %217, %207 : vector<32x128xf32>
    %219 = arith.addf %198, %218 : vector<32x128xf32>
    %c127_i32_81 = arith.constant 127 : i32
    %220 = tpu.dynamic_rotate %219 by %c127_i32_81 dim 1 : vector<32x128xf32>, i32 -> vector<32x128xf32>
    %c2_i32_82 = arith.constant 2 : i32
    %221 = tpu.dynamic_rotate %219 by %c2_i32_82 dim 1 : vector<32x128xf32>, i32 -> vector<32x128xf32>
    %c1_i32_83 = arith.constant 1 : i32
    %222 = tpu.dynamic_rotate %219 by %c1_i32_83 dim 1 : vector<32x128xf32>, i32 -> vector<32x128xf32>
    %223 = arith.subf %220, %221 : vector<32x128xf32>
    %224 = arith.mulf %223, %222 : vector<32x128xf32>
    %225 = arith.subf %224, %219 : vector<32x128xf32>
    %226 = arith.addf %225, %6 : vector<32x128xf32>
    %227 = arith.subf %205, %215 : vector<32x128xf32>
    %228 = arith.addf %227, %226 : vector<32x128xf32>
    %cst_84 = arith.constant 0.00999999977 : f32
    %229 = vector.broadcast %cst_84 : f32 to vector<32x128xf32>
    %230 = arith.mulf %229, %228 : vector<32x128xf32>
    %231 = arith.addf %198, %230 : vector<32x128xf32>
    %c127_i32_85 = arith.constant 127 : i32
    %232 = tpu.dynamic_rotate %231 by %c127_i32_85 dim 1 : vector<32x128xf32>, i32 -> vector<32x128xf32>
    %c2_i32_86 = arith.constant 2 : i32
    %233 = tpu.dynamic_rotate %231 by %c2_i32_86 dim 1 : vector<32x128xf32>, i32 -> vector<32x128xf32>
    %c1_i32_87 = arith.constant 1 : i32
    %234 = tpu.dynamic_rotate %231 by %c1_i32_87 dim 1 : vector<32x128xf32>, i32 -> vector<32x128xf32>
    %235 = arith.subf %232, %233 : vector<32x128xf32>
    %236 = arith.mulf %235, %234 : vector<32x128xf32>
    %237 = arith.subf %236, %231 : vector<32x128xf32>
    %238 = arith.addf %237, %6 : vector<32x128xf32>
    %239 = arith.addf %215, %226 : vector<32x128xf32>
    %cst_88 = arith.constant 3.000000e+00 : f32
    %240 = vector.broadcast %cst_88 : f32 to vector<32x128xf32>
    %241 = arith.mulf %240, %239 : vector<32x128xf32>
    %242 = arith.addf %205, %241 : vector<32x128xf32>
    %243 = arith.addf %242, %238 : vector<32x128xf32>
    %cst_89 = arith.constant 1.250000e-03 : f32
    %244 = vector.broadcast %cst_89 : f32 to vector<32x128xf32>
    %245 = arith.mulf %244, %243 : vector<32x128xf32>
    %246 = arith.addf %198, %245 : vector<32x128xf32>
    %c5_i32 = arith.constant 5 : i32
    %c127_i32_90 = arith.constant 127 : i32
    %247 = tpu.dynamic_rotate %246 by %c127_i32_90 dim 1 : vector<32x128xf32>, i32 -> vector<32x128xf32>
    %c2_i32_91 = arith.constant 2 : i32
    %248 = tpu.dynamic_rotate %246 by %c2_i32_91 dim 1 : vector<32x128xf32>, i32 -> vector<32x128xf32>
    %c1_i32_92 = arith.constant 1 : i32
    %249 = tpu.dynamic_rotate %246 by %c1_i32_92 dim 1 : vector<32x128xf32>, i32 -> vector<32x128xf32>
    %250 = arith.subf %247, %248 : vector<32x128xf32>
    %251 = arith.mulf %250, %249 : vector<32x128xf32>
    %252 = arith.subf %251, %246 : vector<32x128xf32>
    %253 = arith.addf %252, %6 : vector<32x128xf32>
    %cst_93 = arith.constant 0.00333333341 : f32
    %254 = vector.broadcast %cst_93 : f32 to vector<32x128xf32>
    %255 = arith.mulf %253, %254 : vector<32x128xf32>
    %256 = arith.addf %246, %255 : vector<32x128xf32>
    %c127_i32_94 = arith.constant 127 : i32
    %257 = tpu.dynamic_rotate %256 by %c127_i32_94 dim 1 : vector<32x128xf32>, i32 -> vector<32x128xf32>
    %c2_i32_95 = arith.constant 2 : i32
    %258 = tpu.dynamic_rotate %256 by %c2_i32_95 dim 1 : vector<32x128xf32>, i32 -> vector<32x128xf32>
    %c1_i32_96 = arith.constant 1 : i32
    %259 = tpu.dynamic_rotate %256 by %c1_i32_96 dim 1 : vector<32x128xf32>, i32 -> vector<32x128xf32>
    %260 = arith.subf %257, %258 : vector<32x128xf32>
    %261 = arith.mulf %260, %259 : vector<32x128xf32>
    %262 = arith.subf %261, %256 : vector<32x128xf32>
    %263 = arith.addf %262, %6 : vector<32x128xf32>
    %cst_97 = arith.constant 0.00999999977 : f32
    %264 = vector.broadcast %cst_97 : f32 to vector<32x128xf32>
    %265 = arith.mulf %264, %263 : vector<32x128xf32>
    %266 = arith.subf %265, %255 : vector<32x128xf32>
    %267 = arith.addf %246, %266 : vector<32x128xf32>
    %c127_i32_98 = arith.constant 127 : i32
    %268 = tpu.dynamic_rotate %267 by %c127_i32_98 dim 1 : vector<32x128xf32>, i32 -> vector<32x128xf32>
    %c2_i32_99 = arith.constant 2 : i32
    %269 = tpu.dynamic_rotate %267 by %c2_i32_99 dim 1 : vector<32x128xf32>, i32 -> vector<32x128xf32>
    %c1_i32_100 = arith.constant 1 : i32
    %270 = tpu.dynamic_rotate %267 by %c1_i32_100 dim 1 : vector<32x128xf32>, i32 -> vector<32x128xf32>
    %271 = arith.subf %268, %269 : vector<32x128xf32>
    %272 = arith.mulf %271, %270 : vector<32x128xf32>
    %273 = arith.subf %272, %267 : vector<32x128xf32>
    %274 = arith.addf %273, %6 : vector<32x128xf32>
    %275 = arith.subf %253, %263 : vector<32x128xf32>
    %276 = arith.addf %275, %274 : vector<32x128xf32>
    %cst_101 = arith.constant 0.00999999977 : f32
    %277 = vector.broadcast %cst_101 : f32 to vector<32x128xf32>
    %278 = arith.mulf %277, %276 : vector<32x128xf32>
    %279 = arith.addf %246, %278 : vector<32x128xf32>
    %c127_i32_102 = arith.constant 127 : i32
    %280 = tpu.dynamic_rotate %279 by %c127_i32_102 dim 1 : vector<32x128xf32>, i32 -> vector<32x128xf32>
    %c2_i32_103 = arith.constant 2 : i32
    %281 = tpu.dynamic_rotate %279 by %c2_i32_103 dim 1 : vector<32x128xf32>, i32 -> vector<32x128xf32>
    %c1_i32_104 = arith.constant 1 : i32
    %282 = tpu.dynamic_rotate %279 by %c1_i32_104 dim 1 : vector<32x128xf32>, i32 -> vector<32x128xf32>
    %283 = arith.subf %280, %281 : vector<32x128xf32>
    %284 = arith.mulf %283, %282 : vector<32x128xf32>
    %285 = arith.subf %284, %279 : vector<32x128xf32>
    %286 = arith.addf %285, %6 : vector<32x128xf32>
    %287 = arith.addf %263, %274 : vector<32x128xf32>
    %cst_105 = arith.constant 3.000000e+00 : f32
    %288 = vector.broadcast %cst_105 : f32 to vector<32x128xf32>
    %289 = arith.mulf %288, %287 : vector<32x128xf32>
    %290 = arith.addf %253, %289 : vector<32x128xf32>
    %291 = arith.addf %290, %286 : vector<32x128xf32>
    %cst_106 = arith.constant 1.250000e-03 : f32
    %292 = vector.broadcast %cst_106 : f32 to vector<32x128xf32>
    %293 = arith.mulf %292, %291 : vector<32x128xf32>
    %294 = arith.addf %246, %293 : vector<32x128xf32>
    %c6_i32 = arith.constant 6 : i32
    %c127_i32_107 = arith.constant 127 : i32
    %295 = tpu.dynamic_rotate %294 by %c127_i32_107 dim 1 : vector<32x128xf32>, i32 -> vector<32x128xf32>
    %c2_i32_108 = arith.constant 2 : i32
    %296 = tpu.dynamic_rotate %294 by %c2_i32_108 dim 1 : vector<32x128xf32>, i32 -> vector<32x128xf32>
    %c1_i32_109 = arith.constant 1 : i32
    %297 = tpu.dynamic_rotate %294 by %c1_i32_109 dim 1 : vector<32x128xf32>, i32 -> vector<32x128xf32>
    %298 = arith.subf %295, %296 : vector<32x128xf32>
    %299 = arith.mulf %298, %297 : vector<32x128xf32>
    %300 = arith.subf %299, %294 : vector<32x128xf32>
    %301 = arith.addf %300, %6 : vector<32x128xf32>
    %cst_110 = arith.constant 0.00333333341 : f32
    %302 = vector.broadcast %cst_110 : f32 to vector<32x128xf32>
    %303 = arith.mulf %301, %302 : vector<32x128xf32>
    %304 = arith.addf %294, %303 : vector<32x128xf32>
    %c127_i32_111 = arith.constant 127 : i32
    %305 = tpu.dynamic_rotate %304 by %c127_i32_111 dim 1 : vector<32x128xf32>, i32 -> vector<32x128xf32>
    %c2_i32_112 = arith.constant 2 : i32
    %306 = tpu.dynamic_rotate %304 by %c2_i32_112 dim 1 : vector<32x128xf32>, i32 -> vector<32x128xf32>
    %c1_i32_113 = arith.constant 1 : i32
    %307 = tpu.dynamic_rotate %304 by %c1_i32_113 dim 1 : vector<32x128xf32>, i32 -> vector<32x128xf32>
    %308 = arith.subf %305, %306 : vector<32x128xf32>
    %309 = arith.mulf %308, %307 : vector<32x128xf32>
    %310 = arith.subf %309, %304 : vector<32x128xf32>
    %311 = arith.addf %310, %6 : vector<32x128xf32>
    %cst_114 = arith.constant 0.00999999977 : f32
    %312 = vector.broadcast %cst_114 : f32 to vector<32x128xf32>
    %313 = arith.mulf %312, %311 : vector<32x128xf32>
    %314 = arith.subf %313, %303 : vector<32x128xf32>
    %315 = arith.addf %294, %314 : vector<32x128xf32>
    %c127_i32_115 = arith.constant 127 : i32
    %316 = tpu.dynamic_rotate %315 by %c127_i32_115 dim 1 : vector<32x128xf32>, i32 -> vector<32x128xf32>
    %c2_i32_116 = arith.constant 2 : i32
    %317 = tpu.dynamic_rotate %315 by %c2_i32_116 dim 1 : vector<32x128xf32>, i32 -> vector<32x128xf32>
    %c1_i32_117 = arith.constant 1 : i32
    %318 = tpu.dynamic_rotate %315 by %c1_i32_117 dim 1 : vector<32x128xf32>, i32 -> vector<32x128xf32>
    %319 = arith.subf %316, %317 : vector<32x128xf32>
    %320 = arith.mulf %319, %318 : vector<32x128xf32>
    %321 = arith.subf %320, %315 : vector<32x128xf32>
    %322 = arith.addf %321, %6 : vector<32x128xf32>
    %323 = arith.subf %301, %311 : vector<32x128xf32>
    %324 = arith.addf %323, %322 : vector<32x128xf32>
    %cst_118 = arith.constant 0.00999999977 : f32
    %325 = vector.broadcast %cst_118 : f32 to vector<32x128xf32>
    %326 = arith.mulf %325, %324 : vector<32x128xf32>
    %327 = arith.addf %294, %326 : vector<32x128xf32>
    %c127_i32_119 = arith.constant 127 : i32
    %328 = tpu.dynamic_rotate %327 by %c127_i32_119 dim 1 : vector<32x128xf32>, i32 -> vector<32x128xf32>
    %c2_i32_120 = arith.constant 2 : i32
    %329 = tpu.dynamic_rotate %327 by %c2_i32_120 dim 1 : vector<32x128xf32>, i32 -> vector<32x128xf32>
    %c1_i32_121 = arith.constant 1 : i32
    %330 = tpu.dynamic_rotate %327 by %c1_i32_121 dim 1 : vector<32x128xf32>, i32 -> vector<32x128xf32>
    %331 = arith.subf %328, %329 : vector<32x128xf32>
    %332 = arith.mulf %331, %330 : vector<32x128xf32>
    %333 = arith.subf %332, %327 : vector<32x128xf32>
    %334 = arith.addf %333, %6 : vector<32x128xf32>
    %335 = arith.addf %311, %322 : vector<32x128xf32>
    %cst_122 = arith.constant 3.000000e+00 : f32
    %336 = vector.broadcast %cst_122 : f32 to vector<32x128xf32>
    %337 = arith.mulf %336, %335 : vector<32x128xf32>
    %338 = arith.addf %301, %337 : vector<32x128xf32>
    %339 = arith.addf %338, %334 : vector<32x128xf32>
    %cst_123 = arith.constant 1.250000e-03 : f32
    %340 = vector.broadcast %cst_123 : f32 to vector<32x128xf32>
    %341 = arith.mulf %340, %339 : vector<32x128xf32>
    %342 = arith.addf %294, %341 : vector<32x128xf32>
    %c7_i32 = arith.constant 7 : i32
    %c127_i32_124 = arith.constant 127 : i32
    %343 = tpu.dynamic_rotate %342 by %c127_i32_124 dim 1 : vector<32x128xf32>, i32 -> vector<32x128xf32>
    %c2_i32_125 = arith.constant 2 : i32
    %344 = tpu.dynamic_rotate %342 by %c2_i32_125 dim 1 : vector<32x128xf32>, i32 -> vector<32x128xf32>
    %c1_i32_126 = arith.constant 1 : i32
    %345 = tpu.dynamic_rotate %342 by %c1_i32_126 dim 1 : vector<32x128xf32>, i32 -> vector<32x128xf32>
    %346 = arith.subf %343, %344 : vector<32x128xf32>
    %347 = arith.mulf %346, %345 : vector<32x128xf32>
    %348 = arith.subf %347, %342 : vector<32x128xf32>
    %349 = arith.addf %348, %6 : vector<32x128xf32>
    %cst_127 = arith.constant 0.00333333341 : f32
    %350 = vector.broadcast %cst_127 : f32 to vector<32x128xf32>
    %351 = arith.mulf %349, %350 : vector<32x128xf32>
    %352 = arith.addf %342, %351 : vector<32x128xf32>
    %c127_i32_128 = arith.constant 127 : i32
    %353 = tpu.dynamic_rotate %352 by %c127_i32_128 dim 1 : vector<32x128xf32>, i32 -> vector<32x128xf32>
    %c2_i32_129 = arith.constant 2 : i32
    %354 = tpu.dynamic_rotate %352 by %c2_i32_129 dim 1 : vector<32x128xf32>, i32 -> vector<32x128xf32>
    %c1_i32_130 = arith.constant 1 : i32
    %355 = tpu.dynamic_rotate %352 by %c1_i32_130 dim 1 : vector<32x128xf32>, i32 -> vector<32x128xf32>
    %356 = arith.subf %353, %354 : vector<32x128xf32>
    %357 = arith.mulf %356, %355 : vector<32x128xf32>
    %358 = arith.subf %357, %352 : vector<32x128xf32>
    %359 = arith.addf %358, %6 : vector<32x128xf32>
    %cst_131 = arith.constant 0.00999999977 : f32
    %360 = vector.broadcast %cst_131 : f32 to vector<32x128xf32>
    %361 = arith.mulf %360, %359 : vector<32x128xf32>
    %362 = arith.subf %361, %351 : vector<32x128xf32>
    %363 = arith.addf %342, %362 : vector<32x128xf32>
    %c127_i32_132 = arith.constant 127 : i32
    %364 = tpu.dynamic_rotate %363 by %c127_i32_132 dim 1 : vector<32x128xf32>, i32 -> vector<32x128xf32>
    %c2_i32_133 = arith.constant 2 : i32
    %365 = tpu.dynamic_rotate %363 by %c2_i32_133 dim 1 : vector<32x128xf32>, i32 -> vector<32x128xf32>
    %c1_i32_134 = arith.constant 1 : i32
    %366 = tpu.dynamic_rotate %363 by %c1_i32_134 dim 1 : vector<32x128xf32>, i32 -> vector<32x128xf32>
    %367 = arith.subf %364, %365 : vector<32x128xf32>
    %368 = arith.mulf %367, %366 : vector<32x128xf32>
    %369 = arith.subf %368, %363 : vector<32x128xf32>
    %370 = arith.addf %369, %6 : vector<32x128xf32>
    %371 = arith.subf %349, %359 : vector<32x128xf32>
    %372 = arith.addf %371, %370 : vector<32x128xf32>
    %cst_135 = arith.constant 0.00999999977 : f32
    %373 = vector.broadcast %cst_135 : f32 to vector<32x128xf32>
    %374 = arith.mulf %373, %372 : vector<32x128xf32>
    %375 = arith.addf %342, %374 : vector<32x128xf32>
    %c127_i32_136 = arith.constant 127 : i32
    %376 = tpu.dynamic_rotate %375 by %c127_i32_136 dim 1 : vector<32x128xf32>, i32 -> vector<32x128xf32>
    %c2_i32_137 = arith.constant 2 : i32
    %377 = tpu.dynamic_rotate %375 by %c2_i32_137 dim 1 : vector<32x128xf32>, i32 -> vector<32x128xf32>
    %c1_i32_138 = arith.constant 1 : i32
    %378 = tpu.dynamic_rotate %375 by %c1_i32_138 dim 1 : vector<32x128xf32>, i32 -> vector<32x128xf32>
    %379 = arith.subf %376, %377 : vector<32x128xf32>
    %380 = arith.mulf %379, %378 : vector<32x128xf32>
    %381 = arith.subf %380, %375 : vector<32x128xf32>
    %382 = arith.addf %381, %6 : vector<32x128xf32>
    %383 = arith.addf %359, %370 : vector<32x128xf32>
    %cst_139 = arith.constant 3.000000e+00 : f32
    %384 = vector.broadcast %cst_139 : f32 to vector<32x128xf32>
    %385 = arith.mulf %384, %383 : vector<32x128xf32>
    %386 = arith.addf %349, %385 : vector<32x128xf32>
    %387 = arith.addf %386, %382 : vector<32x128xf32>
    %cst_140 = arith.constant 1.250000e-03 : f32
    %388 = vector.broadcast %cst_140 : f32 to vector<32x128xf32>
    %389 = arith.mulf %388, %387 : vector<32x128xf32>
    %390 = arith.addf %342, %389 : vector<32x128xf32>
    %c8_i32 = arith.constant 8 : i32
    %c127_i32_141 = arith.constant 127 : i32
    %391 = tpu.dynamic_rotate %390 by %c127_i32_141 dim 1 : vector<32x128xf32>, i32 -> vector<32x128xf32>
    %c2_i32_142 = arith.constant 2 : i32
    %392 = tpu.dynamic_rotate %390 by %c2_i32_142 dim 1 : vector<32x128xf32>, i32 -> vector<32x128xf32>
    %c1_i32_143 = arith.constant 1 : i32
    %393 = tpu.dynamic_rotate %390 by %c1_i32_143 dim 1 : vector<32x128xf32>, i32 -> vector<32x128xf32>
    %394 = arith.subf %391, %392 : vector<32x128xf32>
    %395 = arith.mulf %394, %393 : vector<32x128xf32>
    %396 = arith.subf %395, %390 : vector<32x128xf32>
    %397 = arith.addf %396, %6 : vector<32x128xf32>
    %cst_144 = arith.constant 0.00333333341 : f32
    %398 = vector.broadcast %cst_144 : f32 to vector<32x128xf32>
    %399 = arith.mulf %397, %398 : vector<32x128xf32>
    %400 = arith.addf %390, %399 : vector<32x128xf32>
    %c127_i32_145 = arith.constant 127 : i32
    %401 = tpu.dynamic_rotate %400 by %c127_i32_145 dim 1 : vector<32x128xf32>, i32 -> vector<32x128xf32>
    %c2_i32_146 = arith.constant 2 : i32
    %402 = tpu.dynamic_rotate %400 by %c2_i32_146 dim 1 : vector<32x128xf32>, i32 -> vector<32x128xf32>
    %c1_i32_147 = arith.constant 1 : i32
    %403 = tpu.dynamic_rotate %400 by %c1_i32_147 dim 1 : vector<32x128xf32>, i32 -> vector<32x128xf32>
    %404 = arith.subf %401, %402 : vector<32x128xf32>
    %405 = arith.mulf %404, %403 : vector<32x128xf32>
    %406 = arith.subf %405, %400 : vector<32x128xf32>
    %407 = arith.addf %406, %6 : vector<32x128xf32>
    %cst_148 = arith.constant 0.00999999977 : f32
    %408 = vector.broadcast %cst_148 : f32 to vector<32x128xf32>
    %409 = arith.mulf %408, %407 : vector<32x128xf32>
    %410 = arith.subf %409, %399 : vector<32x128xf32>
    %411 = arith.addf %390, %410 : vector<32x128xf32>
    %c127_i32_149 = arith.constant 127 : i32
    %412 = tpu.dynamic_rotate %411 by %c127_i32_149 dim 1 : vector<32x128xf32>, i32 -> vector<32x128xf32>
    %c2_i32_150 = arith.constant 2 : i32
    %413 = tpu.dynamic_rotate %411 by %c2_i32_150 dim 1 : vector<32x128xf32>, i32 -> vector<32x128xf32>
    %c1_i32_151 = arith.constant 1 : i32
    %414 = tpu.dynamic_rotate %411 by %c1_i32_151 dim 1 : vector<32x128xf32>, i32 -> vector<32x128xf32>
    %415 = arith.subf %412, %413 : vector<32x128xf32>
    %416 = arith.mulf %415, %414 : vector<32x128xf32>
    %417 = arith.subf %416, %411 : vector<32x128xf32>
    %418 = arith.addf %417, %6 : vector<32x128xf32>
    %419 = arith.subf %397, %407 : vector<32x128xf32>
    %420 = arith.addf %419, %418 : vector<32x128xf32>
    %cst_152 = arith.constant 0.00999999977 : f32
    %421 = vector.broadcast %cst_152 : f32 to vector<32x128xf32>
    %422 = arith.mulf %421, %420 : vector<32x128xf32>
    %423 = arith.addf %390, %422 : vector<32x128xf32>
    %c127_i32_153 = arith.constant 127 : i32
    %424 = tpu.dynamic_rotate %423 by %c127_i32_153 dim 1 : vector<32x128xf32>, i32 -> vector<32x128xf32>
    %c2_i32_154 = arith.constant 2 : i32
    %425 = tpu.dynamic_rotate %423 by %c2_i32_154 dim 1 : vector<32x128xf32>, i32 -> vector<32x128xf32>
    %c1_i32_155 = arith.constant 1 : i32
    %426 = tpu.dynamic_rotate %423 by %c1_i32_155 dim 1 : vector<32x128xf32>, i32 -> vector<32x128xf32>
    %427 = arith.subf %424, %425 : vector<32x128xf32>
    %428 = arith.mulf %427, %426 : vector<32x128xf32>
    %429 = arith.subf %428, %423 : vector<32x128xf32>
    %430 = arith.addf %429, %6 : vector<32x128xf32>
    %431 = arith.addf %407, %418 : vector<32x128xf32>
    %cst_156 = arith.constant 3.000000e+00 : f32
    %432 = vector.broadcast %cst_156 : f32 to vector<32x128xf32>
    %433 = arith.mulf %432, %431 : vector<32x128xf32>
    %434 = arith.addf %397, %433 : vector<32x128xf32>
    %435 = arith.addf %434, %430 : vector<32x128xf32>
    %cst_157 = arith.constant 1.250000e-03 : f32
    %436 = vector.broadcast %cst_157 : f32 to vector<32x128xf32>
    %437 = arith.mulf %436, %435 : vector<32x128xf32>
    %438 = arith.addf %390, %437 : vector<32x128xf32>
    %c9_i32 = arith.constant 9 : i32
    %c127_i32_158 = arith.constant 127 : i32
    %439 = tpu.dynamic_rotate %438 by %c127_i32_158 dim 1 : vector<32x128xf32>, i32 -> vector<32x128xf32>
    %c2_i32_159 = arith.constant 2 : i32
    %440 = tpu.dynamic_rotate %438 by %c2_i32_159 dim 1 : vector<32x128xf32>, i32 -> vector<32x128xf32>
    %c1_i32_160 = arith.constant 1 : i32
    %441 = tpu.dynamic_rotate %438 by %c1_i32_160 dim 1 : vector<32x128xf32>, i32 -> vector<32x128xf32>
    %442 = arith.subf %439, %440 : vector<32x128xf32>
    %443 = arith.mulf %442, %441 : vector<32x128xf32>
    %444 = arith.subf %443, %438 : vector<32x128xf32>
    %445 = arith.addf %444, %6 : vector<32x128xf32>
    %cst_161 = arith.constant 0.00333333341 : f32
    %446 = vector.broadcast %cst_161 : f32 to vector<32x128xf32>
    %447 = arith.mulf %445, %446 : vector<32x128xf32>
    %448 = arith.addf %438, %447 : vector<32x128xf32>
    %c127_i32_162 = arith.constant 127 : i32
    %449 = tpu.dynamic_rotate %448 by %c127_i32_162 dim 1 : vector<32x128xf32>, i32 -> vector<32x128xf32>
    %c2_i32_163 = arith.constant 2 : i32
    %450 = tpu.dynamic_rotate %448 by %c2_i32_163 dim 1 : vector<32x128xf32>, i32 -> vector<32x128xf32>
    %c1_i32_164 = arith.constant 1 : i32
    %451 = tpu.dynamic_rotate %448 by %c1_i32_164 dim 1 : vector<32x128xf32>, i32 -> vector<32x128xf32>
    %452 = arith.subf %449, %450 : vector<32x128xf32>
    %453 = arith.mulf %452, %451 : vector<32x128xf32>
    %454 = arith.subf %453, %448 : vector<32x128xf32>
    %455 = arith.addf %454, %6 : vector<32x128xf32>
    %cst_165 = arith.constant 0.00999999977 : f32
    %456 = vector.broadcast %cst_165 : f32 to vector<32x128xf32>
    %457 = arith.mulf %456, %455 : vector<32x128xf32>
    %458 = arith.subf %457, %447 : vector<32x128xf32>
    %459 = arith.addf %438, %458 : vector<32x128xf32>
    %c127_i32_166 = arith.constant 127 : i32
    %460 = tpu.dynamic_rotate %459 by %c127_i32_166 dim 1 : vector<32x128xf32>, i32 -> vector<32x128xf32>
    %c2_i32_167 = arith.constant 2 : i32
    %461 = tpu.dynamic_rotate %459 by %c2_i32_167 dim 1 : vector<32x128xf32>, i32 -> vector<32x128xf32>
    %c1_i32_168 = arith.constant 1 : i32
    %462 = tpu.dynamic_rotate %459 by %c1_i32_168 dim 1 : vector<32x128xf32>, i32 -> vector<32x128xf32>
    %463 = arith.subf %460, %461 : vector<32x128xf32>
    %464 = arith.mulf %463, %462 : vector<32x128xf32>
    %465 = arith.subf %464, %459 : vector<32x128xf32>
    %466 = arith.addf %465, %6 : vector<32x128xf32>
    %467 = arith.subf %445, %455 : vector<32x128xf32>
    %468 = arith.addf %467, %466 : vector<32x128xf32>
    %cst_169 = arith.constant 0.00999999977 : f32
    %469 = vector.broadcast %cst_169 : f32 to vector<32x128xf32>
    %470 = arith.mulf %469, %468 : vector<32x128xf32>
    %471 = arith.addf %438, %470 : vector<32x128xf32>
    %c127_i32_170 = arith.constant 127 : i32
    %472 = tpu.dynamic_rotate %471 by %c127_i32_170 dim 1 : vector<32x128xf32>, i32 -> vector<32x128xf32>
    %c2_i32_171 = arith.constant 2 : i32
    %473 = tpu.dynamic_rotate %471 by %c2_i32_171 dim 1 : vector<32x128xf32>, i32 -> vector<32x128xf32>
    %c1_i32_172 = arith.constant 1 : i32
    %474 = tpu.dynamic_rotate %471 by %c1_i32_172 dim 1 : vector<32x128xf32>, i32 -> vector<32x128xf32>
    %475 = arith.subf %472, %473 : vector<32x128xf32>
    %476 = arith.mulf %475, %474 : vector<32x128xf32>
    %477 = arith.subf %476, %471 : vector<32x128xf32>
    %478 = arith.addf %477, %6 : vector<32x128xf32>
    %479 = arith.addf %455, %466 : vector<32x128xf32>
    %cst_173 = arith.constant 3.000000e+00 : f32
    %480 = vector.broadcast %cst_173 : f32 to vector<32x128xf32>
    %481 = arith.mulf %480, %479 : vector<32x128xf32>
    %482 = arith.addf %445, %481 : vector<32x128xf32>
    %483 = arith.addf %482, %478 : vector<32x128xf32>
    %cst_174 = arith.constant 1.250000e-03 : f32
    %484 = vector.broadcast %cst_174 : f32 to vector<32x128xf32>
    %485 = arith.mulf %484, %483 : vector<32x128xf32>
    %486 = arith.addf %438, %485 : vector<32x128xf32>
    %c0_175 = arith.constant 0 : index
    %c0_176 = arith.constant 0 : index
    %487 = vector.load %arg4[%c0_175, %c0_176] : memref<128x10xf32, #tpu.memory_space<vmem>>, vector<128x10xf32>
    %cst_177 = arith.constant dense<0.000000e+00> : vector<32x10xf32>
    %488 = tpu.matmul %486, %487, %cst_177 {dimension_numbers = #tpu.dot_dimension_numbers<[1], [0], [0], [1], [0, 0, 1, 1], [], []>, precision = #tpu.contract_precision<fp32>} : vector<32x128xf32>, vector<128x10xf32>, vector<32x10xf32> -> vector<32x10xf32>
    %c0_178 = arith.constant 0 : index
    %c0_179 = arith.constant 0 : index
    %489 = vector.load %arg5[%c0_178, %c0_179] : memref<1x10xf32, #tpu.memory_space<vmem>>, vector<1x10xf32>
    %490 = vector.broadcast %489 : vector<1x10xf32> to vector<32x10xf32>
    %491 = arith.addf %488, %490 : vector<32x10xf32>
    %cst_180 = arith.constant dense<0xFF800000> : vector<32xf32>
    %492 = vector.multi_reduction <maximumf>, %491, %cst_180 [1] : vector<32x10xf32> to vector<32xf32>
    %493 = vector.shape_cast %492 : vector<32xf32> to vector<32x1xf32>
    %494 = vector.broadcast %493 : vector<32x1xf32> to vector<32x10xf32>
    %495 = arith.subf %491, %494 : vector<32x10xf32>
    %496 = math.exp %495 : vector<32x10xf32>
    %cst_181 = arith.constant dense<0.000000e+00> : vector<32xf32>
    %497 = vector.multi_reduction <add>, %496, %cst_181 [1] : vector<32x10xf32> to vector<32xf32>
    %498 = vector.shape_cast %497 : vector<32xf32> to vector<32x1xf32>
    %499 = math.log %498 : vector<32x1xf32>
    %500 = vector.broadcast %499 : vector<32x1xf32> to vector<32x10xf32>
    %501 = arith.subf %495, %500 : vector<32x10xf32>
    %c0_182 = arith.constant 0 : index
    %c0_183 = arith.constant 0 : index
    %502 = vector.load %arg6[%c0_182, %c0_183] : memref<32x10xf32, #tpu.memory_space<vmem>>, vector<32x10xf32>
    tpu.vector_store %arg6[%c0_182, %c0_183], %501 {strides = array<i32>} : memref<32x10xf32, #tpu.memory_space<vmem>>, vector<32x10xf32>,
    return
  }
  func.func @transform_0(%arg0: i32) -> (i32, i32) {
    %c0_i32 = arith.constant 0 : i32
    %c0_i32_0 = arith.constant 0 : i32
    return %arg0, %c0_i32 : i32, i32
  }
  func.func @transform_1(%arg0: i32) -> (i32, i32) {
    %c0_i32 = arith.constant 0 : i32
    %c0_i32_0 = arith.constant 0 : i32
    %c0_i32_1 = arith.constant 0 : i32
    return %c0_i32, %c0_i32_0 : i32, i32
  }
  func.func @transform_2(%arg0: i32) -> (i32, i32) {
    %c0_i32 = arith.constant 0 : i32
    %c0_i32_0 = arith.constant 0 : i32
    %c0_i32_1 = arith.constant 0 : i32
    return %c0_i32, %c0_i32_0 : i32, i32
  }
  func.func @transform_3(%arg0: i32) -> (i32, i32) {
    %c0_i32 = arith.constant 0 : i32
    %c0_i32_0 = arith.constant 0 : i32
    %c0_i32_1 = arith.constant 0 : i32
    return %c0_i32, %c0_i32_0 : i32, i32
  }
  func.func @transform_4(%arg0: i32) -> (i32, i32) {
    %c0_i32 = arith.constant 0 : i32
    %c0_i32_0 = arith.constant 0 : i32
    %c0_i32_1 = arith.constant 0 : i32
    return %c0_i32, %c0_i32_0 : i32, i32
  }
  func.func @transform_5(%arg0: i32) -> (i32, i32) {
    %c0_i32 = arith.constant 0 : i32
    %c0_i32_0 = arith.constant 0 : i32
    return %arg0, %c0_i32 : i32, i32
  }
}

</mosaic_0001>

<bundles_post_ra>
// kernel: tpu_custom_call.1
= control target key start
LH: loop header
LB: loop body
LE: loop exit
PB: predicated region body
PF: predicated region fallthrough
CT: control target
= control target key end

     0   :  { %vm33_vm0 = vcmask 130048   ;;  %s4413_s30 = smov 127   ;;  %s4414_s6 = smov 2   ;;  %vm3627_vm1 = vcmask 80896   ;;  %s6173_s1 = inlined_call_operand.vmem [shape: f32[16,128], index: 1, kind: input, shape index: {}]   ;;  %s6174_s0 = inlined_call_operand.vmem [shape: f32[32,16], index: 0, kind: input, shape index: {}]   ;;  %s6175_s2 = inlined_call_operand.vmem [shape: f32[1,128], index: 2, kind: input, shape index: {}]   ;;  %s6176_s3 = inlined_call_operand.vmem [shape: f32[128,10], index: 3, kind: input, shape index: {}]   ;;  %s6177_s4 = inlined_call_operand.vmem [shape: f32[1,10], index: 4, kind: input, shape index: {}]   ;;  %s6178_s5 = inlined_call_operand.vmem [shape: f32[32,10], index: 5, kind: output, shape index: {}]  }
   0x1   :  { %v24_v0 = vld [vmem:[%s6173_s1] sm:$0xff]  ;;  %v25_v1 = vld [vmem:[%s6173_s1 + $0x8] sm:$0xff]  ;;  %v22_v7 = vld [vmem:[%s6174_s0 + $0x10] sm:$0xff] }
   0x2   :  { %v20_v2 = vld [vmem:[%s6174_s0] sm:$0xff]  ;;  %v47_v3 = vand.u32 4294901760, %v24_v0  ;;  %v50_v4 = vand.u32 4294901760, %v25_v1  ;;  %v21_v6 = vld [vmem:[%s6174_s0 + $0x8] sm:$0xff]  ;;  %v23_v8 = vld [vmem:[%s6174_s0 + $0x18] sm:$0xff]  ;;  %v41_v11 = vsel %vm33_vm0, %v22_v7, 0 }
   0x3   :  { %v35_v5 = vsel %vm33_vm0, %v20_v2, 0  ;;  %v38_v10 = vsel %vm33_vm0, %v21_v6, 0  ;;  %v44_v12 = vsel %vm33_vm0, %v23_v8, 0  ;;  %v133_v18 = vand.u32 4294901760, %v41_v11  ;;  %v3684_v44 = vld [vmem:[%s6175_s2] ss:$0 sm:$0xff] }
   0x4   :  { %v4464_v9 = vand.u32 4294901760, %v35_v5  ;;  %v4130_v13 = vpack.c.bf16 %v50_v4, %v47_v3  ;;  %v123_v14 = vand.u32 4294901760, %v38_v10  ;;  %v155_v15 = vsub.f32 %v24_v0, %v47_v3  ;;  %s4415_s2 = smov 1  }
   0x5   :  { %v162_v16 = vsub.f32 %v25_v1, %v50_v4  ;;  %v143_v19 = vand.u32 4294901760, %v44_v12  ;;  %v134_v24 = vsub.f32 %v41_v11, %v133_v18 }
   0x6   :  { %v114_v17 = vsub.f32 %v35_v5, %v4464_v9  ;;  %4131 = vmatprep.subr.bf16.mxu0 %v4130_v13  ;;  %v124_v20 = vsub.f32 %v38_v10, %v123_v14  ;;  %v156_v21 = vand.u32 4294901760, %v155_v15 }
   0x7   :  { %v163_v22 = vand.u32 4294901760, %v162_v16  ;;  %4133 = vmatpush3.bf16.msra.mxu0 %v4130_v13  ;;  %v144_v25 = vsub.f32 %v44_v12, %v143_v19  ;;  %v135_v30 = vand.u32 4294901760, %v134_v24  ;;  %v4138_v40 = vpack.c.bf16 %v162_v16, %v155_v15 }
   0x8   :  { %v115_v23 = vand.u32 4294901760, %v114_v17  ;;  %v125_v26 = vand.u32 4294901760, %v124_v20  ;;  %v157_v27 = vsub.f32 %v155_v15, %v156_v21 }
   0x9   :  { %v164_v28 = vsub.f32 %v162_v16, %v163_v22  ;;  %v145_v31 = vand.u32 4294901760, %v144_v25  ;;  %v136_v36 = vsub.f32 %v134_v24, %v135_v30  ;;  %v4146_v43 = vpack.c.bf16 %v163_v22, %v156_v21 }
   0xa   :  { %v116_v29 = vsub.f32 %v114_v17, %v115_v23  ;;  %v126_v32 = vsub.f32 %v124_v20, %v125_v26  ;;  %v158_v33 = vand.u32 4294901760, %v157_v27 }
   0xb   :  { %v165_v34 = vand.u32 4294901760, %v164_v28  ;;  %v146_v37 = vsub.f32 %v144_v25, %v145_v31  ;;  %v137_v41 = vand.u32 4294901760, %v136_v36 }
   0xc   :  { %v117_v35 = vand.u32 4294901760, %v116_v29  ;;  %v127_v38 = vand.u32 4294901760, %v126_v32 }
   0xd   :  { %v4134_v39 = vpack.c.bf16 %v165_v34, %v158_v33  ;;  %v147_v42 = vand.u32 4294901760, %v146_v37 }
   0xe   :  { %3846 = vmatprep.mubr.f32.mxu0 %v117_v35 }
   0xf   :  { %3847 = vmatmul.mubr.f32.vlgmr.msra.gmra.mrb[0].mxu0 %v127_v38  ;;  %4135 = vmatprep.subr.bf16.mxu0 %v4134_v39 }
  0x10   :  { %4137 = vmatpush3.bf16.msra.mxu0 %v4134_v39  ;;  %3849 = vmatprep.mubr.f32.mxu0 %v137_v41 }
  0x11   :  { %4139 = vmatprep.subr.bf16.mxu0 %v4138_v40 }
  0x13   :  { %3850 = vmatmul.mubr.f32.gmra.mrb[2].mxu0 %v147_v42 }
  0x14   :  { %3856 = vmatprep.mubr.f32.mxu0 %v4464_v9 }
  0x17   :  { %3857 = vmatmul.mubr.f32.vlgmr.msra.gmra.mrb[0].mxu0 %v123_v14 }
  0x18   :  { %4141 = vmatpush3.bf16.msra.mxu0 %v4138_v40  ;;  %3859 = vmatprep.mubr.f32.mxu0 %v133_v18 }
  0x19   :  { %4143 = vmatprep.subr.bf16.mxu0 %v4130_v13 }
  0x1b   :  { %3860 = vmatmul.mubr.f32.gmra.mrb[2].mxu0 %v143_v19 }
  0x1c   :  { %3866 = vmatprep.mubr.f32.mxu0 %v114_v17 }
  0x1f   :  { %3867 = vmatmul.mubr.f32.vlgmr.msra.gmra.mrb[0].mxu0 %v124_v20 }
  0x20   :  { %4145 = vmatpush3.bf16.msra.mxu0 %v4130_v13  ;;  %3869 = vmatprep.mubr.f32.mxu0 %v134_v24 }
  0x21   :  { %4147 = vmatprep.subr.bf16.mxu0 %v4146_v43 }
  0x23   :  { %3870 = vmatmul.mubr.f32.gmra.mrb[2].mxu0 %v144_v25 }
  0x24   :  { %3876 = vmatprep.mubr.f32.mxu0 %v115_v23 }
  0x27   :  { %3877 = vmatmul.mubr.f32.vlgmr.msra.gmra.mrb[0].mxu0 %v125_v26 }
  0x28   :  { %4149 = vmatpush3.bf16.msra.mxu0 %v4146_v43  ;;  %3879 = vmatprep.mubr.f32.mxu0 %v135_v30 }
  0x29   :  { %4151 = vmatprep.subr.bf16.mxu0 %v4130_v13 }
  0x2b   :  { %3880 = vmatmul.mubr.f32.gmra.mrb[2].mxu0 %v145_v31 }
  0x2c   :  { %3886 = vmatprep.mubr.f32.mxu0 %v4464_v9 }
  0x2f   :  { %3887 = vmatmul.mubr.f32.vlgmr.msra.gmra.mrb[0].mxu0 %v123_v14 }
  0x30   :  { %4153 = vmatpush3.bf16.msra.mxu0 %v4130_v13  ;;  %3889 = vmatprep.mubr.f32.mxu0 %v133_v18 }
  0x33   :  { %3890 = vmatmul.mubr.f32.gmra.mrb[2].mxu0 %v143_v19 }
  0x34   :  { %3896 = vmatprep.mubr.f32.mxu0 %v4464_v9 }
  0x37   :  { %3897 = vmatmul.mubr.f32.vlgmr.msra.gmra.mrb[0].mxu0 %v123_v14 }
  0x38   :  { %3899 = vmatprep.mubr.f32.mxu0 %v133_v18 }
  0x3b   :  { %3900 = vmatmul.mubr.f32.gmra.mrb[2].mxu0 %v143_v19 }
 0x10a   :  { %v3898_v45 = vpop.f32.mrb[0].mxu0 }
 0x10b   :  { %v4473_v46 = vadd.f32 %v3898_v45, %v3684_v44  ;;  %v612_v47 = vpop.f32.mrb[1].mxu0 }
 0x10c   :  { %v4475_v48 = vadd.f32 %v3684_v44, %v612_v47 }
 0x10d   :  { %636 = vrot.lane.b32.xlu1 %v4473_v46, %s4413_s30 }
 0x10e   :  { %v3901_v49 = vpop.f32.mrb[2].mxu0  ;;  %634 = vrot.lane.b32.xlu0 %v4475_v48, %s4413_s30 }
 0x10f   :  { %v624_v50 = vpop.f32.mrb[3].mxu0  ;;  %v4489_v51 = vadd.f32 %v3901_v49, %v3684_v44 }
 0x110   :  { %v4495_v52 = vadd.f32 %v3684_v44, %v624_v50 }
 0x111   :  { %644 = vrot.lane.b32.xlu1 %v4473_v46, %s4414_s6 }
 0x112   :  { %642 = vrot.lane.b32.xlu0 %v4475_v48, %s4414_s6 }
 0x115   :  { %652 = vrot.lane.b32.xlu1 %v4473_v46, %s4415_s2 }
 0x116   :  { %650 = vrot.lane.b32.xlu0 %v4475_v48, %s4415_s2 }
 0x119   :  { %648 = vrot.lane.b32.xlu1 %v4489_v51, %s4414_s6 }
 0x11a   :  { %640 = vrot.lane.b32.xlu0 %v4489_v51, %s4413_s30 }
 0x11d   :  { %646 = vrot.lane.b32.xlu1 %v4495_v52, %s4414_s6 }
 0x11e   :  { %638 = vrot.lane.b32.xlu0 %v4495_v52, %s4413_s30 }
 0x121   :  { %656 = vrot.lane.b32.xlu1 %v4489_v51, %s4415_s2 }
 0x122   :  { %654 = vrot.lane.b32.xlu0 %v4495_v52, %s4415_s2 }
 0x17f   :  { %v637_v53 = vpop.permute.xlu1 %636 }
 0x180   :  { %v635_v54 = vpop.permute.xlu0 %634 }
 0x183   :  { %v645_v55 = vpop.permute.xlu1 %644 }
 0x184   :  { %v643_v56 = vpop.permute.xlu0 %642  ;;  %v659_v57 = vsub.f32 %v637_v53, %v645_v55 }
 0x185   :  { %v658_v58 = vsub.f32 %v635_v54, %v643_v56 }
 0x187   :  { %v653_v59 = vpop.permute.xlu1 %652 }
 0x188   :  { %v663_v60 = vmul.f32 %v659_v57, %v653_v59  ;;  %v651_v61 = vpop.permute.xlu0 %650 }
 0x189   :  { %v662_v62 = vmul.f32 %v658_v58, %v651_v61 }
 0x18a   :  { %v667_v63 = vsub.f32 %v663_v60, %v4473_v46 }
 0x18b   :  { %v666_v0 = vsub.f32 %v662_v62, %v4475_v48  ;;  %v649_v1 = vpop.permute.xlu1 %648 }
 0x18c   :  { %v4507_v2 = vadd.f32 8.0, %v667_v63  ;;  %v641_v3 = vpop.permute.xlu0 %640 }
 0x18d   :  { %v4509_v4 = vadd.f32 8.0, %v666_v0  ;;  %v661_v10 = vsub.f32 %v641_v3, %v649_v1 }
 0x18e   :  { %v675_v5 = vmul.f32 0.0033333334, %v4507_v2 }
 0x18f   :  { %v647_v6 = vpop.permute.xlu1 %646  ;;  %v4513_v7 = vmul.f32 0.0033333334, %v4509_v4 }
 0x190   :  { %v639_v8 = vpop.permute.xlu0 %638  ;;  %v679_v9 = vadd.f32 %v4473_v46, %v675_v5 }
 0x191   :  { %v660_v11 = vsub.f32 %v639_v8, %v647_v6  ;;  %v678_v15 = vadd.f32 %v4475_v48, %v4513_v7 }
 0x192   :  { %692 = vrot.lane.b32.xlu1 %v679_v9, %s4414_s6  ;;  %684 = vrot.lane.b32.xlu0 %v679_v9, %s4413_s30 }
 0x193   :  { %v657_v12 = vpop.permute.xlu1 %656 }
 0x194   :  { %v665_v13 = vmul.f32 %v661_v10, %v657_v12  ;;  %v655_v14 = vpop.permute.xlu0 %654 }
 0x195   :  { %v664_v16 = vmul.f32 %v660_v11, %v655_v14 }
 0x196   :  { %v669_v17 = vsub.f32 %v665_v13, %v4489_v51  ;;  %690 = vrot.lane.b32.xlu1 %v678_v15, %s4414_s6  ;;  %682 = vrot.lane.b32.xlu0 %v678_v15, %s4413_s30 }
 0x197   :  { %v668_v18 = vsub.f32 %v664_v16, %v4495_v52 }
 0x198   :  { %v4524_v19 = vadd.f32 8.0, %v669_v17 }
 0x199   :  { %v4526_v20 = vadd.f32 8.0, %v668_v18 }
 0x19a   :  { %v677_v21 = vmul.f32 0.0033333334, %v4524_v19  ;;  %700 = vrot.lane.b32.xlu1 %v679_v9, %s4415_s2  ;;  %698 = vrot.lane.b32.xlu0 %v678_v15, %s4415_s2 }
 0x19b   :  { %v676_v22 = vmul.f32 0.0033333334, %v4526_v20 }
 0x19c   :  { %v681_v23 = vadd.f32 %v4489_v51, %v677_v21 }
 0x19d   :  { %v680_v24 = vadd.f32 %v4495_v52, %v676_v22 }
 0x19e   :  { %696 = vrot.lane.b32.xlu1 %v681_v23, %s4414_s6  ;;  %688 = vrot.lane.b32.xlu0 %v681_v23, %s4413_s30 }
 0x1a2   :  { %694 = vrot.lane.b32.xlu1 %v680_v24, %s4414_s6  ;;  %686 = vrot.lane.b32.xlu0 %v680_v24, %s4413_s30 }
 0x1a6   :  { %704 = vrot.lane.b32.xlu1 %v681_v23, %s4415_s2  ;;  %702 = vrot.lane.b32.xlu0 %v680_v24, %s4415_s2 }
 0x204   :  { %v693_v25 = vpop.permute.xlu1 %692  ;;  %v685_v26 = vpop.permute.xlu0 %684 }
 0x205   :  { %v707_v29 = vsub.f32 %v685_v26, %v693_v25 }
 0x208   :  { %v691_v27 = vpop.permute.xlu1 %690  ;;  %v683_v28 = vpop.permute.xlu0 %682 }
 0x209   :  { %v706_v30 = vsub.f32 %v683_v28, %v691_v27 }
 0x20c   :  { %v701_v31 = vpop.permute.xlu1 %700  ;;  %v699_v32 = vpop.permute.xlu0 %698 }
 0x20d   :  { %v711_v33 = vmul.f32 %v707_v29, %v701_v31  ;;  %v710_v34 = vmul.f32 %v706_v30, %v699_v32 }
 0x20f   :  { %v715_v35 = vsub.f32 %v711_v33, %v679_v9  ;;  %v714_v36 = vsub.f32 %v710_v34, %v678_v15 }
 0x210   :  { %v697_v37 = vpop.permute.xlu1 %696  ;;  %v689_v38 = vpop.permute.xlu0 %688 }
 0x211   :  { %v4540_v39 = vadd.f32 8.0, %v715_v35  ;;  %v4542_v40 = vadd.f32 8.0, %v714_v36  ;;  %v709_v47 = vsub.f32 %v689_v38, %v697_v37 }
 0x213   :  { %v723_v41 = vmul.f32 0.01, %v4540_v39  ;;  %v722_v42 = vmul.f32 0.01, %v4542_v40  ;;  %v774_v25 = vsub.f32 %v4509_v4, %v4542_v40 }
 0x214   :  { %v695_v43 = vpop.permute.xlu1 %694  ;;  %v687_v44 = vpop.permute.xlu0 %686 }
 0x215   :  { %v727_v45 = vsub.f32 %v723_v41, %v675_v5  ;;  %v708_v49 = vsub.f32 %v687_v44, %v695_v43  ;;  %v726_v53 = vsub.f32 %v722_v42, %v4513_v7 }
 0x217   :  { %v731_v50 = vadd.f32 %v4473_v46, %v727_v45  ;;  %v730_v60 = vadd.f32 %v4475_v48, %v726_v53 }
 0x218   :  { %v705_v54 = vpop.permute.xlu1 %704  ;;  %v703_v55 = vpop.permute.xlu0 %702 }
 0x219   :  { %v713_v56 = vmul.f32 %v709_v47, %v705_v54  ;;  %v712_v57 = vmul.f32 %v708_v49, %v703_v55  ;;  %744 = vrot.lane.b32.xlu1 %v731_v50, %s4414_s6  ;;  %736 = vrot.lane.b32.xlu0 %v731_v50, %s4413_s30 }
 0x21b   :  { %v717_v58 = vsub.f32 %v713_v56, %v681_v23  ;;  %v716_v59 = vsub.f32 %v712_v57, %v680_v24  ;;  %v775_v23 = vsub.f32 %v4507_v2, %v4540_v39 }
 0x21d   :  { %v4551_v61 = vadd.f32 8.0, %v717_v58  ;;  %v4553_v62 = vadd.f32 8.0, %v716_v59  ;;  %742 = vrot.lane.b32.xlu1 %v730_v60, %s4414_s6  ;;  %734 = vrot.lane.b32.xlu0 %v730_v60, %s4413_s30 }
 0x21f   :  { %v725_v63 = vmul.f32 0.01, %v4551_v61  ;;  %v724_v0 = vmul.f32 0.01, %v4553_v62  ;;  %v777_v45 = vsub.f32 %v4524_v19, %v4551_v61  ;;  %v776_v49 = vsub.f32 %v4526_v20, %v4553_v62 }
 0x221   :  { %752 = vrot.lane.b32.xlu1 %v731_v50, %s4415_s2  ;;  %750 = vrot.lane.b32.xlu0 %v730_v60, %s4415_s2  ;;  %v729_v1 = vsub.f32 %v725_v63, %v677_v21  ;;  %v728_v5 = vsub.f32 %v724_v0, %v676_v22 }
 0x223   :  { %v733_v3 = vadd.f32 %v4489_v51, %v729_v1  ;;  %v732_v6 = vadd.f32 %v4495_v52, %v728_v5 }
 0x225   :  { %748 = vrot.lane.b32.xlu1 %v733_v3, %s4414_s6  ;;  %740 = vrot.lane.b32.xlu0 %v733_v3, %s4413_s30 }
 0x229   :  { %746 = vrot.lane.b32.xlu1 %v732_v6, %s4414_s6  ;;  %738 = vrot.lane.b32.xlu0 %v732_v6, %s4413_s30 }
 0x22d   :  { %756 = vrot.lane.b32.xlu1 %v733_v3, %s4415_s2  ;;  %754 = vrot.lane.b32.xlu0 %v732_v6, %s4415_s2 }
 0x28b   :  { %v745_v7 = vpop.permute.xlu1 %744  ;;  %v737_v8 = vpop.permute.xlu0 %736 }
 0x28c   :  { %v759_v11 = vsub.f32 %v737_v8, %v745_v7 }
 0x28f   :  { %v743_v9 = vpop.permute.xlu1 %742  ;;  %v735_v10 = vpop.permute.xlu0 %734 }
 0x290   :  { %v758_v12 = vsub.f32 %v735_v10, %v743_v9 }
 0x293   :  { %v753_v13 = vpop.permute.xlu1 %752  ;;  %v751_v14 = vpop.permute.xlu0 %750 }
 0x294   :  { %v763_v15 = vmul.f32 %v759_v11, %v753_v13  ;;  %v762_v16 = vmul.f32 %v758_v12, %v751_v14 }
 0x296   :  { %v767_v17 = vsub.f32 %v763_v15, %v731_v50  ;;  %v766_v18 = vsub.f32 %v762_v16, %v730_v60 }
 0x297   :  { %v749_v21 = vpop.permute.xlu1 %748  ;;  %v741_v22 = vpop.permute.xlu0 %740 }
 0x298   :  { %v771_v24 = vadd.f32 8.0, %v767_v17  ;;  %v770_v26 = vadd.f32 8.0, %v766_v18  ;;  %v761_v33 = vsub.f32 %v741_v22, %v749_v21 }
 0x29a   :  { %v779_v27 = vadd.f32 %v775_v23, %v771_v24  ;;  %v778_v28 = vadd.f32 %v774_v25, %v770_v26  ;;  %v831_v1 = vadd.f32 %v771_v24, %v4540_v39 }
 0x29b   :  { %v747_v29 = vpop.permute.xlu1 %746  ;;  %v739_v30 = vpop.permute.xlu0 %738 }
 0x29c   :  { %v783_v31 = vmul.f32 0.01, %v779_v27  ;;  %v782_v32 = vmul.f32 0.01, %v778_v28  ;;  %v760_v34 = vsub.f32 %v739_v30, %v747_v29  ;;  %v835_v9 = vmul.f32 3.0, %v831_v1 }
 0x29e   :  { %v787_v35 = vadd.f32 %v4473_v46, %v783_v31  ;;  %v786_v44 = vadd.f32 %v4475_v48, %v782_v32  ;;  %v839_v17 = vadd.f32 %v835_v9, %v4507_v2 }
 0x29f   :  { %v757_v36 = vpop.permute.xlu1 %756  ;;  %v755_v37 = vpop.permute.xlu0 %754 }
 0x2a0   :  { %v765_v38 = vmul.f32 %v761_v33, %v757_v36  ;;  %v764_v41 = vmul.f32 %v760_v34, %v755_v37  ;;  %800 = vrot.lane.b32.xlu1 %v787_v35, %s4414_s6  ;;  %792 = vrot.lane.b32.xlu0 %v787_v35, %s4413_s30 }
 0x2a2   :  { %v769_v42 = vsub.f32 %v765_v38, %v733_v3  ;;  %v768_v43 = vsub.f32 %v764_v41, %v732_v6  ;;  %v830_v3 = vadd.f32 %v770_v26, %v4542_v40 }
 0x2a4   :  { %v773_v47 = vadd.f32 8.0, %v769_v42  ;;  %v772_v50 = vadd.f32 8.0, %v768_v43  ;;  %798 = vrot.lane.b32.xlu1 %v786_v44, %s4414_s6  ;;  %790 = vrot.lane.b32.xlu0 %v786_v44, %s4413_s30  ;;  %v834_v10 = vmul.f32 3.0, %v830_v3 }
 0x2a6   :  { %v781_v53 = vadd.f32 %v777_v45, %v773_v47  ;;  %v780_v54 = vadd.f32 %v776_v49, %v772_v50  ;;  %v838_v21 = vadd.f32 %v834_v10, %v4509_v4  ;;  %v833_v25 = vadd.f32 %v773_v47, %v4551_v61 }
 0x2a7   :  { %v832_v26 = vadd.f32 %v772_v50, %v4553_v62 }
 0x2a8   :  { %v785_v55 = vmul.f32 0.01, %v781_v53  ;;  %808 = vrot.lane.b32.xlu1 %v787_v35, %s4415_s2  ;;  %806 = vrot.lane.b32.xlu0 %v786_v44, %s4415_s2  ;;  %v784_v56 = vmul.f32 0.01, %v780_v54  ;;  %v837_v33 = vmul.f32 3.0, %v833_v25 }
 0x2a9   :  { %v836_v4 = vmul.f32 3.0, %v832_v26 }
 0x2aa   :  { %v789_v57 = vadd.f32 %v4489_v51, %v785_v55  ;;  %v788_v58 = vadd.f32 %v4495_v52, %v784_v56  ;;  %v841_v36 = vadd.f32 %v837_v33, %v4524_v19 }
 0x2ab   :  { %v840_v38 = vadd.f32 %v836_v4, %v4526_v20 }
 0x2ac   :  { %804 = vrot.lane.b32.xlu1 %v789_v57, %s4414_s6  ;;  %796 = vrot.lane.b32.xlu0 %v789_v57, %s4413_s30 }
 0x2b0   :  { %802 = vrot.lane.b32.xlu1 %v788_v58, %s4414_s6  ;;  %794 = vrot.lane.b32.xlu0 %v788_v58, %s4413_s30 }
 0x2b4   :  { %812 = vrot.lane.b32.xlu1 %v789_v57, %s4415_s2  ;;  %810 = vrot.lane.b32.xlu0 %v788_v58, %s4415_s2 }
 0x312   :  { %v801_v59 = vpop.permute.xlu1 %800  ;;  %v793_v60 = vpop.permute.xlu0 %792 }
 0x313   :  { %v815_v5 = vsub.f32 %v793_v60, %v801_v59 }
 0x316   :  { %v799_v63 = vpop.permute.xlu1 %798  ;;  %v791_v0 = vpop.permute.xlu0 %790 }
 0x317   :  { %v814_v6 = vsub.f32 %v791_v0, %v799_v63 }
 0x31a   :  { %v809_v7 = vpop.permute.xlu1 %808  ;;  %v807_v8 = vpop.permute.xlu0 %806 }
 0x31b   :  { %v819_v11 = vmul.f32 %v815_v5, %v809_v7  ;;  %v818_v12 = vmul.f32 %v814_v6, %v807_v8 }
 0x31d   :  { %v823_v13 = vsub.f32 %v819_v11, %v787_v35  ;;  %v822_v14 = vsub.f32 %v818_v12, %v786_v44 }
 0x31e   :  { %v805_v15 = vpop.permute.xlu1 %804  ;;  %v797_v16 = vpop.permute.xlu0 %796 }
 0x31f   :  { %v827_v18 = vadd.f32 8.0, %v823_v13  ;;  %v826_v39 = vadd.f32 8.0, %v822_v14  ;;  %v817_v30 = vsub.f32 %v797_v16, %v805_v15 }
 0x321   :  { %v843_v22 = vadd.f32 %v839_v17, %v827_v18  ;;  %v842_v40 = vadd.f32 %v838_v21, %v826_v39 }
 0x322   :  { %v803_v23 = vpop.permute.xlu1 %802  ;;  %v795_v24 = vpop.permute.xlu0 %794 }
 0x323   :  { %v847_v27 = vmul.f32 0.00125, %v843_v22  ;;  %v846_v29 = vmul.f32 0.00125, %v842_v40  ;;  %v816_v31 = vsub.f32 %v795_v24, %v803_v23 }
 0x325   :  { %v4600_v28 = vadd.f32 %v4473_v46, %v847_v27  ;;  %v4607_v61 = vadd.f32 %v4475_v48, %v846_v29 }
 0x326   :  { %v813_v2 = vpop.permute.xlu1 %812  ;;  %v811_v32 = vpop.permute.xlu0 %810 }
 0x327   :  { %v821_v34 = vmul.f32 %v817_v30, %v813_v2  ;;  %v820_v35 = vmul.f32 %v816_v31, %v811_v32  ;;  %864 = vrot.lane.b32.xlu1 %v4600_v28, %s4414_s6  ;;  %856 = vrot.lane.b32.xlu0 %v4600_v28, %s4413_s30 }
 0x329   :  { %v825_v46 = vsub.f32 %v821_v34, %v789_v57  ;;  %v824_v62 = vsub.f32 %v820_v35, %v788_v58 }
 0x32b   :  { %v829_v37 = vadd.f32 8.0, %v825_v46  ;;  %v828_v41 = vadd.f32 8.0, %v824_v62  ;;  %862 = vrot.lane.b32.xlu1 %v4607_v61, %s4414_s6  ;;  %854 = vrot.lane.b32.xlu0 %v4607_v61, %s4413_s30 }
 0x32d   :  { %v845_v42 = vadd.f32 %v841_v36, %v829_v37  ;;  %v844_v43 = vadd.f32 %v840_v38, %v828_v41 }
 0x32f   :  { %v849_v44 = vmul.f32 0.00125, %v845_v42  ;;  %872 = vrot.lane.b32.xlu1 %v4600_v28, %s4415_s2  ;;  %870 = vrot.lane.b32.xlu0 %v4607_v61, %s4415_s2  ;;  %v848_v19 = vmul.f32 0.00125, %v844_v43 }
 0x331   :  { %v4620_v48 = vadd.f32 %v4489_v51, %v849_v44  ;;  %v4627_v20 = vadd.f32 %v4495_v52, %v848_v19 }
 0x333   :  { %868 = vrot.lane.b32.xlu1 %v4620_v48, %s4414_s6  ;;  %860 = vrot.lane.b32.xlu0 %v4620_v48, %s4413_s30 }
 0x337   :  { %866 = vrot.lane.b32.xlu1 %v4627_v20, %s4414_s6  ;;  %858 = vrot.lane.b32.xlu0 %v4627_v20, %s4413_s30 }
 0x33b   :  { %876 = vrot.lane.b32.xlu1 %v4620_v48, %s4415_s2  ;;  %874 = vrot.lane.b32.xlu0 %v4627_v20, %s4415_s2 }
 0x399   :  { %v865_v51 = vpop.permute.xlu1 %864  ;;  %v857_v45 = vpop.permute.xlu0 %856 }
 0x39a   :  { %v879_v50 = vsub.f32 %v857_v45, %v865_v51 }
 0x39d   :  { %v863_v47 = vpop.permute.xlu1 %862  ;;  %v855_v49 = vpop.permute.xlu0 %854 }
 0x39e   :  { %v878_v53 = vsub.f32 %v855_v49, %v863_v47 }
 0x3a1   :  { %v873_v52 = vpop.permute.xlu1 %872  ;;  %v871_v54 = vpop.permute.xlu0 %870 }
 0x3a2   :  { %v883_v55 = vmul.f32 %v879_v50, %v873_v52  ;;  %v882_v56 = vmul.f32 %v878_v53, %v871_v54 }
 0x3a4   :  { %v887_v57 = vsub.f32 %v883_v55, %v4600_v28  ;;  %v886_v58 = vsub.f32 %v882_v56, %v4607_v61 }
 0x3a5   :  { %v869_v59 = vpop.permute.xlu1 %868  ;;  %v861_v60 = vpop.permute.xlu0 %860 }
 0x3a6   :  { %v4639_v63 = vadd.f32 8.0, %v887_v57  ;;  %v4641_v0 = vadd.f32 8.0, %v886_v58  ;;  %v881_v8 = vsub.f32 %v861_v60, %v869_v59 }
 0x3a8   :  { %v895_v1 = vmul.f32 0.0033333334, %v4639_v63  ;;  %v4645_v6 = vmul.f32 0.0033333334, %v4641_v0 }
 0x3a9   :  { %v867_v3 = vpop.permute.xlu1 %866  ;;  %v859_v5 = vpop.permute.xlu0 %858 }
 0x3aa   :  { %v899_v7 = vadd.f32 %v895_v1, %v4600_v28  ;;  %v880_v9 = vsub.f32 %v859_v5, %v867_v3  ;;  %v898_v14 = vadd.f32 %v4645_v6, %v4607_v61 }
 0x3ac   :  { %912 = vrot.lane.b32.xlu1 %v899_v7, %s4414_s6  ;;  %904 = vrot.lane.b32.xlu0 %v899_v7, %s4413_s30 }
 0x3ad   :  { %v877_v10 = vpop.permute.xlu1 %876  ;;  %v875_v11 = vpop.permute.xlu0 %874 }
 0x3ae   :  { %v885_v12 = vmul.f32 %v881_v8, %v877_v10  ;;  %v884_v13 = vmul.f32 %v880_v9, %v875_v11 }
 0x3b0   :  { %v889_v15 = vsub.f32 %v885_v12, %v4620_v48  ;;  %v888_v16 = vsub.f32 %v884_v13, %v4627_v20  ;;  %910 = vrot.lane.b32.xlu1 %v898_v14, %s4414_s6  ;;  %902 = vrot.lane.b32.xlu0 %v898_v14, %s4413_s30 }
 0x3b2   :  { %v4656_v17 = vadd.f32 8.0, %v889_v15  ;;  %v4658_v18 = vadd.f32 8.0, %v888_v16 }
 0x3b4   :  { %v897_v21 = vmul.f32 0.0033333334, %v4656_v17  ;;  %920 = vrot.lane.b32.xlu1 %v899_v7, %s4415_s2  ;;  %918 = vrot.lane.b32.xlu0 %v898_v14, %s4415_s2  ;;  %v896_v39 = vmul.f32 0.0033333334, %v4658_v18 }
 0x3b6   :  { %v901_v22 = vadd.f32 %v897_v21, %v4620_v48  ;;  %v900_v40 = vadd.f32 %v896_v39, %v4627_v20 }
 0x3b8   :  { %916 = vrot.lane.b32.xlu1 %v901_v22, %s4414_s6  ;;  %908 = vrot.lane.b32.xlu0 %v901_v22, %s4413_s30 }
 0x3bc   :  { %914 = vrot.lane.b32.xlu1 %v900_v40, %s4414_s6  ;;  %906 = vrot.lane.b32.xlu0 %v900_v40, %s4413_s30 }
 0x3c0   :  { %924 = vrot.lane.b32.xlu1 %v901_v22, %s4415_s2  ;;  %922 = vrot.lane.b32.xlu0 %v900_v40, %s4415_s2 }
 0x41e   :  { %v913_v23 = vpop.permute.xlu1 %912  ;;  %v905_v24 = vpop.permute.xlu0 %904 }
 0x41f   :  { %v927_v27 = vsub.f32 %v905_v24, %v913_v23 }
 0x422   :  { %v911_v25 = vpop.permute.xlu1 %910  ;;  %v903_v26 = vpop.permute.xlu0 %902 }
 0x423   :  { %v926_v29 = vsub.f32 %v903_v26, %v911_v25 }
 0x426   :  { %v921_v30 = vpop.permute.xlu1 %920  ;;  %v919_v31 = vpop.permute.xlu0 %918 }
 0x427   :  { %v931_v2 = vmul.f32 %v927_v27, %v921_v30  ;;  %v930_v32 = vmul.f32 %v926_v29, %v919_v31 }
 0x429   :  { %v935_v33 = vsub.f32 %v931_v2, %v899_v7  ;;  %v934_v4 = vsub.f32 %v930_v32, %v898_v14 }
 0x42a   :  { %v917_v34 = vpop.permute.xlu1 %916  ;;  %v909_v35 = vpop.permute.xlu0 %908 }
 0x42b   :  { %v4672_v46 = vadd.f32 8.0, %v935_v33  ;;  %v4674_v62 = vadd.f32 8.0, %v934_v4  ;;  %v929_v43 = vsub.f32 %v909_v35, %v917_v34 }
 0x42d   :  { %v943_v36 = vmul.f32 0.01, %v4672_v46  ;;  %v942_v37 = vmul.f32 0.01, %v4674_v62  ;;  %v994_v23 = vsub.f32 %v4641_v0, %v4674_v62 }
 0x42e   :  { %v915_v38 = vpop.permute.xlu1 %914  ;;  %v907_v41 = vpop.permute.xlu0 %906 }
 0x42f   :  { %v947_v42 = vsub.f32 %v943_v36, %v895_v1  ;;  %v928_v44 = vsub.f32 %v907_v41, %v915_v38  ;;  %v946_v51 = vsub.f32 %v942_v37, %v4645_v6 }
 0x431   :  { %v951_v19 = vadd.f32 %v947_v42, %v4600_v28  ;;  %v950_v54 = vadd.f32 %v946_v51, %v4607_v61 }
 0x432   :  { %v925_v45 = vpop.permute.xlu1 %924  ;;  %v923_v47 = vpop.permute.xlu0 %922 }
 0x433   :  { %v933_v49 = vmul.f32 %v929_v43, %v925_v45  ;;  %v932_v50 = vmul.f32 %v928_v44, %v923_v47  ;;  %964 = vrot.lane.b32.xlu1 %v951_v19, %s4414_s6  ;;  %956 = vrot.lane.b32.xlu0 %v951_v19, %s4413_s30 }
 0x435   :  { %v937_v53 = vsub.f32 %v933_v49, %v901_v22  ;;  %v936_v52 = vsub.f32 %v932_v50, %v900_v40  ;;  %v995_v22 = vsub.f32 %v4639_v63, %v4672_v46 }
 0x437   :  { %v4683_v55 = vadd.f32 8.0, %v937_v53  ;;  %v4685_v56 = vadd.f32 8.0, %v936_v52  ;;  %962 = vrot.lane.b32.xlu1 %v950_v54, %s4414_s6  ;;  %954 = vrot.lane.b32.xlu0 %v950_v54, %s4413_s30 }
 0x439   :  { %v945_v57 = vmul.f32 0.01, %v4683_v55  ;;  %v944_v58 = vmul.f32 0.01, %v4685_v56  ;;  %v997_v42 = vsub.f32 %v4656_v17, %v4683_v55  ;;  %v996_v44 = vsub.f32 %v4658_v18, %v4685_v56 }
 0x43b   :  { %972 = vrot.lane.b32.xlu1 %v951_v19, %s4415_s2  ;;  %970 = vrot.lane.b32.xlu0 %v950_v54, %s4415_s2  ;;  %v949_v59 = vsub.f32 %v945_v57, %v897_v21  ;;  %v948_v1 = vsub.f32 %v944_v58, %v896_v39 }
 0x43d   :  { %v953_v60 = vadd.f32 %v949_v59, %v4620_v48  ;;  %v952_v3 = vadd.f32 %v948_v1, %v4627_v20 }
 0x43f   :  { %968 = vrot.lane.b32.xlu1 %v953_v60, %s4414_s6  ;;  %960 = vrot.lane.b32.xlu0 %v953_v60, %s4413_s30 }
 0x443   :  { %966 = vrot.lane.b32.xlu1 %v952_v3, %s4414_s6  ;;  %958 = vrot.lane.b32.xlu0 %v952_v3, %s4413_s30 }
 0x447   :  { %976 = vrot.lane.b32.xlu1 %v953_v60, %s4415_s2  ;;  %974 = vrot.lane.b32.xlu0 %v952_v3, %s4415_s2 }
 0x4a5   :  { %v965_v5 = vpop.permute.xlu1 %964  ;;  %v957_v6 = vpop.permute.xlu0 %956 }
 0x4a6   :  { %v979_v9 = vsub.f32 %v957_v6, %v965_v5 }
 0x4a9   :  { %v963_v7 = vpop.permute.xlu1 %962  ;;  %v955_v8 = vpop.permute.xlu0 %954 }
 0x4aa   :  { %v978_v10 = vsub.f32 %v955_v8, %v963_v7 }
 0x4ad   :  { %v973_v11 = vpop.permute.xlu1 %972  ;;  %v971_v12 = vpop.permute.xlu0 %970 }
 0x4ae   :  { %v983_v13 = vmul.f32 %v979_v9, %v973_v11  ;;  %v982_v14 = vmul.f32 %v978_v10, %v971_v12 }
 0x4b0   :  { %v987_v15 = vsub.f32 %v983_v13, %v951_v19  ;;  %v986_v16 = vsub.f32 %v982_v14, %v950_v54 }
 0x4b1   :  { %v969_v21 = vpop.permute.xlu1 %968  ;;  %v961_v39 = vpop.permute.xlu0 %960 }
 0x4b2   :  { %v991_v40 = vadd.f32 8.0, %v987_v15  ;;  %v990_v24 = vadd.f32 8.0, %v986_v16  ;;  %v981_v2 = vsub.f32 %v961_v39, %v969_v21 }
 0x4b4   :  { %v999_v25 = vadd.f32 %v995_v22, %v991_v40  ;;  %v998_v26 = vadd.f32 %v994_v23, %v990_v24  ;;  %v1051_v59 = vadd.f32 %v991_v40, %v4672_v46 }
 0x4b5   :  { %v967_v27 = vpop.permute.xlu1 %966  ;;  %v959_v29 = vpop.permute.xlu0 %958 }
 0x4b6   :  { %v1003_v30 = vmul.f32 0.01, %v999_v25  ;;  %v1002_v31 = vmul.f32 0.01, %v998_v26  ;;  %v980_v32 = vsub.f32 %v959_v29, %v967_v27  ;;  %v1055_v7 = vmul.f32 3.0, %v1051_v59 }
 0x4b8   :  { %v1007_v33 = vadd.f32 %v1003_v30, %v4600_v28  ;;  %v1006_v41 = vadd.f32 %v1002_v31, %v4607_v61  ;;  %v1059_v15 = vadd.f32 %v1055_v7, %v4639_v63 }
 0x4b9   :  { %v977_v4 = vpop.permute.xlu1 %976  ;;  %v975_v34 = vpop.permute.xlu0 %974 }
 0x4ba   :  { %v985_v35 = vmul.f32 %v981_v2, %v977_v4  ;;  %v984_v36 = vmul.f32 %v980_v32, %v975_v34  ;;  %1020 = vrot.lane.b32.xlu1 %v1007_v33, %s4414_s6  ;;  %1012 = vrot.lane.b32.xlu0 %v1007_v33, %s4413_s30 }
 0x4bc   :  { %v989_v37 = vsub.f32 %v985_v35, %v953_v60  ;;  %v988_v38 = vsub.f32 %v984_v36, %v952_v3  ;;  %v1050_v60 = vadd.f32 %v990_v24, %v4674_v62 }
 0x4be   :  { %v993_v43 = vadd.f32 8.0, %v989_v37  ;;  %v992_v19 = vadd.f32 8.0, %v988_v38  ;;  %1018 = vrot.lane.b32.xlu1 %v1006_v41, %s4414_s6  ;;  %1010 = vrot.lane.b32.xlu0 %v1006_v41, %s4413_s30  ;;  %v1054_v8 = vmul.f32 3.0, %v1050_v60 }
 0x4c0   :  { %v1001_v51 = vadd.f32 %v997_v42, %v993_v43  ;;  %v1000_v45 = vadd.f32 %v996_v44, %v992_v19  ;;  %v1058_v21 = vadd.f32 %v1054_v8, %v4641_v0  ;;  %v1053_v23 = vadd.f32 %v993_v43, %v4683_v55 }
 0x4c1   :  { %v1052_v24 = vadd.f32 %v992_v19, %v4685_v56 }
 0x4c2   :  { %v1005_v47 = vmul.f32 0.01, %v1001_v51  ;;  %1028 = vrot.lane.b32.xlu1 %v1007_v33, %s4415_s2  ;;  %1026 = vrot.lane.b32.xlu0 %v1006_v41, %s4415_s2  ;;  %v1004_v49 = vmul.f32 0.01, %v1000_v45  ;;  %v1057_v2 = vmul.f32 3.0, %v1053_v23 }
 0x4c3   :  { %v1056_v0 = vmul.f32 3.0, %v1052_v24 }
 0x4c4   :  { %v1009_v50 = vadd.f32 %v1005_v47, %v4620_v48  ;;  %v1008_v53 = vadd.f32 %v1004_v49, %v4627_v20  ;;  %v1061_v4 = vadd.f32 %v1057_v2, %v4656_v17 }
 0x4c5   :  { %v1060_v35 = vadd.f32 %v1056_v0, %v4658_v18 }
 0x4c6   :  { %1024 = vrot.lane.b32.xlu1 %v1009_v50, %s4414_s6  ;;  %1016 = vrot.lane.b32.xlu0 %v1009_v50, %s4413_s30 }
 0x4ca   :  { %1022 = vrot.lane.b32.xlu1 %v1008_v53, %s4414_s6  ;;  %1014 = vrot.lane.b32.xlu0 %v1008_v53, %s4413_s30 }
 0x4ce   :  { %1032 = vrot.lane.b32.xlu1 %v1009_v50, %s4415_s2  ;;  %1030 = vrot.lane.b32.xlu0 %v1008_v53, %s4415_s2 }
 0x52c   :  { %v1021_v52 = vpop.permute.xlu1 %1020  ;;  %v1013_v54 = vpop.permute.xlu0 %1012 }
 0x52d   :  { %v1035_v1 = vsub.f32 %v1013_v54, %v1021_v52 }
 0x530   :  { %v1019_v57 = vpop.permute.xlu1 %1018  ;;  %v1011_v58 = vpop.permute.xlu0 %1010 }
 0x531   :  { %v1034_v3 = vsub.f32 %v1011_v58, %v1019_v57 }
 0x534   :  { %v1029_v5 = vpop.permute.xlu1 %1028  ;;  %v1027_v6 = vpop.permute.xlu0 %1026 }
 0x535   :  { %v1039_v9 = vmul.f32 %v1035_v1, %v1029_v5  ;;  %v1038_v10 = vmul.f32 %v1034_v3, %v1027_v6 }
 0x537   :  { %v1043_v11 = vsub.f32 %v1039_v9, %v1007_v33  ;;  %v1042_v12 = vsub.f32 %v1038_v10, %v1006_v41 }
 0x538   :  { %v1025_v13 = vpop.permute.xlu1 %1024  ;;  %v1017_v14 = vpop.permute.xlu0 %1016 }
 0x539   :  { %v1047_v16 = vadd.f32 8.0, %v1043_v11  ;;  %v1046_v46 = vadd.f32 8.0, %v1042_v12  ;;  %v1037_v29 = vsub.f32 %v1017_v14, %v1025_v13 }
 0x53b   :  { %v1063_v39 = vadd.f32 %v1059_v15, %v1047_v16  ;;  %v1062_v62 = vadd.f32 %v1058_v21, %v1046_v46 }
 0x53c   :  { %v1023_v22 = vpop.permute.xlu1 %1022  ;;  %v1015_v40 = vpop.permute.xlu0 %1014 }
 0x53d   :  { %v1067_v25 = vmul.f32 0.00125, %v1063_v39  ;;  %v1066_v27 = vmul.f32 0.00125, %v1062_v62  ;;  %v1036_v30 = vsub.f32 %v1015_v40, %v1023_v22 }
 0x53f   :  { %v4732_v26 = vadd.f32 %v1067_v25, %v4600_v28  ;;  %v4739_v55 = vadd.f32 %v1066_v27, %v4607_v61 }
 0x540   :  { %v1033_v63 = vpop.permute.xlu1 %1032  ;;  %v1031_v31 = vpop.permute.xlu0 %1030 }
 0x541   :  { %v1041_v32 = vmul.f32 %v1037_v29, %v1033_v63  ;;  %v1040_v33 = vmul.f32 %v1036_v30, %v1031_v31  ;;  %1084 = vrot.lane.b32.xlu1 %v4732_v26, %s4414_s6  ;;  %1076 = vrot.lane.b32.xlu0 %v4732_v26, %s4413_s30 }
 0x543   :  { %v1045_v28 = vsub.f32 %v1041_v32, %v1009_v50  ;;  %v1044_v56 = vsub.f32 %v1040_v33, %v1008_v53 }
 0x545   :  { %v1049_v34 = vadd.f32 8.0, %v1045_v28  ;;  %v1048_v36 = vadd.f32 8.0, %v1044_v56  ;;  %1082 = vrot.lane.b32.xlu1 %v4739_v55, %s4414_s6  ;;  %1074 = vrot.lane.b32.xlu0 %v4739_v55, %s4413_s30 }
 0x547   :  { %v1065_v37 = vadd.f32 %v1061_v4, %v1049_v34  ;;  %v1064_v38 = vadd.f32 %v1060_v35, %v1048_v36 }
 0x549   :  { %v1069_v41 = vmul.f32 0.00125, %v1065_v37  ;;  %1092 = vrot.lane.b32.xlu1 %v4732_v26, %s4415_s2  ;;  %1090 = vrot.lane.b32.xlu0 %v4739_v55, %s4415_s2  ;;  %v1068_v17 = vmul.f32 0.00125, %v1064_v38 }
 0x54b   :  { %v4752_v61 = vadd.f32 %v1069_v41, %v4620_v48  ;;  %v4759_v18 = vadd.f32 %v1068_v17, %v4627_v20 }
 0x54d   :  { %1088 = vrot.lane.b32.xlu1 %v4752_v61, %s4414_s6  ;;  %1080 = vrot.lane.b32.xlu0 %v4752_v61, %s4413_s30 }
 0x551   :  { %1086 = vrot.lane.b32.xlu1 %v4759_v18, %s4414_s6  ;;  %1078 = vrot.lane.b32.xlu0 %v4759_v18, %s4413_s30 }
 0x555   :  { %1096 = vrot.lane.b32.xlu1 %v4752_v61, %s4415_s2  ;;  %1094 = vrot.lane.b32.xlu0 %v4759_v18, %s4415_s2 }
 0x5b3   :  { %v1085_v48 = vpop.permute.xlu1 %1084  ;;  %v1077_v42 = vpop.permute.xlu0 %1076 }
 0x5b4   :  { %v1099_v19 = vsub.f32 %v1077_v42, %v1085_v48 }
 0x5b7   :  { %v1083_v43 = vpop.permute.xlu1 %1082  ;;  %v1075_v44 = vpop.permute.xlu0 %1074 }
 0x5b8   :  { %v1098_v51 = vsub.f32 %v1075_v44, %v1083_v43 }
 0x5bb   :  { %v1093_v20 = vpop.permute.xlu1 %1092  ;;  %v1091_v45 = vpop.permute.xlu0 %1090 }
 0x5bc   :  { %v1103_v47 = vmul.f32 %v1099_v19, %v1093_v20  ;;  %v1102_v49 = vmul.f32 %v1098_v51, %v1091_v45 }
 0x5be   :  { %v1107_v50 = vsub.f32 %v1103_v47, %v4732_v26  ;;  %v1106_v53 = vsub.f32 %v1102_v49, %v4739_v55 }
 0x5bf   :  { %v1089_v52 = vpop.permute.xlu1 %1088  ;;  %v1081_v54 = vpop.permute.xlu0 %1080 }
 0x5c0   :  { %v4771_v57 = vadd.f32 8.0, %v1107_v50  ;;  %v4773_v58 = vadd.f32 8.0, %v1106_v53  ;;  %v1101_v6 = vsub.f32 %v1081_v54, %v1089_v52 }
 0x5c2   :  { %v1115_v59 = vmul.f32 0.0033333334, %v4771_v57  ;;  %v4777_v3 = vmul.f32 0.0033333334, %v4773_v58 }
 0x5c3   :  { %v1087_v60 = vpop.permute.xlu1 %1086  ;;  %v1079_v1 = vpop.permute.xlu0 %1078 }
 0x5c4   :  { %v1119_v5 = vadd.f32 %v1115_v59, %v4732_v26  ;;  %v1100_v7 = vsub.f32 %v1079_v1, %v1087_v60  ;;  %v1118_v12 = vadd.f32 %v4777_v3, %v4739_v55 }
 0x5c6   :  { %1132 = vrot.lane.b32.xlu1 %v1119_v5, %s4414_s6  ;;  %1124 = vrot.lane.b32.xlu0 %v1119_v5, %s4413_s30 }
 0x5c7   :  { %v1097_v8 = vpop.permute.xlu1 %1096  ;;  %v1095_v9 = vpop.permute.xlu0 %1094 }
 0x5c8   :  { %v1105_v10 = vmul.f32 %v1101_v6, %v1097_v8  ;;  %v1104_v11 = vmul.f32 %v1100_v7, %v1095_v9 }
 0x5ca   :  { %v1109_v13 = vsub.f32 %v1105_v10, %v4752_v61  ;;  %v1108_v14 = vsub.f32 %v1104_v11, %v4759_v18  ;;  %1130 = vrot.lane.b32.xlu1 %v1118_v12, %s4414_s6  ;;  %1122 = vrot.lane.b32.xlu0 %v1118_v12, %s4413_s30 }
 0x5cc   :  { %v4788_v15 = vadd.f32 8.0, %v1109_v13  ;;  %v4790_v16 = vadd.f32 8.0, %v1108_v14 }
 0x5ce   :  { %v1117_v21 = vmul.f32 0.0033333334, %v4788_v15  ;;  %1140 = vrot.lane.b32.xlu1 %v1119_v5, %s4415_s2  ;;  %1138 = vrot.lane.b32.xlu0 %v1118_v12, %s4415_s2  ;;  %v1116_v46 = vmul.f32 0.0033333334, %v4790_v16 }
 0x5d0   :  { %v1121_v39 = vadd.f32 %v1117_v21, %v4752_v61  ;;  %v1120_v62 = vadd.f32 %v1116_v46, %v4759_v18 }
 0x5d2   :  { %1136 = vrot.lane.b32.xlu1 %v1121_v39, %s4414_s6  ;;  %1128 = vrot.lane.b32.xlu0 %v1121_v39, %s4413_s30 }
 0x5d6   :  { %1134 = vrot.lane.b32.xlu1 %v1120_v62, %s4414_s6  ;;  %1126 = vrot.lane.b32.xlu0 %v1120_v62, %s4413_s30 }
 0x5da   :  { %1144 = vrot.lane.b32.xlu1 %v1121_v39, %s4415_s2  ;;  %1142 = vrot.lane.b32.xlu0 %v1120_v62, %s4415_s2 }
 0x638   :  { %v1133_v22 = vpop.permute.xlu1 %1132  ;;  %v1125_v40 = vpop.permute.xlu0 %1124 }
 0x639   :  { %v1147_v25 = vsub.f32 %v1125_v40, %v1133_v22 }
 0x63c   :  { %v1131_v23 = vpop.permute.xlu1 %1130  ;;  %v1123_v24 = vpop.permute.xlu0 %1122 }
 0x63d   :  { %v1146_v27 = vsub.f32 %v1123_v24, %v1131_v23 }
 0x640   :  { %v1141_v29 = vpop.permute.xlu1 %1140  ;;  %v1139_v30 = vpop.permute.xlu0 %1138 }
 0x641   :  { %v1151_v63 = vmul.f32 %v1147_v25, %v1141_v29  ;;  %v1150_v31 = vmul.f32 %v1146_v27, %v1139_v30 }
 0x643   :  { %v1155_v2 = vsub.f32 %v1151_v63, %v1119_v5  ;;  %v1154_v0 = vsub.f32 %v1150_v31, %v1118_v12 }
 0x644   :  { %v1137_v32 = vpop.permute.xlu1 %1136  ;;  %v1129_v33 = vpop.permute.xlu0 %1128 }
 0x645   :  { %v4804_v28 = vadd.f32 8.0, %v1155_v2  ;;  %v4806_v56 = vadd.f32 8.0, %v1154_v0  ;;  %v1149_v38 = vsub.f32 %v1129_v33, %v1137_v32 }
 0x647   :  { %v1163_v4 = vmul.f32 0.01, %v4804_v28  ;;  %v1162_v34 = vmul.f32 0.01, %v4806_v56  ;;  %v1214_v22 = vsub.f32 %v4773_v58, %v4806_v56 }
 0x648   :  { %v1135_v35 = vpop.permute.xlu1 %1134  ;;  %v1127_v36 = vpop.permute.xlu0 %1126 }
 0x649   :  { %v1167_v37 = vsub.f32 %v1163_v4, %v1115_v59  ;;  %v1148_v41 = vsub.f32 %v1127_v36, %v1135_v35  ;;  %v1166_v48 = vsub.f32 %v1162_v34, %v4777_v3 }
 0x64b   :  { %v1171_v17 = vadd.f32 %v1167_v37, %v4732_v26  ;;  %v1170_v45 = vadd.f32 %v1166_v48, %v4739_v55 }
 0x64c   :  { %v1145_v42 = vpop.permute.xlu1 %1144  ;;  %v1143_v43 = vpop.permute.xlu0 %1142 }
 0x64d   :  { %v1153_v44 = vmul.f32 %v1149_v38, %v1145_v42  ;;  %v1152_v19 = vmul.f32 %v1148_v41, %v1143_v43  ;;  %1184 = vrot.lane.b32.xlu1 %v1171_v17, %s4414_s6  ;;  %1176 = vrot.lane.b32.xlu0 %v1171_v17, %s4413_s30 }
 0x64f   :  { %v1157_v51 = vsub.f32 %v1153_v44, %v1121_v39  ;;  %v1156_v20 = vsub.f32 %v1152_v19, %v1120_v62  ;;  %v1215_v39 = vsub.f32 %v4771_v57, %v4804_v28 }
 0x651   :  { %v4815_v47 = vadd.f32 8.0, %v1157_v51  ;;  %v4817_v49 = vadd.f32 8.0, %v1156_v20  ;;  %1182 = vrot.lane.b32.xlu1 %v1170_v45, %s4414_s6  ;;  %1174 = vrot.lane.b32.xlu0 %v1170_v45, %s4413_s30 }
 0x653   :  { %v1165_v50 = vmul.f32 0.01, %v4815_v47  ;;  %v1164_v53 = vmul.f32 0.01, %v4817_v49  ;;  %v1217_v37 = vsub.f32 %v4788_v15, %v4815_v47  ;;  %v1216_v41 = vsub.f32 %v4790_v16, %v4817_v49 }
 0x655   :  { %1192 = vrot.lane.b32.xlu1 %v1171_v17, %s4415_s2  ;;  %1190 = vrot.lane.b32.xlu0 %v1170_v45, %s4415_s2  ;;  %v1169_v52 = vsub.f32 %v1165_v50, %v1117_v21  ;;  %v1168_v59 = vsub.f32 %v1164_v53, %v1116_v46 }
 0x657   :  { %v1173_v54 = vadd.f32 %v1169_v52, %v4752_v61  ;;  %v1172_v60 = vadd.f32 %v1168_v59, %v4759_v18 }
 0x659   :  { %1188 = vrot.lane.b32.xlu1 %v1173_v54, %s4414_s6  ;;  %1180 = vrot.lane.b32.xlu0 %v1173_v54, %s4413_s30 }
 0x65d   :  { %1186 = vrot.lane.b32.xlu1 %v1172_v60, %s4414_s6  ;;  %1178 = vrot.lane.b32.xlu0 %v1172_v60, %s4413_s30 }
 0x661   :  { %1196 = vrot.lane.b32.xlu1 %v1173_v54, %s4415_s2  ;;  %1194 = vrot.lane.b32.xlu0 %v1172_v60, %s4415_s2 }
 0x6bf   :  { %v1185_v1 = vpop.permute.xlu1 %1184  ;;  %v1177_v3 = vpop.permute.xlu0 %1176 }
 0x6c0   :  { %v1199_v7 = vsub.f32 %v1177_v3, %v1185_v1 }
 0x6c3   :  { %v1183_v5 = vpop.permute.xlu1 %1182  ;;  %v1175_v6 = vpop.permute.xlu0 %1174 }
 0x6c4   :  { %v1198_v8 = vsub.f32 %v1175_v6, %v1183_v5 }
 0x6c7   :  { %v1193_v9 = vpop.permute.xlu1 %1192  ;;  %v1191_v10 = vpop.permute.xlu0 %1190 }
 0x6c8   :  { %v1203_v11 = vmul.f32 %v1199_v7, %v1193_v9  ;;  %v1202_v12 = vmul.f32 %v1198_v8, %v1191_v10 }
 0x6ca   :  { %v1207_v13 = vsub.f32 %v1203_v11, %v1171_v17  ;;  %v1206_v14 = vsub.f32 %v1202_v12, %v1170_v45 }
 0x6cb   :  { %v1189_v21 = vpop.permute.xlu1 %1188  ;;  %v1181_v46 = vpop.permute.xlu0 %1180 }
 0x6cc   :  { %v1211_v62 = vadd.f32 8.0, %v1207_v13  ;;  %v1210_v40 = vadd.f32 8.0, %v1206_v14  ;;  %v1201_v63 = vsub.f32 %v1181_v46, %v1189_v21 }
 0x6ce   :  { %v1219_v23 = vadd.f32 %v1215_v39, %v1211_v62  ;;  %v1218_v24 = vadd.f32 %v1214_v22, %v1210_v40  ;;  %v1271_v52 = vadd.f32 %v1211_v62, %v4804_v28 }
 0x6cf   :  { %v1187_v25 = vpop.permute.xlu1 %1186  ;;  %v1179_v27 = vpop.permute.xlu0 %1178 }
 0x6d0   :  { %v1223_v29 = vmul.f32 0.01, %v1219_v23  ;;  %v1222_v30 = vmul.f32 0.01, %v1218_v24  ;;  %v1200_v31 = vsub.f32 %v1179_v27, %v1187_v25  ;;  %v1275_v5 = vmul.f32 3.0, %v1271_v52 }
 0x6d2   :  { %v1227_v2 = vadd.f32 %v1223_v29, %v4732_v26  ;;  %v1226_v36 = vadd.f32 %v1222_v30, %v4739_v55  ;;  %v1279_v13 = vadd.f32 %v1275_v5, %v4771_v57 }
 0x6d3   :  { %v1197_v0 = vpop.permute.xlu1 %1196  ;;  %v1195_v32 = vpop.permute.xlu0 %1194 }
 0x6d4   :  { %v1205_v33 = vmul.f32 %v1201_v63, %v1197_v0  ;;  %v1204_v4 = vmul.f32 %v1200_v31, %v1195_v32  ;;  %1240 = vrot.lane.b32.xlu1 %v1227_v2, %s4414_s6  ;;  %1232 = vrot.lane.b32.xlu0 %v1227_v2, %s4413_s30 }
 0x6d6   :  { %v1209_v34 = vsub.f32 %v1205_v33, %v1173_v54  ;;  %v1208_v35 = vsub.f32 %v1204_v4, %v1172_v60  ;;  %v1270_v54 = vadd.f32 %v1210_v40, %v4806_v56 }
 0x6d8   :  { %v1213_v38 = vadd.f32 8.0, %v1209_v34  ;;  %v1212_v17 = vadd.f32 8.0, %v1208_v35  ;;  %1238 = vrot.lane.b32.xlu1 %v1226_v36, %s4414_s6  ;;  %1230 = vrot.lane.b32.xlu0 %v1226_v36, %s4413_s30  ;;  %v1274_v6 = vmul.f32 3.0, %v1270_v54 }
 0x6da   :  { %v1221_v48 = vadd.f32 %v1217_v37, %v1213_v38  ;;  %v1220_v42 = vadd.f32 %v1216_v41, %v1212_v17  ;;  %v1278_v21 = vadd.f32 %v1274_v6, %v4773_v58  ;;  %v1273_v22 = vadd.f32 %v1213_v38, %v4815_v47 }
 0x6db   :  { %v1272_v40 = vadd.f32 %v1212_v17, %v4817_v49 }
 0x6dc   :  { %v1225_v43 = vmul.f32 0.01, %v1221_v48  ;;  %1248 = vrot.lane.b32.xlu1 %v1227_v2, %s4415_s2  ;;  %1246 = vrot.lane.b32.xlu0 %v1226_v36, %s4415_s2  ;;  %v1224_v44 = vmul.f32 0.01, %v1220_v42  ;;  %v1277_v63 = vmul.f32 3.0, %v1273_v22 }
 0x6dd   :  { %v1276_v58 = vmul.f32 3.0, %v1272_v40 }
 0x6de   :  { %v1229_v19 = vadd.f32 %v1225_v43, %v4752_v61  ;;  %v1228_v51 = vadd.f32 %v1224_v44, %v4759_v18  ;;  %v1281_v0 = vadd.f32 %v1277_v63, %v4788_v15 }
 0x6df   :  { %v1280_v33 = vadd.f32 %v1276_v58, %v4790_v16 }
 0x6e0   :  { %1244 = vrot.lane.b32.xlu1 %v1229_v19, %s4414_s6  ;;  %1236 = vrot.lane.b32.xlu0 %v1229_v19, %s4413_s30 }
 0x6e4   :  { %1242 = vrot.lane.b32.xlu1 %v1228_v51, %s4414_s6  ;;  %1234 = vrot.lane.b32.xlu0 %v1228_v51, %s4413_s30 }
 0x6e8   :  { %1252 = vrot.lane.b32.xlu1 %v1229_v19, %s4415_s2  ;;  %1250 = vrot.lane.b32.xlu0 %v1228_v51, %s4415_s2 }
 0x746   :  { %v1241_v20 = vpop.permute.xlu1 %1240  ;;  %v1233_v45 = vpop.permute.xlu0 %1232 }
 0x747   :  { %v1255_v59 = vsub.f32 %v1233_v45, %v1241_v20 }
 0x74a   :  { %v1239_v50 = vpop.permute.xlu1 %1238  ;;  %v1231_v53 = vpop.permute.xlu0 %1230 }
 0x74b   :  { %v1254_v60 = vsub.f32 %v1231_v53, %v1239_v50 }
 0x74e   :  { %v1249_v1 = vpop.permute.xlu1 %1248  ;;  %v1247_v3 = vpop.permute.xlu0 %1246 }
 0x74f   :  { %v1259_v7 = vmul.f32 %v1255_v59, %v1249_v1  ;;  %v1258_v8 = vmul.f32 %v1254_v60, %v1247_v3 }
 0x751   :  { %v1263_v9 = vsub.f32 %v1259_v7, %v1227_v2  ;;  %v1262_v10 = vsub.f32 %v1258_v8, %v1226_v36 }
 0x752   :  { %v1245_v11 = vpop.permute.xlu1 %1244  ;;  %v1237_v12 = vpop.permute.xlu0 %1236 }
 0x753   :  { %v1267_v14 = vadd.f32 8.0, %v1263_v9  ;;  %v1266_v28 = vadd.f32 8.0, %v1262_v10  ;;  %v1257_v27 = vsub.f32 %v1237_v12, %v1245_v11 }
 0x755   :  { %v1283_v46 = vadd.f32 %v1279_v13, %v1267_v14  ;;  %v1282_v56 = vadd.f32 %v1278_v21, %v1266_v28 }
 0x756   :  { %v1243_v39 = vpop.permute.xlu1 %1242  ;;  %v1235_v62 = vpop.permute.xlu0 %1234 }
 0x757   :  { %v1287_v23 = vmul.f32 0.00125, %v1283_v46  ;;  %v1286_v25 = vmul.f32 0.00125, %v1282_v56  ;;  %v1256_v29 = vsub.f32 %v1235_v62, %v1243_v39 }
 0x759   :  { %v4864_v24 = vadd.f32 %v1287_v23, %v4732_v26  ;;  %v4871_v47 = vadd.f32 %v1286_v25, %v4739_v55 }
 0x75a   :  { %v1253_v57 = vpop.permute.xlu1 %1252  ;;  %v1251_v30 = vpop.permute.xlu0 %1250 }
 0x75b   :  { %v1261_v31 = vmul.f32 %v1257_v27, %v1253_v57  ;;  %v1260_v2 = vmul.f32 %v1256_v29, %v1251_v30  ;;  %1304 = vrot.lane.b32.xlu1 %v4864_v24, %s4414_s6  ;;  %1296 = vrot.lane.b32.xlu0 %v4864_v24, %s4413_s30 }
 0x75d   :  { %v1265_v26 = vsub.f32 %v1261_v31, %v1229_v19  ;;  %v1264_v49 = vsub.f32 %v1260_v2, %v1228_v51 }
 0x75f   :  { %v1269_v32 = vadd.f32 8.0, %v1265_v26  ;;  %v1268_v4 = vadd.f32 8.0, %v1264_v49  ;;  %1302 = vrot.lane.b32.xlu1 %v4871_v47, %s4414_s6  ;;  %1294 = vrot.lane.b32.xlu0 %v4871_v47, %s4413_s30 }
 0x761   :  { %v1285_v34 = vadd.f32 %v1281_v0, %v1269_v32  ;;  %v1284_v35 = vadd.f32 %v1280_v33, %v1268_v4 }
 0x763   :  { %v1289_v36 = vmul.f32 0.00125, %v1285_v34  ;;  %1312 = vrot.lane.b32.xlu1 %v4864_v24, %s4415_s2  ;;  %1310 = vrot.lane.b32.xlu0 %v4871_v47, %s4415_s2  ;;  %v1288_v15 = vmul.f32 0.00125, %v1284_v35 }
 0x765   :  { %v4884_v55 = vadd.f32 %v1289_v36, %v4752_v61  ;;  %v4891_v16 = vadd.f32 %v1288_v15, %v4759_v18 }
 0x767   :  { %1308 = vrot.lane.b32.xlu1 %v4884_v55, %s4414_s6  ;;  %1300 = vrot.lane.b32.xlu0 %v4884_v55, %s4413_s30 }
 0x76b   :  { %1306 = vrot.lane.b32.xlu1 %v4891_v16, %s4414_s6  ;;  %1298 = vrot.lane.b32.xlu0 %v4891_v16, %s4413_s30 }
 0x76f   :  { %1316 = vrot.lane.b32.xlu1 %v4884_v55, %s4415_s2  ;;  %1314 = vrot.lane.b32.xlu0 %v4891_v16, %s4415_s2 }
 0x7cd   :  { %v1305_v61 = vpop.permute.xlu1 %1304  ;;  %v1297_v37 = vpop.permute.xlu0 %1296 }
 0x7ce   :  { %v1319_v17 = vsub.f32 %v1297_v37, %v1305_v61 }
 0x7d1   :  { %v1303_v38 = vpop.permute.xlu1 %1302  ;;  %v1295_v41 = vpop.permute.xlu0 %1294 }
 0x7d2   :  { %v1318_v48 = vsub.f32 %v1295_v41, %v1303_v38 }
 0x7d5   :  { %v1313_v18 = vpop.permute.xlu1 %1312  ;;  %v1311_v42 = vpop.permute.xlu0 %1310 }
 0x7d6   :  { %v1323_v43 = vmul.f32 %v1319_v17, %v1313_v18  ;;  %v1322_v44 = vmul.f32 %v1318_v48, %v1311_v42 }
 0x7d8   :  { %v1327_v19 = vsub.f32 %v1323_v43, %v4864_v24  ;;  %v1326_v51 = vsub.f32 %v1322_v44, %v4871_v47 }
 0x7d9   :  { %v1309_v20 = vpop.permute.xlu1 %1308  ;;  %v1301_v45 = vpop.permute.xlu0 %1300 }
 0x7da   :  { %v4903_v50 = vadd.f32 8.0, %v1327_v19  ;;  %v4905_v53 = vadd.f32 8.0, %v1326_v51  ;;  %v1321_v3 = vsub.f32 %v1301_v45, %v1309_v20 }
 0x7dc   :  { %v1335_v52 = vmul.f32 0.0033333334, %v4903_v50  ;;  %v4909_v60 = vmul.f32 0.0033333334, %v4905_v53 }
 0x7dd   :  { %v1307_v54 = vpop.permute.xlu1 %1306  ;;  %v1299_v59 = vpop.permute.xlu0 %1298 }
 0x7de   :  { %v1339_v1 = vadd.f32 %v1335_v52, %v4864_v24  ;;  %v1320_v5 = vsub.f32 %v1299_v59, %v1307_v54  ;;  %v1338_v10 = vadd.f32 %v4909_v60, %v4871_v47 }
 0x7e0   :  { %1352 = vrot.lane.b32.xlu1 %v1339_v1, %s4414_s6  ;;  %1344 = vrot.lane.b32.xlu0 %v1339_v1, %s4413_s30 }
 0x7e1   :  { %v1317_v6 = vpop.permute.xlu1 %1316  ;;  %v1315_v7 = vpop.permute.xlu0 %1314 }
 0x7e2   :  { %v1325_v8 = vmul.f32 %v1321_v3, %v1317_v6  ;;  %v1324_v9 = vmul.f32 %v1320_v5, %v1315_v7 }
 0x7e4   :  { %v1329_v11 = vsub.f32 %v1325_v8, %v4884_v55  ;;  %v1328_v12 = vsub.f32 %v1324_v9, %v4891_v16  ;;  %1350 = vrot.lane.b32.xlu1 %v1338_v10, %s4414_s6  ;;  %1342 = vrot.lane.b32.xlu0 %v1338_v10, %s4413_s30 }
 0x7e6   :  { %v4920_v13 = vadd.f32 8.0, %v1329_v11  ;;  %v4922_v14 = vadd.f32 8.0, %v1328_v12 }
 0x7e8   :  { %v1337_v21 = vmul.f32 0.0033333334, %v4920_v13  ;;  %1360 = vrot.lane.b32.xlu1 %v1339_v1, %s4415_s2  ;;  %1358 = vrot.lane.b32.xlu0 %v1338_v10, %s4415_s2  ;;  %v1336_v28 = vmul.f32 0.0033333334, %v4922_v14 }
 0x7ea   :  { %v1341_v46 = vadd.f32 %v1337_v21, %v4884_v55  ;;  %v1340_v56 = vadd.f32 %v1336_v28, %v4891_v16 }
 0x7ec   :  { %1356 = vrot.lane.b32.xlu1 %v1341_v46, %s4414_s6  ;;  %1348 = vrot.lane.b32.xlu0 %v1341_v46, %s4413_s30 }
 0x7f0   :  { %1354 = vrot.lane.b32.xlu1 %v1340_v56, %s4414_s6  ;;  %1346 = vrot.lane.b32.xlu0 %v1340_v56, %s4413_s30 }
 0x7f4   :  { %1364 = vrot.lane.b32.xlu1 %v1341_v46, %s4415_s2  ;;  %1362 = vrot.lane.b32.xlu0 %v1340_v56, %s4415_s2 }
 0x852   :  { %v1353_v39 = vpop.permute.xlu1 %1352  ;;  %v1345_v62 = vpop.permute.xlu0 %1344 }
 0x853   :  { %v1367_v23 = vsub.f32 %v1345_v62, %v1353_v39 }
 0x856   :  { %v1351_v22 = vpop.permute.xlu1 %1350  ;;  %v1343_v40 = vpop.permute.xlu0 %1342 }
 0x857   :  { %v1366_v25 = vsub.f32 %v1343_v40, %v1351_v22 }
 0x85a   :  { %v1361_v27 = vpop.permute.xlu1 %1360  ;;  %v1359_v29 = vpop.permute.xlu0 %1358 }
 0x85b   :  { %v1371_v57 = vmul.f32 %v1367_v23, %v1361_v27  ;;  %v1370_v30 = vmul.f32 %v1366_v25, %v1359_v29 }
 0x85d   :  { %v1375_v63 = vsub.f32 %v1371_v57, %v1339_v1  ;;  %v1374_v58 = vsub.f32 %v1370_v30, %v1338_v10 }
 0x85e   :  { %v1357_v31 = vpop.permute.xlu1 %1356  ;;  %v1349_v2 = vpop.permute.xlu0 %1348 }
 0x85f   :  { %v4936_v26 = vadd.f32 8.0, %v1375_v63  ;;  %v4938_v49 = vadd.f32 8.0, %v1374_v58  ;;  %v1369_v35 = vsub.f32 %v1349_v2, %v1357_v31 }
 0x861   :  { %v1383_v0 = vmul.f32 0.01, %v4936_v26  ;;  %v1382_v32 = vmul.f32 0.01, %v4938_v49  ;;  %v1434_v39 = vsub.f32 %v4905_v53, %v4938_v49 }
 0x862   :  { %v1355_v33 = vpop.permute.xlu1 %1354  ;;  %v1347_v4 = vpop.permute.xlu0 %1346 }
 0x863   :  { %v1387_v34 = vsub.f32 %v1383_v0, %v1335_v52  ;;  %v1368_v36 = vsub.f32 %v1347_v4, %v1355_v33  ;;  %v1386_v61 = vsub.f32 %v1382_v32, %v4909_v60 }
 0x865   :  { %v1391_v15 = vadd.f32 %v1387_v34, %v4864_v24  ;;  %v1390_v42 = vadd.f32 %v1386_v61, %v4871_v47 }
 0x866   :  { %v1365_v37 = vpop.permute.xlu1 %1364  ;;  %v1363_v38 = vpop.permute.xlu0 %1362 }
 0x867   :  { %v1373_v41 = vmul.f32 %v1369_v35, %v1365_v37  ;;  %v1372_v17 = vmul.f32 %v1368_v36, %v1363_v38  ;;  %1404 = vrot.lane.b32.xlu1 %v1391_v15, %s4414_s6  ;;  %1396 = vrot.lane.b32.xlu0 %v1391_v15, %s4413_s30 }
 0x869   :  { %v1377_v48 = vsub.f32 %v1373_v41, %v1341_v46  ;;  %v1376_v18 = vsub.f32 %v1372_v17, %v1340_v56  ;;  %v1435_v46 = vsub.f32 %v4903_v50, %v4936_v26 }
 0x86b   :  { %v4947_v43 = vadd.f32 8.0, %v1377_v48  ;;  %v4949_v44 = vadd.f32 8.0, %v1376_v18  ;;  %1402 = vrot.lane.b32.xlu1 %v1390_v42, %s4414_s6  ;;  %1394 = vrot.lane.b32.xlu0 %v1390_v42, %s4413_s30 }
 0x86d   :  { %v1385_v19 = vmul.f32 0.01, %v4947_v43  ;;  %v1384_v51 = vmul.f32 0.01, %v4949_v44  ;;  %v1437_v34 = vsub.f32 %v4920_v13, %v4947_v43  ;;  %v1436_v36 = vsub.f32 %v4922_v14, %v4949_v44 }
 0x86f   :  { %1412 = vrot.lane.b32.xlu1 %v1391_v15, %s4415_s2  ;;  %1410 = vrot.lane.b32.xlu0 %v1390_v42, %s4415_s2  ;;  %v1389_v20 = vsub.f32 %v1385_v19, %v1337_v21  ;;  %v1388_v52 = vsub.f32 %v1384_v51, %v1336_v28 }
 0x871   :  { %v1393_v45 = vadd.f32 %v1389_v20, %v4884_v55  ;;  %v1392_v54 = vadd.f32 %v1388_v52, %v4891_v16 }
 0x873   :  { %1408 = vrot.lane.b32.xlu1 %v1393_v45, %s4414_s6  ;;  %1400 = vrot.lane.b32.xlu0 %v1393_v45, %s4413_s30 }
 0x877   :  { %1406 = vrot.lane.b32.xlu1 %v1392_v54, %s4414_s6  ;;  %1398 = vrot.lane.b32.xlu0 %v1392_v54, %s4413_s30 }
 0x87b   :  { %1416 = vrot.lane.b32.xlu1 %v1393_v45, %s4415_s2  ;;  %1414 = vrot.lane.b32.xlu0 %v1392_v54, %s4415_s2 }
 0x8d9   :  { %v1405_v59 = vpop.permute.xlu1 %1404  ;;  %v1397_v60 = vpop.permute.xlu0 %1396 }
 0x8da   :  { %v1419_v5 = vsub.f32 %v1397_v60, %v1405_v59 }
 0x8dd   :  { %v1403_v1 = vpop.permute.xlu1 %1402  ;;  %v1395_v3 = vpop.permute.xlu0 %1394 }
 0x8de   :  { %v1418_v6 = vsub.f32 %v1395_v3, %v1403_v1 }
 0x8e1   :  { %v1413_v7 = vpop.permute.xlu1 %1412  ;;  %v1411_v8 = vpop.permute.xlu0 %1410 }
 0x8e2   :  { %v1423_v9 = vmul.f32 %v1419_v5, %v1413_v7  ;;  %v1422_v10 = vmul.f32 %v1418_v6, %v1411_v8 }
 0x8e4   :  { %v1427_v11 = vsub.f32 %v1423_v9, %v1391_v15  ;;  %v1426_v12 = vsub.f32 %v1422_v10, %v1390_v42 }
 0x8e5   :  { %v1409_v21 = vpop.permute.xlu1 %1408  ;;  %v1401_v28 = vpop.permute.xlu0 %1400 }
 0x8e6   :  { %v1431_v56 = vadd.f32 8.0, %v1427_v11  ;;  %v1430_v62 = vadd.f32 8.0, %v1426_v12  ;;  %v1421_v57 = vsub.f32 %v1401_v28, %v1409_v21 }
 0x8e8   :  { %v1439_v22 = vadd.f32 %v1435_v46, %v1431_v56  ;;  %v1438_v40 = vadd.f32 %v1434_v39, %v1430_v62  ;;  %v1491_v20 = vadd.f32 %v1431_v56, %v4936_v26 }
 0x8e9   :  { %v1407_v23 = vpop.permute.xlu1 %1406  ;;  %v1399_v25 = vpop.permute.xlu0 %1398 }
 0x8ea   :  { %v1443_v27 = vmul.f32 0.01, %v1439_v22  ;;  %v1442_v29 = vmul.f32 0.01, %v1438_v40  ;;  %v1420_v30 = vsub.f32 %v1399_v25, %v1407_v23  ;;  %v1495_v1 = vmul.f32 3.0, %v1491_v20 }
 0x8ec   :  { %v1447_v63 = vadd.f32 %v1443_v27, %v4864_v24  ;;  %v1446_v4 = vadd.f32 %v1442_v29, %v4871_v47  ;;  %v1499_v11 = vadd.f32 %v1495_v1, %v4903_v50 }
 0x8ed   :  { %v1417_v58 = vpop.permute.xlu1 %1416  ;;  %v1415_v31 = vpop.permute.xlu0 %1414 }
 0x8ee   :  { %v1425_v2 = vmul.f32 %v1421_v57, %v1417_v58  ;;  %v1424_v0 = vmul.f32 %v1420_v30, %v1415_v31  ;;  %1460 = vrot.lane.b32.xlu1 %v1447_v63, %s4414_s6  ;;  %1452 = vrot.lane.b32.xlu0 %v1447_v63, %s4413_s30 }
 0x8f0   :  { %v1429_v32 = vsub.f32 %v1425_v2, %v1393_v45  ;;  %v1428_v33 = vsub.f32 %v1424_v0, %v1392_v54  ;;  %v1490_v45 = vadd.f32 %v1430_v62, %v4938_v49 }
 0x8f2   :  { %v1433_v35 = vadd.f32 8.0, %v1429_v32  ;;  %v1432_v15 = vadd.f32 8.0, %v1428_v33  ;;  %1458 = vrot.lane.b32.xlu1 %v1446_v4, %s4414_s6  ;;  %1450 = vrot.lane.b32.xlu0 %v1446_v4, %s4413_s30  ;;  %v1494_v3 = vmul.f32 3.0, %v1490_v45 }
 0x8f4   :  { %v1441_v61 = vadd.f32 %v1437_v34, %v1433_v35  ;;  %v1440_v37 = vadd.f32 %v1436_v36, %v1432_v15  ;;  %v1498_v21 = vadd.f32 %v1494_v3, %v4905_v53  ;;  %v1493_v39 = vadd.f32 %v1433_v35, %v4947_v43 }
 0x8f5   :  { %v1492_v62 = vadd.f32 %v1432_v15, %v4949_v44 }
 0x8f6   :  { %v1445_v38 = vmul.f32 0.01, %v1441_v61  ;;  %1468 = vrot.lane.b32.xlu1 %v1447_v63, %s4415_s2  ;;  %1466 = vrot.lane.b32.xlu0 %v1446_v4, %s4415_s2  ;;  %v1444_v41 = vmul.f32 0.01, %v1440_v37  ;;  %v1497_v57 = vmul.f32 3.0, %v1493_v39 }
 0x8f7   :  { %v1496_v53 = vmul.f32 3.0, %v1492_v62 }
 0x8f8   :  { %v1449_v17 = vadd.f32 %v1445_v38, %v4884_v55  ;;  %v1448_v48 = vadd.f32 %v1444_v41, %v4891_v16  ;;  %v1501_v58 = vadd.f32 %v1497_v57, %v4920_v13 }
 0x8f9   :  { %v1500_v2 = vadd.f32 %v1496_v53, %v4922_v14 }
 0x8fa   :  { %1464 = vrot.lane.b32.xlu1 %v1449_v17, %s4414_s6  ;;  %1456 = vrot.lane.b32.xlu0 %v1449_v17, %s4413_s30 }
 0x8fe   :  { %1462 = vrot.lane.b32.xlu1 %v1448_v48, %s4414_s6  ;;  %1454 = vrot.lane.b32.xlu0 %v1448_v48, %s4413_s30 }
 0x902   :  { %1472 = vrot.lane.b32.xlu1 %v1449_v17, %s4415_s2  ;;  %1470 = vrot.lane.b32.xlu0 %v1448_v48, %s4415_s2 }
 0x960   :  { %v1461_v18 = vpop.permute.xlu1 %1460  ;;  %v1453_v42 = vpop.permute.xlu0 %1452 }
 0x961   :  { %v1475_v52 = vsub.f32 %v1453_v42, %v1461_v18 }
 0x964   :  { %v1459_v19 = vpop.permute.xlu1 %1458  ;;  %v1451_v51 = vpop.permute.xlu0 %1450 }
 0x965   :  { %v1474_v54 = vsub.f32 %v1451_v51, %v1459_v19 }
 0x968   :  { %v1469_v59 = vpop.permute.xlu1 %1468  ;;  %v1467_v60 = vpop.permute.xlu0 %1466 }
 0x969   :  { %v1479_v5 = vmul.f32 %v1475_v52, %v1469_v59  ;;  %v1478_v6 = vmul.f32 %v1474_v54, %v1467_v60 }
 0x96b   :  { %v1483_v7 = vsub.f32 %v1479_v5, %v1447_v63  ;;  %v1482_v8 = vsub.f32 %v1478_v6, %v1446_v4 }
 0x96c   :  { %v1465_v9 = vpop.permute.xlu1 %1464  ;;  %v1457_v10 = vpop.permute.xlu0 %1456 }
 0x96d   :  { %v1487_v12 = vadd.f32 8.0, %v1483_v7  ;;  %v1486_v26 = vadd.f32 8.0, %v1482_v8  ;;  %v1477_v25 = vsub.f32 %v1457_v10, %v1465_v9 }
 0x96f   :  { %v1503_v28 = vadd.f32 %v1499_v11, %v1487_v12  ;;  %v1502_v49 = vadd.f32 %v1498_v21, %v1486_v26 }
 0x970   :  { %v1463_v46 = vpop.permute.xlu1 %1462  ;;  %v1455_v56 = vpop.permute.xlu0 %1454 }
 0x971   :  { %v1507_v22 = vmul.f32 0.00125, %v1503_v28  ;;  %v1506_v23 = vmul.f32 0.00125, %v1502_v49  ;;  %v1476_v27 = vsub.f32 %v1455_v56, %v1463_v46 }
 0x973   :  { %v4996_v40 = vadd.f32 %v1507_v22, %v4864_v24  ;;  %v5003_v43 = vadd.f32 %v1506_v23, %v4871_v47 }
 0x974   :  { %v1473_v50 = vpop.permute.xlu1 %1472  ;;  %v1471_v29 = vpop.permute.xlu0 %1470 }
 0x975   :  { %v1481_v30 = vmul.f32 %v1477_v25, %v1473_v50  ;;  %v1480_v63 = vmul.f32 %v1476_v27, %v1471_v29  ;;  %1524 = vrot.lane.b32.xlu1 %v4996_v40, %s4414_s6  ;;  %1516 = vrot.lane.b32.xlu0 %v4996_v40, %s4413_s30 }
 0x977   :  { %v1485_v24 = vsub.f32 %v1481_v30, %v1449_v17  ;;  %v1484_v44 = vsub.f32 %v1480_v63, %v1448_v48 }
 0x979   :  { %v1489_v31 = vadd.f32 8.0, %v1485_v24  ;;  %v1488_v0 = vadd.f32 8.0, %v1484_v44  ;;  %1522 = vrot.lane.b32.xlu1 %v5003_v43, %s4414_s6  ;;  %1514 = vrot.lane.b32.xlu0 %v5003_v43, %s4413_s30 }
 0x97b   :  { %v1505_v32 = vadd.f32 %v1501_v58, %v1489_v31  ;;  %v1504_v33 = vadd.f32 %v1500_v2, %v1488_v0 }
 0x97d   :  { %v1509_v4 = vmul.f32 0.00125, %v1505_v32  ;;  %1532 = vrot.lane.b32.xlu1 %v4996_v40, %s4415_s2  ;;  %1530 = vrot.lane.b32.xlu0 %v5003_v43, %s4415_s2  ;;  %v1508_v13 = vmul.f32 0.00125, %v1504_v33 }
 0x97f   :  { %v5016_v47 = vadd.f32 %v1509_v4, %v4884_v55  ;;  %v5023_v14 = vadd.f32 %v1508_v13, %v4891_v16 }
 0x981   :  { %1528 = vrot.lane.b32.xlu1 %v5016_v47, %s4414_s6  ;;  %1520 = vrot.lane.b32.xlu0 %v5016_v47, %s4413_s30 }
 0x985   :  { %1526 = vrot.lane.b32.xlu1 %v5023_v14, %s4414_s6  ;;  %1518 = vrot.lane.b32.xlu0 %v5023_v14, %s4413_s30 }
 0x989   :  { %1536 = vrot.lane.b32.xlu1 %v5016_v47, %s4415_s2  ;;  %1534 = vrot.lane.b32.xlu0 %v5023_v14, %s4415_s2 }
 0x9e7   :  { %v1525_v55 = vpop.permute.xlu1 %1524  ;;  %v1517_v34 = vpop.permute.xlu0 %1516 }
 0x9e8   :  { %v1539_v15 = vsub.f32 %v1517_v34, %v1525_v55 }
 0x9eb   :  { %v1523_v35 = vpop.permute.xlu1 %1522  ;;  %v1515_v36 = vpop.permute.xlu0 %1514 }
 0x9ec   :  { %v1538_v61 = vsub.f32 %v1515_v36, %v1523_v35 }
 0x9ef   :  { %v1533_v16 = vpop.permute.xlu1 %1532  ;;  %v1531_v37 = vpop.permute.xlu0 %1530 }
 0x9f0   :  { %v1543_v38 = vmul.f32 %v1539_v15, %v1533_v16  ;;  %v1542_v41 = vmul.f32 %v1538_v61, %v1531_v37 }
 0x9f2   :  { %v1547_v17 = vsub.f32 %v1543_v38, %v4996_v40  ;;  %v1546_v48 = vsub.f32 %v1542_v41, %v5003_v43 }
 0x9f3   :  { %v1529_v18 = vpop.permute.xlu1 %1528  ;;  %v1521_v42 = vpop.permute.xlu0 %1520 }
 0x9f4   :  { %v5035_v19 = vadd.f32 8.0, %v1547_v17  ;;  %v5037_v51 = vadd.f32 8.0, %v1546_v48  ;;  %v1541_v60 = vsub.f32 %v1521_v42, %v1529_v18 }
 0x9f6   :  { %v1555_v20 = vmul.f32 0.0033333334, %v5035_v19  ;;  %v5041_v54 = vmul.f32 0.0033333334, %v5037_v51 }
 0x9f7   :  { %v1527_v45 = vpop.permute.xlu1 %1526  ;;  %v1519_v52 = vpop.permute.xlu0 %1518 }
 0x9f8   :  { %v1559_v59 = vadd.f32 %v1555_v20, %v4996_v40  ;;  %v1540_v1 = vsub.f32 %v1519_v52, %v1527_v45  ;;  %v1558_v8 = vadd.f32 %v5041_v54, %v5003_v43 }
 0x9fa   :  { %1572 = vrot.lane.b32.xlu1 %v1559_v59, %s4414_s6  ;;  %1564 = vrot.lane.b32.xlu0 %v1559_v59, %s4413_s30 }
 0x9fb   :  { %v1537_v3 = vpop.permute.xlu1 %1536  ;;  %v1535_v5 = vpop.permute.xlu0 %1534 }
 0x9fc   :  { %v1545_v6 = vmul.f32 %v1541_v60, %v1537_v3  ;;  %v1544_v7 = vmul.f32 %v1540_v1, %v1535_v5 }
 0x9fe   :  { %v1549_v9 = vsub.f32 %v1545_v6, %v5016_v47  ;;  %v1548_v10 = vsub.f32 %v1544_v7, %v5023_v14  ;;  %1570 = vrot.lane.b32.xlu1 %v1558_v8, %s4414_s6  ;;  %1562 = vrot.lane.b32.xlu0 %v1558_v8, %s4413_s30 }
 0xa00   :  { %v5052_v11 = vadd.f32 8.0, %v1549_v9  ;;  %v5054_v12 = vadd.f32 8.0, %v1548_v10 }
 0xa02   :  { %v1557_v21 = vmul.f32 0.0033333334, %v5052_v11  ;;  %1580 = vrot.lane.b32.xlu1 %v1559_v59, %s4415_s2  ;;  %1578 = vrot.lane.b32.xlu0 %v1558_v8, %s4415_s2  ;;  %v1556_v26 = vmul.f32 0.0033333334, %v5054_v12 }
 0xa04   :  { %v1561_v28 = vadd.f32 %v1557_v21, %v5016_v47  ;;  %v1560_v49 = vadd.f32 %v1556_v26, %v5023_v14 }
 0xa06   :  { %1576 = vrot.lane.b32.xlu1 %v1561_v28, %s4414_s6  ;;  %1568 = vrot.lane.b32.xlu0 %v1561_v28, %s4413_s30 }
 0xa0a   :  { %1574 = vrot.lane.b32.xlu1 %v1560_v49, %s4414_s6  ;;  %1566 = vrot.lane.b32.xlu0 %v1560_v49, %s4413_s30 }
 0xa0e   :  { %1584 = vrot.lane.b32.xlu1 %v1561_v28, %s4415_s2  ;;  %1582 = vrot.lane.b32.xlu0 %v1560_v49, %s4415_s2 }
 0xa6c   :  { %v1573_v46 = vpop.permute.xlu1 %1572  ;;  %v1565_v56 = vpop.permute.xlu0 %1564 }
 0xa6d   :  { %v1587_v22 = vsub.f32 %v1565_v56, %v1573_v46 }
 0xa70   :  { %v1571_v39 = vpop.permute.xlu1 %1570  ;;  %v1563_v62 = vpop.permute.xlu0 %1562 }
 0xa71   :  { %v1586_v23 = vsub.f32 %v1563_v62, %v1571_v39 }
 0xa74   :  { %v1581_v25 = vpop.permute.xlu1 %1580  ;;  %v1579_v27 = vpop.permute.xlu0 %1578 }
 0xa75   :  { %v1591_v50 = vmul.f32 %v1587_v22, %v1581_v25  ;;  %v1590_v29 = vmul.f32 %v1586_v23, %v1579_v27 }
 0xa77   :  { %v1595_v57 = vsub.f32 %v1591_v50, %v1559_v59  ;;  %v1594_v53 = vsub.f32 %v1590_v29, %v1558_v8 }
 0xa78   :  { %v1577_v30 = vpop.permute.xlu1 %1576  ;;  %v1569_v63 = vpop.permute.xlu0 %1568 }
 0xa79   :  { %v5068_v24 = vadd.f32 8.0, %v1595_v57  ;;  %v5070_v44 = vadd.f32 8.0, %v1594_v53  ;;  %v1589_v33 = vsub.f32 %v1569_v63, %v1577_v30 }
 0xa7b   :  { %v1603_v58 = vmul.f32 0.01, %v5068_v24  ;;  %v1602_v31 = vmul.f32 0.01, %v5070_v44  ;;  %v1654_v46 = vsub.f32 %v5037_v51, %v5070_v44 }
 0xa7c   :  { %v1575_v2 = vpop.permute.xlu1 %1574  ;;  %v1567_v0 = vpop.permute.xlu0 %1566 }
 0xa7d   :  { %v1607_v32 = vsub.f32 %v1603_v58, %v1555_v20  ;;  %v1588_v4 = vsub.f32 %v1567_v0, %v1575_v2  ;;  %v1606_v55 = vsub.f32 %v1602_v31, %v5041_v54 }
 0xa7f   :  { %v1611_v13 = vadd.f32 %v1607_v32, %v4996_v40  ;;  %v1610_v37 = vadd.f32 %v1606_v55, %v5003_v43 }
 0xa80   :  { %v1585_v34 = vpop.permute.xlu1 %1584  ;;  %v1583_v35 = vpop.permute.xlu0 %1582 }
 0xa81   :  { %v1593_v36 = vmul.f32 %v1589_v33, %v1585_v34  ;;  %v1592_v15 = vmul.f32 %v1588_v4, %v1583_v35  ;;  %1624 = vrot.lane.b32.xlu1 %v1611_v13, %s4414_s6  ;;  %1616 = vrot.lane.b32.xlu0 %v1611_v13, %s4413_s30 }
 0xa83   :  { %v1597_v61 = vsub.f32 %v1593_v36, %v1561_v28  ;;  %v1596_v16 = vsub.f32 %v1592_v15, %v1560_v49  ;;  %v1655_v28 = vsub.f32 %v5035_v19, %v5068_v24 }
 0xa85   :  { %v5079_v38 = vadd.f32 8.0, %v1597_v61  ;;  %v5081_v41 = vadd.f32 8.0, %v1596_v16  ;;  %1622 = vrot.lane.b32.xlu1 %v1610_v37, %s4414_s6  ;;  %1614 = vrot.lane.b32.xlu0 %v1610_v37, %s4413_s30 }
 0xa87   :  { %v1605_v17 = vmul.f32 0.01, %v5079_v38  ;;  %v1604_v48 = vmul.f32 0.01, %v5081_v41  ;;  %v1657_v32 = vsub.f32 %v5052_v11, %v5079_v38  ;;  %v1656_v4 = vsub.f32 %v5054_v12, %v5081_v41 }
 0xa89   :  { %1632 = vrot.lane.b32.xlu1 %v1611_v13, %s4415_s2  ;;  %1630 = vrot.lane.b32.xlu0 %v1610_v37, %s4415_s2  ;;  %v1609_v18 = vsub.f32 %v1605_v17, %v1557_v21  ;;  %v1608_v20 = vsub.f32 %v1604_v48, %v1556_v26 }
 0xa8b   :  { %v1613_v42 = vadd.f32 %v1609_v18, %v5016_v47  ;;  %v1612_v45 = vadd.f32 %v1608_v20, %v5023_v14 }
 0xa8d   :  { %1628 = vrot.lane.b32.xlu1 %v1613_v42, %s4414_s6  ;;  %1620 = vrot.lane.b32.xlu0 %v1613_v42, %s4413_s30 }
 0xa91   :  { %1626 = vrot.lane.b32.xlu1 %v1612_v45, %s4414_s6  ;;  %1618 = vrot.lane.b32.xlu0 %v1612_v45, %s4413_s30 }
 0xa95   :  { %1636 = vrot.lane.b32.xlu1 %v1613_v42, %s4415_s2  ;;  %1634 = vrot.lane.b32.xlu0 %v1612_v45, %s4415_s2 }
 0xaf3   :  { %v1625_v52 = vpop.permute.xlu1 %1624  ;;  %v1617_v54 = vpop.permute.xlu0 %1616 }
 0xaf4   :  { %v1639_v1 = vsub.f32 %v1617_v54, %v1625_v52 }
 0xaf7   :  { %v1623_v59 = vpop.permute.xlu1 %1622  ;;  %v1615_v60 = vpop.permute.xlu0 %1614 }
 0xaf8   :  { %v1638_v3 = vsub.f32 %v1615_v60, %v1623_v59 }
 0xafb   :  { %v1633_v5 = vpop.permute.xlu1 %1632  ;;  %v1631_v6 = vpop.permute.xlu0 %1630 }
 0xafc   :  { %v1643_v7 = vmul.f32 %v1639_v1, %v1633_v5  ;;  %v1642_v8 = vmul.f32 %v1638_v3, %v1631_v6 }
 0xafe   :  { %v1647_v9 = vsub.f32 %v1643_v7, %v1611_v13  ;;  %v1646_v10 = vsub.f32 %v1642_v8, %v1610_v37 }
 0xaff   :  { %v1629_v21 = vpop.permute.xlu1 %1628  ;;  %v1621_v26 = vpop.permute.xlu0 %1620 }
 0xb00   :  { %v1651_v49 = vadd.f32 8.0, %v1647_v9  ;;  %v1650_v56 = vadd.f32 8.0, %v1646_v10  ;;  %v1641_v50 = vsub.f32 %v1621_v26, %v1629_v21 }
 0xb02   :  { %v1659_v39 = vadd.f32 %v1655_v28, %v1651_v49  ;;  %v1658_v62 = vadd.f32 %v1654_v46, %v1650_v56  ;;  %v1711_v18 = vadd.f32 %v1651_v49, %v5068_v24 }
 0xb03   :  { %v1627_v22 = vpop.permute.xlu1 %1626  ;;  %v1619_v23 = vpop.permute.xlu0 %1618 }
 0xb04   :  { %v1663_v25 = vmul.f32 0.01, %v1659_v39  ;;  %v1662_v27 = vmul.f32 0.01, %v1658_v62  ;;  %v1640_v29 = vsub.f32 %v1619_v23, %v1627_v22  ;;  %v1715_v59 = vmul.f32 3.0, %v1711_v18 }
 0xb06   :  { %v1667_v57 = vadd.f32 %v1663_v25, %v4996_v40  ;;  %v1666_v0 = vadd.f32 %v1662_v27, %v5003_v43  ;;  %v1719_v9 = vadd.f32 %v1715_v59, %v5035_v19 }
 0xb07   :  { %v1637_v53 = vpop.permute.xlu1 %1636  ;;  %v1635_v30 = vpop.permute.xlu0 %1634 }
 0xb08   :  { %v1645_v63 = vmul.f32 %v1641_v50, %v1637_v53  ;;  %v1644_v58 = vmul.f32 %v1640_v29, %v1635_v30  ;;  %1680 = vrot.lane.b32.xlu1 %v1667_v57, %s4414_s6  ;;  %1672 = vrot.lane.b32.xlu0 %v1667_v57, %s4413_s30 }
 0xb0a   :  { %v1649_v31 = vsub.f32 %v1645_v63, %v1613_v42  ;;  %v1648_v2 = vsub.f32 %v1644_v58, %v1612_v45  ;;  %v1710_v42 = vadd.f32 %v1650_v56, %v5070_v44 }
 0xb0c   :  { %v1653_v33 = vadd.f32 8.0, %v1649_v31  ;;  %v1652_v13 = vadd.f32 8.0, %v1648_v2  ;;  %1678 = vrot.lane.b32.xlu1 %v1666_v0, %s4414_s6  ;;  %1670 = vrot.lane.b32.xlu0 %v1666_v0, %s4413_s30  ;;  %v1714_v60 = vmul.f32 3.0, %v1710_v42 }
 0xb0e   :  { %v1661_v55 = vadd.f32 %v1657_v32, %v1653_v33  ;;  %v1660_v34 = vadd.f32 %v1656_v4, %v1652_v13  ;;  %v1718_v21 = vadd.f32 %v1714_v60, %v5037_v51  ;;  %v1713_v46 = vadd.f32 %v1653_v33, %v5079_v38 }
 0xb0f   :  { %v1712_v56 = vadd.f32 %v1652_v13, %v5081_v41 }
 0xb10   :  { %v1665_v35 = vmul.f32 0.01, %v1661_v55  ;;  %1688 = vrot.lane.b32.xlu1 %v1667_v57, %s4415_s2  ;;  %1686 = vrot.lane.b32.xlu0 %v1666_v0, %s4415_s2  ;;  %v1664_v36 = vmul.f32 0.01, %v1660_v34  ;;  %v1717_v50 = vmul.f32 3.0, %v1713_v46 }
 0xb11   :  { %v1716_v51 = vmul.f32 3.0, %v1712_v56 }
 0xb12   :  { %v1669_v15 = vadd.f32 %v1665_v35, %v5016_v47  ;;  %v1668_v61 = vadd.f32 %v1664_v36, %v5023_v14  ;;  %v1721_v53 = vadd.f32 %v1717_v50, %v5052_v11 }
 0xb13   :  { %v1720_v63 = vadd.f32 %v1716_v51, %v5054_v12 }
 0xb14   :  { %1684 = vrot.lane.b32.xlu1 %v1669_v15, %s4414_s6  ;;  %1676 = vrot.lane.b32.xlu0 %v1669_v15, %s4413_s30 }
 0xb18   :  { %1682 = vrot.lane.b32.xlu1 %v1668_v61, %s4414_s6  ;;  %1674 = vrot.lane.b32.xlu0 %v1668_v61, %s4413_s30 }
 0xb1c   :  { %1692 = vrot.lane.b32.xlu1 %v1669_v15, %s4415_s2  ;;  %1690 = vrot.lane.b32.xlu0 %v1668_v61, %s4415_s2 }
 0xb7a   :  { %v1681_v16 = vpop.permute.xlu1 %1680  ;;  %v1673_v37 = vpop.permute.xlu0 %1672 }
 0xb7b   :  { %v1695_v20 = vsub.f32 %v1673_v37, %v1681_v16 }
 0xb7e   :  { %v1679_v17 = vpop.permute.xlu1 %1678  ;;  %v1671_v48 = vpop.permute.xlu0 %1670 }
 0xb7f   :  { %v1694_v45 = vsub.f32 %v1671_v48, %v1679_v17 }
 0xb82   :  { %v1689_v52 = vpop.permute.xlu1 %1688  ;;  %v1687_v54 = vpop.permute.xlu0 %1686 }
 0xb83   :  { %v1699_v1 = vmul.f32 %v1695_v20, %v1689_v52  ;;  %v1698_v3 = vmul.f32 %v1694_v45, %v1687_v54 }
 0xb85   :  { %v1703_v5 = vsub.f32 %v1699_v1, %v1667_v57  ;;  %v1702_v6 = vsub.f32 %v1698_v3, %v1666_v0 }
 0xb86   :  { %v1685_v7 = vpop.permute.xlu1 %1684  ;;  %v1677_v8 = vpop.permute.xlu0 %1676 }
 0xb87   :  { %v1707_v10 = vadd.f32 8.0, %v1703_v5  ;;  %v1706_v24 = vadd.f32 8.0, %v1702_v6  ;;  %v1697_v23 = vsub.f32 %v1677_v8, %v1685_v7 }
 0xb89   :  { %v1723_v26 = vadd.f32 %v1719_v9, %v1707_v10  ;;  %v1722_v44 = vadd.f32 %v1718_v21, %v1706_v24 }
 0xb8a   :  { %v1683_v28 = vpop.permute.xlu1 %1682  ;;  %v1675_v49 = vpop.permute.xlu0 %1674 }
 0xb8b   :  { %v1727_v39 = vmul.f32 0.00125, %v1723_v26  ;;  %v1726_v22 = vmul.f32 0.00125, %v1722_v44  ;;  %v1696_v25 = vsub.f32 %v1675_v49, %v1683_v28 }
 0xb8d   :  { %v5128_v62 = vadd.f32 %v1727_v39, %v4996_v40  ;;  %v5135_v38 = vadd.f32 %v1726_v22, %v5003_v43 }
 0xb8e   :  { %v1693_v19 = vpop.permute.xlu1 %1692  ;;  %v1691_v27 = vpop.permute.xlu0 %1690 }
 0xb8f   :  { %v1701_v29 = vmul.f32 %v1697_v23, %v1693_v19  ;;  %v1700_v57 = vmul.f32 %v1696_v25, %v1691_v27  ;;  %1744 = vrot.lane.b32.xlu1 %v5128_v62, %s4414_s6  ;;  %1736 = vrot.lane.b32.xlu0 %v5128_v62, %s4413_s30 }
 0xb91   :  { %v1705_v40 = vsub.f32 %v1701_v29, %v1669_v15  ;;  %v1704_v41 = vsub.f32 %v1700_v57, %v1668_v61 }
 0xb93   :  { %v1709_v30 = vadd.f32 8.0, %v1705_v40  ;;  %v1708_v58 = vadd.f32 8.0, %v1704_v41  ;;  %1742 = vrot.lane.b32.xlu1 %v5135_v38, %s4414_s6  ;;  %1734 = vrot.lane.b32.xlu0 %v5135_v38, %s4413_s30 }
 0xb95   :  { %v1725_v31 = vadd.f32 %v1721_v53, %v1709_v30  ;;  %v1724_v2 = vadd.f32 %v1720_v63, %v1708_v58 }
 0xb97   :  { %v1729_v0 = vmul.f32 0.00125, %v1725_v31  ;;  %1752 = vrot.lane.b32.xlu1 %v5128_v62, %s4415_s2  ;;  %1750 = vrot.lane.b32.xlu0 %v5135_v38, %s4415_s2  ;;  %v1728_v11 = vmul.f32 0.00125, %v1724_v2 }
 0xb99   :  { %v5148_v43 = vadd.f32 %v1729_v0, %v5016_v47  ;;  %v5155_v12 = vadd.f32 %v1728_v11, %v5023_v14 }
 0xb9b   :  { %1748 = vrot.lane.b32.xlu1 %v5148_v43, %s4414_s6  ;;  %1740 = vrot.lane.b32.xlu0 %v5148_v43, %s4413_s30 }
 0xb9f   :  { %1746 = vrot.lane.b32.xlu1 %v5155_v12, %s4414_s6  ;;  %1738 = vrot.lane.b32.xlu0 %v5155_v12, %s4413_s30 }
 0xba3   :  { %1756 = vrot.lane.b32.xlu1 %v5148_v43, %s4415_s2  ;;  %1754 = vrot.lane.b32.xlu0 %v5155_v12, %s4415_s2 }
 0xc01   :  { %v1745_v47 = vpop.permute.xlu1 %1744  ;;  %v1737_v32 = vpop.permute.xlu0 %1736 }
 0xc02   :  { %v1759_v13 = vsub.f32 %v1737_v32, %v1745_v47 }
 0xc05   :  { %v1743_v33 = vpop.permute.xlu1 %1742  ;;  %v1735_v4 = vpop.permute.xlu0 %1734 }
 0xc06   :  { %v1758_v55 = vsub.f32 %v1735_v4, %v1743_v33 }
 0xc09   :  { %v1753_v14 = vpop.permute.xlu1 %1752  ;;  %v1751_v34 = vpop.permute.xlu0 %1750 }
 0xc0a   :  { %v1763_v35 = vmul.f32 %v1759_v13, %v1753_v14  ;;  %v1762_v36 = vmul.f32 %v1758_v55, %v1751_v34 }
 0xc0c   :  { %v1767_v15 = vsub.f32 %v1763_v35, %v5128_v62  ;;  %v1766_v61 = vsub.f32 %v1762_v36, %v5135_v38 }
 0xc0d   :  { %v1749_v16 = vpop.permute.xlu1 %1748  ;;  %v1741_v37 = vpop.permute.xlu0 %1740 }
 0xc0e   :  { %v5167_v17 = vadd.f32 8.0, %v1767_v15  ;;  %v5169_v48 = vadd.f32 8.0, %v1766_v61  ;;  %v1761_v54 = vsub.f32 %v1741_v37, %v1749_v16 }
 0xc10   :  { %v1775_v18 = vmul.f32 0.0033333334, %v5167_v17  ;;  %v5173_v45 = vmul.f32 0.0033333334, %v5169_v48 }
 0xc11   :  { %v1747_v42 = vpop.permute.xlu1 %1746  ;;  %v1739_v20 = vpop.permute.xlu0 %1738 }
 0xc12   :  { %v1779_v52 = vadd.f32 %v1775_v18, %v5128_v62  ;;  %v1760_v59 = vsub.f32 %v1739_v20, %v1747_v42  ;;  %v1778_v6 = vadd.f32 %v5173_v45, %v5135_v38 }
 0xc14   :  { %1792 = vrot.lane.b32.xlu1 %v1779_v52, %s4414_s6  ;;  %1784 = vrot.lane.b32.xlu0 %v1779_v52, %s4413_s30 }
 0xc15   :  { %v1757_v60 = vpop.permute.xlu1 %1756  ;;  %v1755_v1 = vpop.permute.xlu0 %1754 }
 0xc16   :  { %v1765_v3 = vmul.f32 %v1761_v54, %v1757_v60  ;;  %v1764_v5 = vmul.f32 %v1760_v59, %v1755_v1 }
 0xc18   :  { %v1769_v7 = vsub.f32 %v1765_v3, %v5148_v43  ;;  %v1768_v8 = vsub.f32 %v1764_v5, %v5155_v12  ;;  %1790 = vrot.lane.b32.xlu1 %v1778_v6, %s4414_s6  ;;  %1782 = vrot.lane.b32.xlu0 %v1778_v6, %s4413_s30 }
 0xc1a   :  { %v5184_v9 = vadd.f32 8.0, %v1769_v7  ;;  %v5186_v10 = vadd.f32 8.0, %v1768_v8 }
 0xc1c   :  { %v1777_v21 = vmul.f32 0.0033333334, %v5184_v9  ;;  %1800 = vrot.lane.b32.xlu1 %v1779_v52, %s4415_s2  ;;  %1798 = vrot.lane.b32.xlu0 %v1778_v6, %s4415_s2  ;;  %v1776_v24 = vmul.f32 0.0033333334, %v5186_v10 }
 0xc1e   :  { %v1781_v26 = vadd.f32 %v1777_v21, %v5148_v43  ;;  %v1780_v44 = vadd.f32 %v1776_v24, %v5155_v12 }
 0xc20   :  { %1796 = vrot.lane.b32.xlu1 %v1781_v26, %s4414_s6  ;;  %1788 = vrot.lane.b32.xlu0 %v1781_v26, %s4413_s30 }
 0xc24   :  { %1794 = vrot.lane.b32.xlu1 %v1780_v44, %s4414_s6  ;;  %1786 = vrot.lane.b32.xlu0 %v1780_v44, %s4413_s30 }
 0xc28   :  { %1804 = vrot.lane.b32.xlu1 %v1781_v26, %s4415_s2  ;;  %1802 = vrot.lane.b32.xlu0 %v1780_v44, %s4415_s2 }
 0xc86   :  { %v1793_v28 = vpop.permute.xlu1 %1792  ;;  %v1785_v49 = vpop.permute.xlu0 %1784 }
 0xc87   :  { %v1807_v39 = vsub.f32 %v1785_v49, %v1793_v28 }
 0xc8a   :  { %v1791_v46 = vpop.permute.xlu1 %1790  ;;  %v1783_v56 = vpop.permute.xlu0 %1782 }
 0xc8b   :  { %v1806_v22 = vsub.f32 %v1783_v56, %v1791_v46 }
 0xc8e   :  { %v1801_v23 = vpop.permute.xlu1 %1800  ;;  %v1799_v25 = vpop.permute.xlu0 %1798 }
 0xc8f   :  { %v1811_v19 = vmul.f32 %v1807_v39, %v1801_v23  ;;  %v1810_v27 = vmul.f32 %v1806_v22, %v1799_v25 }
 0xc91   :  { %v1815_v50 = vsub.f32 %v1811_v19, %v1779_v52  ;;  %v1814_v51 = vsub.f32 %v1810_v27, %v1778_v6 }
 0xc92   :  { %v1797_v29 = vpop.permute.xlu1 %1796  ;;  %v1789_v57 = vpop.permute.xlu0 %1788 }
 0xc93   :  { %v5200_v40 = vadd.f32 8.0, %v1815_v50  ;;  %v5202_v41 = vadd.f32 8.0, %v1814_v51  ;;  %v1809_v2 = vsub.f32 %v1789_v57, %v1797_v29 }
 0xc95   :  { %v1823_v53 = vmul.f32 0.01, %v5200_v40  ;;  %v1822_v30 = vmul.f32 0.01, %v5202_v41  ;;  %v1874_v28 = vsub.f32 %v5169_v48, %v5202_v41 }
 0xc96   :  { %v1795_v63 = vpop.permute.xlu1 %1794  ;;  %v1787_v58 = vpop.permute.xlu0 %1786 }
 0xc97   :  { %v1827_v31 = vsub.f32 %v1823_v53, %v1775_v18  ;;  %v1808_v0 = vsub.f32 %v1787_v58, %v1795_v63  ;;  %v1826_v47 = vsub.f32 %v1822_v30, %v5173_v45 }
 0xc99   :  { %v1831_v11 = vadd.f32 %v1827_v31, %v5128_v62  ;;  %v1830_v34 = vadd.f32 %v1826_v47, %v5135_v38 }
 0xc9a   :  { %v1805_v32 = vpop.permute.xlu1 %1804  ;;  %v1803_v33 = vpop.permute.xlu0 %1802 }
 0xc9b   :  { %v1813_v4 = vmul.f32 %v1809_v2, %v1805_v32  ;;  %v1812_v13 = vmul.f32 %v1808_v0, %v1803_v33  ;;  %1844 = vrot.lane.b32.xlu1 %v1831_v11, %s4414_s6  ;;  %1836 = vrot.lane.b32.xlu0 %v1831_v11, %s4413_s30 }
 0xc9d   :  { %v1817_v55 = vsub.f32 %v1813_v4, %v1781_v26  ;;  %v1816_v14 = vsub.f32 %v1812_v13, %v1780_v44  ;;  %v1875_v26 = vsub.f32 %v5167_v17, %v5200_v40 }
 0xc9f   :  { %v5211_v35 = vadd.f32 8.0, %v1817_v55  ;;  %v5213_v36 = vadd.f32 8.0, %v1816_v14  ;;  %1842 = vrot.lane.b32.xlu1 %v1830_v34, %s4414_s6  ;;  %1834 = vrot.lane.b32.xlu0 %v1830_v34, %s4413_s30 }
 0xca1   :  { %v1825_v15 = vmul.f32 0.01, %v5211_v35  ;;  %v1824_v61 = vmul.f32 0.01, %v5213_v36  ;;  %v1877_v31 = vsub.f32 %v5184_v9, %v5211_v35  ;;  %v1876_v0 = vsub.f32 %v5186_v10, %v5213_v36 }
 0xca3   :  { %1852 = vrot.lane.b32.xlu1 %v1831_v11, %s4415_s2  ;;  %1850 = vrot.lane.b32.xlu0 %v1830_v34, %s4415_s2  ;;  %v1829_v16 = vsub.f32 %v1825_v15, %v1777_v21  ;;  %v1828_v18 = vsub.f32 %v1824_v61, %v1776_v24 }
 0xca5   :  { %v1833_v37 = vadd.f32 %v1829_v16, %v5148_v43  ;;  %v1832_v42 = vadd.f32 %v1828_v18, %v5155_v12 }
 0xca7   :  { %1848 = vrot.lane.b32.xlu1 %v1833_v37, %s4414_s6  ;;  %1840 = vrot.lane.b32.xlu0 %v1833_v37, %s4413_s30 }
 0xcab   :  { %1846 = vrot.lane.b32.xlu1 %v1832_v42, %s4414_s6  ;;  %1838 = vrot.lane.b32.xlu0 %v1832_v42, %s4413_s30 }
 0xcaf   :  { %1856 = vrot.lane.b32.xlu1 %v1833_v37, %s4415_s2  ;;  %1854 = vrot.lane.b32.xlu0 %v1832_v42, %s4415_s2 }
 0xd0d   :  { %v1845_v20 = vpop.permute.xlu1 %1844  ;;  %v1837_v45 = vpop.permute.xlu0 %1836 }
 0xd0e   :  { %v1859_v59 = vsub.f32 %v1837_v45, %v1845_v20 }
 0xd11   :  { %v1843_v52 = vpop.permute.xlu1 %1842  ;;  %v1835_v54 = vpop.permute.xlu0 %1834 }
 0xd12   :  { %v1858_v60 = vsub.f32 %v1835_v54, %v1843_v52 }
 0xd15   :  { %v1853_v1 = vpop.permute.xlu1 %1852  ;;  %v1851_v3 = vpop.permute.xlu0 %1850 }
 0xd16   :  { %v1863_v5 = vmul.f32 %v1859_v59, %v1853_v1  ;;  %v1862_v6 = vmul.f32 %v1858_v60, %v1851_v3 }
 0xd18   :  { %v1867_v7 = vsub.f32 %v1863_v5, %v1831_v11  ;;  %v1866_v8 = vsub.f32 %v1862_v6, %v1830_v34 }
 0xd19   :  { %v1849_v21 = vpop.permute.xlu1 %1848  ;;  %v1841_v24 = vpop.permute.xlu0 %1840 }
 0xd1a   :  { %v1871_v44 = vadd.f32 8.0, %v1867_v7  ;;  %v1870_v49 = vadd.f32 8.0, %v1866_v8  ;;  %v1861_v19 = vsub.f32 %v1841_v24, %v1849_v21 }
 0xd1c   :  { %v1879_v46 = vadd.f32 %v1875_v26, %v1871_v44  ;;  %v1878_v56 = vadd.f32 %v1874_v28, %v1870_v49  ;;  %v1931_v16 = vadd.f32 %v1871_v44, %v5200_v40 }
 0xd1d   :  { %v1847_v39 = vpop.permute.xlu1 %1846  ;;  %v1839_v22 = vpop.permute.xlu0 %1838 }
 0xd1e   :  { %v1883_v23 = vmul.f32 0.01, %v1879_v46  ;;  %v1882_v25 = vmul.f32 0.01, %v1878_v56  ;;  %v1860_v27 = vsub.f32 %v1839_v22, %v1847_v39  ;;  %v1935_v52 = vmul.f32 3.0, %v1931_v16 }
 0xd20   :  { %v1887_v50 = vadd.f32 %v1883_v23, %v5128_v62  ;;  %v1886_v58 = vadd.f32 %v1882_v25, %v5135_v38  ;;  %v1939_v7 = vadd.f32 %v1935_v52, %v5167_v17 }
 0xd21   :  { %v1857_v51 = vpop.permute.xlu1 %1856  ;;  %v1855_v29 = vpop.permute.xlu0 %1854 }
 0xd22   :  { %v1865_v57 = vmul.f32 %v1861_v19, %v1857_v51  ;;  %v1864_v53 = vmul.f32 %v1860_v27, %v1855_v29  ;;  %1900 = vrot.lane.b32.xlu1 %v1887_v50, %s4414_s6  ;;  %1892 = vrot.lane.b32.xlu0 %v1887_v50, %s4413_s30 }
 0xd24   :  { %v1869_v30 = vsub.f32 %v1865_v57, %v1833_v37  ;;  %v1868_v63 = vsub.f32 %v1864_v53, %v1832_v42  ;;  %v1930_v37 = vadd.f32 %v1870_v49, %v5202_v41 }
 0xd26   :  { %v1873_v2 = vadd.f32 8.0, %v1869_v30  ;;  %v1872_v11 = vadd.f32 8.0, %v1868_v63  ;;  %1898 = vrot.lane.b32.xlu1 %v1886_v58, %s4414_s6  ;;  %1890 = vrot.lane.b32.xlu0 %v1886_v58, %s4413_s30  ;;  %v1934_v54 = vmul.f32 3.0, %v1930_v37 }
 0xd28   :  { %v1881_v47 = vadd.f32 %v1877_v31, %v1873_v2  ;;  %v1880_v32 = vadd.f32 %v1876_v0, %v1872_v11  ;;  %v1938_v21 = vadd.f32 %v1934_v54, %v5169_v48  ;;  %v1933_v28 = vadd.f32 %v1873_v2, %v5211_v35 }
 0xd29   :  { %v1932_v49 = vadd.f32 %v1872_v11, %v5213_v36 }
 0xd2a   :  { %v1885_v33 = vmul.f32 0.01, %v1881_v47  ;;  %1908 = vrot.lane.b32.xlu1 %v1887_v50, %s4415_s2  ;;  %1906 = vrot.lane.b32.xlu0 %v1886_v58, %s4415_s2  ;;  %v1884_v4 = vmul.f32 0.01, %v1880_v32  ;;  %v1937_v19 = vmul.f32 3.0, %v1933_v28 }
 0xd2b   :  { %v1936_v48 = vmul.f32 3.0, %v1932_v49 }
 0xd2c   :  { %v1889_v13 = vadd.f32 %v1885_v33, %v5148_v43  ;;  %v1888_v55 = vadd.f32 %v1884_v4, %v5155_v12  ;;  %v1941_v51 = vadd.f32 %v1937_v19, %v5184_v9 }
 0xd2d   :  { %v1940_v57 = vadd.f32 %v1936_v48, %v5186_v10 }
 0xd2e   :  { %1904 = vrot.lane.b32.xlu1 %v1889_v13, %s4414_s6  ;;  %1896 = vrot.lane.b32.xlu0 %v1889_v13, %s4413_s30 }
 0xd32   :  { %1902 = vrot.lane.b32.xlu1 %v1888_v55, %s4414_s6  ;;  %1894 = vrot.lane.b32.xlu0 %v1888_v55, %s4413_s30 }
 0xd36   :  { %1912 = vrot.lane.b32.xlu1 %v1889_v13, %s4415_s2  ;;  %1910 = vrot.lane.b32.xlu0 %v1888_v55, %s4415_s2 }
 0xd94   :  { %v1901_v14 = vpop.permute.xlu1 %1900  ;;  %v1893_v34 = vpop.permute.xlu0 %1892 }
 0xd95   :  { %v1915_v18 = vsub.f32 %v1893_v34, %v1901_v14 }
 0xd98   :  { %v1899_v15 = vpop.permute.xlu1 %1898  ;;  %v1891_v61 = vpop.permute.xlu0 %1890 }
 0xd99   :  { %v1914_v42 = vsub.f32 %v1891_v61, %v1899_v15 }
 0xd9c   :  { %v1909_v20 = vpop.permute.xlu1 %1908  ;;  %v1907_v45 = vpop.permute.xlu0 %1906 }
 0xd9d   :  { %v1919_v59 = vmul.f32 %v1915_v18, %v1909_v20  ;;  %v1918_v60 = vmul.f32 %v1914_v42, %v1907_v45 }
 0xd9f   :  { %v1923_v1 = vsub.f32 %v1919_v59, %v1887_v50  ;;  %v1922_v3 = vsub.f32 %v1918_v60, %v1886_v58 }
 0xda0   :  { %v1905_v5 = vpop.permute.xlu1 %1904  ;;  %v1897_v6 = vpop.permute.xlu0 %1896 }
 0xda1   :  { %v1927_v8 = vadd.f32 8.0, %v1923_v1  ;;  %v1926_v40 = vadd.f32 8.0, %v1922_v3  ;;  %v1917_v22 = vsub.f32 %v1897_v6, %v1905_v5 }
 0xda3   :  { %v1943_v24 = vadd.f32 %v1939_v7, %v1927_v8  ;;  %v1942_v41 = vadd.f32 %v1938_v21, %v1926_v40 }
 0xda4   :  { %v1903_v26 = vpop.permute.xlu1 %1902  ;;  %v1895_v44 = vpop.permute.xlu0 %1894 }
 0xda5   :  { %v1947_v46 = vmul.f32 0.00125, %v1943_v24  ;;  %v1946_v39 = vmul.f32 0.00125, %v1942_v41  ;;  %v1916_v23 = vsub.f32 %v1895_v44, %v1903_v26 }
 0xda7   :  { %v5260_v56 = vadd.f32 %v1947_v46, %v5128_v62  ;;  %v5267_v35 = vadd.f32 %v1946_v39, %v5135_v38 }
 0xda8   :  { %v1913_v17 = vpop.permute.xlu1 %1912  ;;  %v1911_v25 = vpop.permute.xlu0 %1910 }
 0xda9   :  { %v1921_v27 = vmul.f32 %v1917_v22, %v1913_v17  ;;  %v1920_v50 = vmul.f32 %v1916_v23, %v1911_v25  ;;  %1964 = vrot.lane.b32.xlu1 %v5260_v56, %s4414_s6  ;;  %1956 = vrot.lane.b32.xlu0 %v5260_v56, %s4413_s30 }
 0xdab   :  { %v1925_v62 = vsub.f32 %v1921_v27, %v1889_v13  ;;  %v1924_v36 = vsub.f32 %v1920_v50, %v1888_v55 }
 0xdad   :  { %v1929_v29 = vadd.f32 8.0, %v1925_v62  ;;  %v1928_v53 = vadd.f32 8.0, %v1924_v36  ;;  %1962 = vrot.lane.b32.xlu1 %v5267_v35, %s4414_s6  ;;  %1954 = vrot.lane.b32.xlu0 %v5267_v35, %s4413_s30 }
 0xdaf   :  { %v1945_v30 = vadd.f32 %v1941_v51, %v1929_v29  ;;  %v1944_v63 = vadd.f32 %v1940_v57, %v1928_v53 }
 0xdb1   :  { %v1949_v58 = vmul.f32 0.00125, %v1945_v30  ;;  %1972 = vrot.lane.b32.xlu1 %v5260_v56, %s4415_s2  ;;  %1970 = vrot.lane.b32.xlu0 %v5267_v35, %s4415_s2  ;;  %v1948_v9 = vmul.f32 0.00125, %v1944_v63 }
 0xdb3   :  { %v5280_v38 = vadd.f32 %v1949_v58, %v5148_v43  ;;  %v5287_v10 = vadd.f32 %v1948_v9, %v5155_v12 }
 0xdb5   :  { %1968 = vrot.lane.b32.xlu1 %v5280_v38, %s4414_s6  ;;  %1960 = vrot.lane.b32.xlu0 %v5280_v38, %s4413_s30 }
 0xdb9   :  { %1966 = vrot.lane.b32.xlu1 %v5287_v10, %s4414_s6  ;;  %1958 = vrot.lane.b32.xlu0 %v5287_v10, %s4413_s30 }
 0xdbd   :  { %1976 = vrot.lane.b32.xlu1 %v5280_v38, %s4415_s2  ;;  %1974 = vrot.lane.b32.xlu0 %v5287_v10, %s4415_s2 }
 0xe1b   :  { %v1965_v43 = vpop.permute.xlu1 %1964  ;;  %v1957_v31 = vpop.permute.xlu0 %1956 }
 0xe1c   :  { %v1979_v11 = vsub.f32 %v1957_v31, %v1965_v43 }
 0xe1f   :  { %v1963_v2 = vpop.permute.xlu1 %1962  ;;  %v1955_v0 = vpop.permute.xlu0 %1954 }
 0xe20   :  { %v1978_v47 = vsub.f32 %v1955_v0, %v1963_v2 }
 0xe23   :  { %v1973_v12 = vpop.permute.xlu1 %1972  ;;  %v1971_v32 = vpop.permute.xlu0 %1970 }
 0xe24   :  { %v1983_v33 = vmul.f32 %v1979_v11, %v1973_v12  ;;  %v1982_v4 = vmul.f32 %v1978_v47, %v1971_v32 }
 0xe26   :  { %v1987_v13 = vsub.f32 %v1983_v33, %v5260_v56  ;;  %v1986_v55 = vsub.f32 %v1982_v4, %v5267_v35 }
 0xe27   :  { %v1969_v14 = vpop.permute.xlu1 %1968  ;;  %v1961_v34 = vpop.permute.xlu0 %1960 }
 0xe28   :  { %v5299_v15 = vadd.f32 8.0, %v1987_v13  ;;  %v5301_v61 = vadd.f32 8.0, %v1986_v55  ;;  %v1981_v45 = vsub.f32 %v1961_v34, %v1969_v14 }
 0xe2a   :  { %v1995_v16 = vmul.f32 0.0033333334, %v5299_v15  ;;  %v5305_v42 = vmul.f32 0.0033333334, %v5301_v61 }
 0xe2b   :  { %v1967_v37 = vpop.permute.xlu1 %1966  ;;  %v1959_v18 = vpop.permute.xlu0 %1958 }
 0xe2c   :  { %v1999_v20 = vadd.f32 %v1995_v16, %v5260_v56  ;;  %v1980_v52 = vsub.f32 %v1959_v18, %v1967_v37  ;;  %v1998_v3 = vadd.f32 %v5305_v42, %v5267_v35 }
 0xe2e   :  { %2012 = vrot.lane.b32.xlu1 %v1999_v20, %s4414_s6  ;;  %2004 = vrot.lane.b32.xlu0 %v1999_v20, %s4413_s30 }
 0xe2f   :  { %v1977_v54 = vpop.permute.xlu1 %1976  ;;  %v1975_v59 = vpop.permute.xlu0 %1974 }
 0xe30   :  { %v1985_v60 = vmul.f32 %v1981_v45, %v1977_v54  ;;  %v1984_v1 = vmul.f32 %v1980_v52, %v1975_v59 }
 0xe32   :  { %v1989_v5 = vsub.f32 %v1985_v60, %v5280_v38  ;;  %v1988_v6 = vsub.f32 %v1984_v1, %v5287_v10  ;;  %2010 = vrot.lane.b32.xlu1 %v1998_v3, %s4414_s6  ;;  %2002 = vrot.lane.b32.xlu0 %v1998_v3, %s4413_s30 }
 0xe34   :  { %v5316_v7 = vadd.f32 8.0, %v1989_v5  ;;  %v5318_v8 = vadd.f32 8.0, %v1988_v6 }
 0xe36   :  { %v1997_v21 = vmul.f32 0.0033333334, %v5316_v7  ;;  %2020 = vrot.lane.b32.xlu1 %v1999_v20, %s4415_s2  ;;  %2018 = vrot.lane.b32.xlu0 %v1998_v3, %s4415_s2  ;;  %v1996_v40 = vmul.f32 0.0033333334, %v5318_v8 }
 0xe38   :  { %v2001_v24 = vadd.f32 %v1997_v21, %v5280_v38  ;;  %v2000_v41 = vadd.f32 %v1996_v40, %v5287_v10 }
 0xe3a   :  { %2016 = vrot.lane.b32.xlu1 %v2001_v24, %s4414_s6  ;;  %2008 = vrot.lane.b32.xlu0 %v2001_v24, %s4413_s30 }
 0xe3e   :  { %2014 = vrot.lane.b32.xlu1 %v2000_v41, %s4414_s6  ;;  %2006 = vrot.lane.b32.xlu0 %v2000_v41, %s4413_s30 }
 0xe42   :  { %2024 = vrot.lane.b32.xlu1 %v2001_v24, %s4415_s2  ;;  %2022 = vrot.lane.b32.xlu0 %v2000_v41, %s4415_s2 }
 0xea0   :  { %v2013_v26 = vpop.permute.xlu1 %2012  ;;  %v2005_v44 = vpop.permute.xlu0 %2004 }
 0xea1   :  { %v2027_v46 = vsub.f32 %v2005_v44, %v2013_v26 }
 0xea4   :  { %v2011_v28 = vpop.permute.xlu1 %2010  ;;  %v2003_v49 = vpop.permute.xlu0 %2002 }
 0xea5   :  { %v2026_v39 = vsub.f32 %v2003_v49, %v2011_v28 }
 0xea8   :  { %v2021_v22 = vpop.permute.xlu1 %2020  ;;  %v2019_v23 = vpop.permute.xlu0 %2018 }
 0xea9   :  { %v2031_v17 = vmul.f32 %v2027_v46, %v2021_v22  ;;  %v2030_v25 = vmul.f32 %v2026_v39, %v2019_v23 }
 0xeab   :  { %v2035_v19 = vsub.f32 %v2031_v17, %v1999_v20  ;;  %v2034_v48 = vsub.f32 %v2030_v25, %v1998_v3 }
 0xeac   :  { %v2017_v27 = vpop.permute.xlu1 %2016  ;;  %v2009_v50 = vpop.permute.xlu0 %2008 }
 0xead   :  { %v5332_v62 = vadd.f32 8.0, %v2035_v19  ;;  %v5334_v36 = vadd.f32 8.0, %v2034_v48  ;;  %v2029_v63 = vsub.f32 %v2009_v50, %v2017_v27 }
 0xeaf   :  { %v2043_v51 = vmul.f32 0.01, %v5332_v62  ;;  %v2042_v29 = vmul.f32 0.01, %v5334_v36  ;;  %v2094_v26 = vsub.f32 %v5301_v61, %v5334_v36 }
 0xeb0   :  { %v2015_v57 = vpop.permute.xlu1 %2014  ;;  %v2007_v53 = vpop.permute.xlu0 %2006 }
 0xeb1   :  { %v2047_v30 = vsub.f32 %v2043_v51, %v1995_v16  ;;  %v2028_v58 = vsub.f32 %v2007_v53, %v2015_v57  ;;  %v2046_v43 = vsub.f32 %v2042_v29, %v5305_v42 }
 0xeb3   :  { %v2051_v9 = vadd.f32 %v2047_v30, %v5260_v56  ;;  %v2050_v32 = vadd.f32 %v2046_v43, %v5267_v35 }
 0xeb4   :  { %v2025_v31 = vpop.permute.xlu1 %2024  ;;  %v2023_v2 = vpop.permute.xlu0 %2022 }
 0xeb5   :  { %v2033_v0 = vmul.f32 %v2029_v63, %v2025_v31  ;;  %v2032_v11 = vmul.f32 %v2028_v58, %v2023_v2  ;;  %2064 = vrot.lane.b32.xlu1 %v2051_v9, %s4414_s6  ;;  %2056 = vrot.lane.b32.xlu0 %v2051_v9, %s4413_s30 }
 0xeb7   :  { %v2037_v47 = vsub.f32 %v2033_v0, %v2001_v24  ;;  %v2036_v12 = vsub.f32 %v2032_v11, %v2000_v41  ;;  %v2095_v24 = vsub.f32 %v5299_v15, %v5332_v62 }
 0xeb9   :  { %v5343_v33 = vadd.f32 8.0, %v2037_v47  ;;  %v5345_v4 = vadd.f32 8.0, %v2036_v12  ;;  %2062 = vrot.lane.b32.xlu1 %v2050_v32, %s4414_s6  ;;  %2054 = vrot.lane.b32.xlu0 %v2050_v32, %s4413_s30 }
 0xebb   :  { %v2045_v13 = vmul.f32 0.01, %v5343_v33  ;;  %v2044_v55 = vmul.f32 0.01, %v5345_v4  ;;  %v2097_v30 = vsub.f32 %v5316_v7, %v5343_v33  ;;  %v2096_v58 = vsub.f32 %v5318_v8, %v5345_v4 }
 0xebd   :  { %2072 = vrot.lane.b32.xlu1 %v2051_v9, %s4415_s2  ;;  %2070 = vrot.lane.b32.xlu0 %v2050_v32, %s4415_s2  ;;  %v2049_v14 = vsub.f32 %v2045_v13, %v1997_v21  ;;  %v2048_v16 = vsub.f32 %v2044_v55, %v1996_v40 }
 0xebf   :  { %v2053_v34 = vadd.f32 %v2049_v14, %v5280_v38  ;;  %v2052_v37 = vadd.f32 %v2048_v16, %v5287_v10 }
 0xec1   :  { %2068 = vrot.lane.b32.xlu1 %v2053_v34, %s4414_s6  ;;  %2060 = vrot.lane.b32.xlu0 %v2053_v34, %s4413_s30 }
 0xec5   :  { %2066 = vrot.lane.b32.xlu1 %v2052_v37, %s4414_s6  ;;  %2058 = vrot.lane.b32.xlu0 %v2052_v37, %s4413_s30 }
 0xec9   :  { %2076 = vrot.lane.b32.xlu1 %v2053_v34, %s4415_s2  ;;  %2074 = vrot.lane.b32.xlu0 %v2052_v37, %s4415_s2 }
 0xf27   :  { %v2065_v18 = vpop.permute.xlu1 %2064  ;;  %v2057_v42 = vpop.permute.xlu0 %2056 }
 0xf28   :  { %v2079_v52 = vsub.f32 %v2057_v42, %v2065_v18 }
 0xf2b   :  { %v2063_v20 = vpop.permute.xlu1 %2062  ;;  %v2055_v45 = vpop.permute.xlu0 %2054 }
 0xf2c   :  { %v2078_v54 = vsub.f32 %v2055_v45, %v2063_v20 }
 0xf2f   :  { %v2073_v59 = vpop.permute.xlu1 %2072  ;;  %v2071_v60 = vpop.permute.xlu0 %2070 }
 0xf30   :  { %v2083_v1 = vmul.f32 %v2079_v52, %v2073_v59  ;;  %v2082_v3 = vmul.f32 %v2078_v54, %v2071_v60 }
 0xf32   :  { %v2087_v5 = vsub.f32 %v2083_v1, %v2051_v9  ;;  %v2086_v6 = vsub.f32 %v2082_v3, %v2050_v32 }
 0xf33   :  { %v2069_v21 = vpop.permute.xlu1 %2068  ;;  %v2061_v40 = vpop.permute.xlu0 %2060 }
 0xf34   :  { %v2091_v41 = vadd.f32 8.0, %v2087_v5  ;;  %v2090_v44 = vadd.f32 8.0, %v2086_v6  ;;  %v2081_v17 = vsub.f32 %v2061_v40, %v2069_v21 }
 0xf36   :  { %v2099_v28 = vadd.f32 %v2095_v24, %v2091_v41  ;;  %v2098_v49 = vadd.f32 %v2094_v26, %v2090_v44  ;;  %v2151_v14 = vadd.f32 %v2091_v41, %v5332_v62 }
 0xf37   :  { %v2067_v46 = vpop.permute.xlu1 %2066  ;;  %v2059_v39 = vpop.permute.xlu0 %2058 }
 0xf38   :  { %v2103_v22 = vmul.f32 0.01, %v2099_v28  ;;  %v2102_v23 = vmul.f32 0.01, %v2098_v49  ;;  %v2080_v25 = vsub.f32 %v2059_v39, %v2067_v46  ;;  %v2155_v20 = vmul.f32 3.0, %v2151_v14 }
 0xf3a   :  { %v2107_v19 = vadd.f32 %v2103_v22, %v5260_v56  ;;  %v2106_v53 = vadd.f32 %v2102_v23, %v5267_v35  ;;  %v2159_v5 = vadd.f32 %v2155_v20, %v5299_v15 }
 0xf3b   :  { %v2077_v48 = vpop.permute.xlu1 %2076  ;;  %v2075_v27 = vpop.permute.xlu0 %2074 }
 0xf3c   :  { %v2085_v50 = vmul.f32 %v2081_v17, %v2077_v48  ;;  %v2084_v51 = vmul.f32 %v2080_v25, %v2075_v27  ;;  %2120 = vrot.lane.b32.xlu1 %v2107_v19, %s4414_s6  ;;  %2112 = vrot.lane.b32.xlu0 %v2107_v19, %s4413_s30 }
 0xf3e   :  { %v2089_v29 = vsub.f32 %v2085_v50, %v2053_v34  ;;  %v2088_v57 = vsub.f32 %v2084_v51, %v2052_v37  ;;  %v2150_v34 = vadd.f32 %v2090_v44, %v5334_v36 }
 0xf40   :  { %v2093_v63 = vadd.f32 8.0, %v2089_v29  ;;  %v2092_v9 = vadd.f32 8.0, %v2088_v57  ;;  %2118 = vrot.lane.b32.xlu1 %v2106_v53, %s4414_s6  ;;  %2110 = vrot.lane.b32.xlu0 %v2106_v53, %s4413_s30  ;;  %v2154_v45 = vmul.f32 3.0, %v2150_v34 }
 0xf42   :  { %v2101_v43 = vadd.f32 %v2097_v30, %v2093_v63  ;;  %v2100_v31 = vadd.f32 %v2096_v58, %v2092_v9  ;;  %v2158_v21 = vadd.f32 %v2154_v45, %v5301_v61  ;;  %v2153_v26 = vadd.f32 %v2093_v63, %v5343_v33 }
 0xf43   :  { %v2152_v44 = vadd.f32 %v2092_v9, %v5345_v4 }
 0xf44   :  { %v2105_v2 = vmul.f32 0.01, %v2101_v43  ;;  %2128 = vrot.lane.b32.xlu1 %v2107_v19, %s4415_s2  ;;  %2126 = vrot.lane.b32.xlu0 %v2106_v53, %s4415_s2  ;;  %v2104_v0 = vmul.f32 0.01, %v2100_v31  ;;  %v2157_v17 = vmul.f32 3.0, %v2153_v26 }
 0xf45   :  { %v2156_v61 = vmul.f32 3.0, %v2152_v44 }
 0xf46   :  { %v2109_v11 = vadd.f32 %v2105_v2, %v5280_v38  ;;  %v2108_v47 = vadd.f32 %v2104_v0, %v5287_v10  ;;  %v2161_v48 = vadd.f32 %v2157_v17, %v5316_v7 }
 0xf47   :  { %v2160_v50 = vadd.f32 %v2156_v61, %v5318_v8 }
 0xf48   :  { %2124 = vrot.lane.b32.xlu1 %v2109_v11, %s4414_s6  ;;  %2116 = vrot.lane.b32.xlu0 %v2109_v11, %s4413_s30 }
 0xf4c   :  { %2122 = vrot.lane.b32.xlu1 %v2108_v47, %s4414_s6  ;;  %2114 = vrot.lane.b32.xlu0 %v2108_v47, %s4413_s30 }
 0xf50   :  { %2132 = vrot.lane.b32.xlu1 %v2109_v11, %s4415_s2  ;;  %2130 = vrot.lane.b32.xlu0 %v2108_v47, %s4415_s2 }
 0xfae   :  { %v2121_v12 = vpop.permute.xlu1 %2120  ;;  %v2113_v32 = vpop.permute.xlu0 %2112 }
 0xfaf   :  { %v2135_v16 = vsub.f32 %v2113_v32, %v2121_v12 }
 0xfb2   :  { %v2119_v13 = vpop.permute.xlu1 %2118  ;;  %v2111_v55 = vpop.permute.xlu0 %2110 }
 0xfb3   :  { %v2134_v37 = vsub.f32 %v2111_v55, %v2119_v13 }
 0xfb6   :  { %v2129_v18 = vpop.permute.xlu1 %2128  ;;  %v2127_v42 = vpop.permute.xlu0 %2126 }
 0xfb7   :  { %v2139_v52 = vmul.f32 %v2135_v16, %v2129_v18  ;;  %v2138_v54 = vmul.f32 %v2134_v37, %v2127_v42 }
 0xfb9   :  { %v2143_v59 = vsub.f32 %v2139_v52, %v2107_v19  ;;  %v2142_v60 = vsub.f32 %v2138_v54, %v2106_v53 }
 0xfba   :  { %v2125_v1 = vpop.permute.xlu1 %2124  ;;  %v2117_v3 = vpop.permute.xlu0 %2116 }
 0xfbb   :  { %v2147_v6 = vadd.f32 8.0, %v2143_v59  ;;  %v2146_v62 = vadd.f32 8.0, %v2142_v60  ;;  %v2137_v39 = vsub.f32 %v2117_v3, %v2125_v1 }
 0xfbd   :  { %v2163_v40 = vadd.f32 %v2159_v5, %v2147_v6  ;;  %v2162_v36 = vadd.f32 %v2158_v21, %v2146_v62 }
 0xfbe   :  { %v2123_v24 = vpop.permute.xlu1 %2122  ;;  %v2115_v41 = vpop.permute.xlu0 %2114 }
 0xfbf   :  { %v2167_v28 = vmul.f32 0.00125, %v2163_v40  ;;  %v2166_v46 = vmul.f32 0.00125, %v2162_v36  ;;  %v2136_v22 = vsub.f32 %v2115_v41, %v2123_v24 }
 0xfc1   :  { %v5392_v49 = vadd.f32 %v2167_v28, %v5260_v56  ;;  %v5399_v33 = vadd.f32 %v2166_v46, %v5267_v35 }
 0xfc2   :  { %v2133_v15 = vpop.permute.xlu1 %2132  ;;  %v2131_v23 = vpop.permute.xlu0 %2130 }
 0xfc3   :  { %v2141_v25 = vmul.f32 %v2137_v39, %v2133_v15  ;;  %v2140_v19 = vmul.f32 %v2136_v22, %v2131_v23  ;;  %2184 = vrot.lane.b32.xlu1 %v5392_v49, %s4414_s6  ;;  %2176 = vrot.lane.b32.xlu0 %v5392_v49, %s4413_s30 }
 0xfc5   :  { %v2145_v56 = vsub.f32 %v2141_v25, %v2109_v11  ;;  %v2144_v4 = vsub.f32 %v2140_v19, %v2108_v47 }
 0xfc7   :  { %v2149_v27 = vadd.f32 8.0, %v2145_v56  ;;  %v2148_v51 = vadd.f32 8.0, %v2144_v4  ;;  %2182 = vrot.lane.b32.xlu1 %v5399_v33, %s4414_s6  ;;  %2174 = vrot.lane.b32.xlu0 %v5399_v33, %s4413_s30 }
 0xfc9   :  { %v2165_v29 = vadd.f32 %v2161_v48, %v2149_v27  ;;  %v2164_v57 = vadd.f32 %v2160_v50, %v2148_v51 }
 0xfcb   :  { %v2169_v53 = vmul.f32 0.00125, %v2165_v29  ;;  %2192 = vrot.lane.b32.xlu1 %v5392_v49, %s4415_s2  ;;  %2190 = vrot.lane.b32.xlu0 %v5399_v33, %s4415_s2  ;;  %v2168_v7 = vmul.f32 0.00125, %v2164_v57 }
 0xfcd   :  { %v5412_v35 = vadd.f32 %v2169_v53, %v5280_v38  ;;  %v5419_v8 = vadd.f32 %v2168_v7, %v5287_v10 }
 0xfcf   :  { %2188 = vrot.lane.b32.xlu1 %v5412_v35, %s4414_s6  ;;  %2180 = vrot.lane.b32.xlu0 %v5412_v35, %s4413_s30 }
 0xfd3   :  { %2186 = vrot.lane.b32.xlu1 %v5419_v8, %s4414_s6  ;;  %2178 = vrot.lane.b32.xlu0 %v5419_v8, %s4413_s30 }
 0xfd7   :  { %2196 = vrot.lane.b32.xlu1 %v5412_v35, %s4415_s2  ;;  %2194 = vrot.lane.b32.xlu0 %v5419_v8, %s4415_s2 }
0x1035   :  { %v2185_v38 = vpop.permute.xlu1 %2184  ;;  %v2177_v30 = vpop.permute.xlu0 %2176 }
0x1036   :  { %v2199_v9 = vsub.f32 %v2177_v30, %v2185_v38 }
0x1039   :  { %v2183_v63 = vpop.permute.xlu1 %2182  ;;  %v2175_v58 = vpop.permute.xlu0 %2174 }
0x103a   :  { %v2198_v43 = vsub.f32 %v2175_v58, %v2183_v63 }
0x103d   :  { %v2193_v10 = vpop.permute.xlu1 %2192  ;;  %v2191_v31 = vpop.permute.xlu0 %2190 }
0x103e   :  { %v2203_v2 = vmul.f32 %v2199_v9, %v2193_v10  ;;  %v2202_v0 = vmul.f32 %v2198_v43, %v2191_v31 }
0x1040   :  { %v2207_v11 = vsub.f32 %v2203_v2, %v5392_v49  ;;  %v2206_v47 = vsub.f32 %v2202_v0, %v5399_v33 }
0x1041   :  { %v2189_v12 = vpop.permute.xlu1 %2188  ;;  %v2181_v32 = vpop.permute.xlu0 %2180 }
0x1042   :  { %v5431_v13 = vadd.f32 8.0, %v2207_v11  ;;  %v5433_v55 = vadd.f32 8.0, %v2206_v47  ;;  %v2201_v42 = vsub.f32 %v2181_v32, %v2189_v12 }
0x1044   :  { %v2215_v14 = vmul.f32 0.0033333334, %v5431_v13  ;;  %v5437_v37 = vmul.f32 0.0033333334, %v5433_v55 }
0x1045   :  { %v2187_v34 = vpop.permute.xlu1 %2186  ;;  %v2179_v16 = vpop.permute.xlu0 %2178 }
0x1046   :  { %v2219_v18 = vadd.f32 %v2215_v14, %v5392_v49  ;;  %v2200_v20 = vsub.f32 %v2179_v16, %v2187_v34  ;;  %v2218_v60 = vadd.f32 %v5437_v37, %v5399_v33 }
0x1048   :  { %2232 = vrot.lane.b32.xlu1 %v2219_v18, %s4414_s6  ;;  %2224 = vrot.lane.b32.xlu0 %v2219_v18, %s4413_s30 }
0x1049   :  { %v2197_v45 = vpop.permute.xlu1 %2196  ;;  %v2195_v52 = vpop.permute.xlu0 %2194 }
0x104a   :  { %v2205_v54 = vmul.f32 %v2201_v42, %v2197_v45  ;;  %v2204_v59 = vmul.f32 %v2200_v20, %v2195_v52 }
0x104c   :  { %v2209_v1 = vsub.f32 %v2205_v54, %v5412_v35  ;;  %v2208_v3 = vsub.f32 %v2204_v59, %v5419_v8  ;;  %2230 = vrot.lane.b32.xlu1 %v2218_v60, %s4414_s6  ;;  %2222 = vrot.lane.b32.xlu0 %v2218_v60, %s4413_s30 }
0x104e   :  { %v5448_v5 = vadd.f32 8.0, %v2209_v1  ;;  %v5450_v6 = vadd.f32 8.0, %v2208_v3 }
0x1050   :  { %v2217_v21 = vmul.f32 0.0033333334, %v5448_v5  ;;  %2240 = vrot.lane.b32.xlu1 %v2219_v18, %s4415_s2  ;;  %2238 = vrot.lane.b32.xlu0 %v2218_v60, %s4415_s2  ;;  %v2216_v62 = vmul.f32 0.0033333334, %v5450_v6 }
0x1052   :  { %v2221_v40 = vadd.f32 %v2217_v21, %v5412_v35  ;;  %v2220_v36 = vadd.f32 %v2216_v62, %v5419_v8 }
0x1054   :  { %2236 = vrot.lane.b32.xlu1 %v2221_v40, %s4414_s6  ;;  %2228 = vrot.lane.b32.xlu0 %v2221_v40, %s4413_s30 }
0x1058   :  { %2234 = vrot.lane.b32.xlu1 %v2220_v36, %s4414_s6  ;;  %2226 = vrot.lane.b32.xlu0 %v2220_v36, %s4413_s30 }
0x105c   :  { %2244 = vrot.lane.b32.xlu1 %v2221_v40, %s4415_s2  ;;  %2242 = vrot.lane.b32.xlu0 %v2220_v36, %s4415_s2 }
0x10ba   :  { %v2233_v24 = vpop.permute.xlu1 %2232  ;;  %v2225_v41 = vpop.permute.xlu0 %2224 }
0x10bb   :  { %v2247_v28 = vsub.f32 %v2225_v41, %v2233_v24 }
0x10be   :  { %v2231_v26 = vpop.permute.xlu1 %2230  ;;  %v2223_v44 = vpop.permute.xlu0 %2222 }
0x10bf   :  { %v2246_v46 = vsub.f32 %v2223_v44, %v2231_v26 }
0x10c2   :  { %v2241_v39 = vpop.permute.xlu1 %2240  ;;  %v2239_v22 = vpop.permute.xlu0 %2238 }
0x10c3   :  { %v2251_v15 = vmul.f32 %v2247_v28, %v2241_v39  ;;  %v2250_v23 = vmul.f32 %v2246_v46, %v2239_v22 }
0x10c5   :  { %v2255_v17 = vsub.f32 %v2251_v15, %v2219_v18  ;;  %v2254_v61 = vsub.f32 %v2250_v23, %v2218_v60 }
0x10c6   :  { %v2237_v25 = vpop.permute.xlu1 %2236  ;;  %v2229_v19 = vpop.permute.xlu0 %2228 }
0x10c7   :  { %v5464_v56 = vadd.f32 8.0, %v2255_v17  ;;  %v5466_v4 = vadd.f32 8.0, %v2254_v61  ;;  %v2249_v57 = vsub.f32 %v2229_v19, %v2237_v25 }
0x10c9   :  { %v2263_v48 = vmul.f32 0.01, %v5464_v56  ;;  %v2262_v27 = vmul.f32 0.01, %v5466_v4  ;;  %v2314_v24 = vsub.f32 %v5433_v55, %v5466_v4 }
0x10ca   :  { %v2235_v50 = vpop.permute.xlu1 %2234  ;;  %v2227_v51 = vpop.permute.xlu0 %2226 }
0x10cb   :  { %v2267_v29 = vsub.f32 %v2263_v48, %v2215_v14  ;;  %v2248_v53 = vsub.f32 %v2227_v51, %v2235_v50  ;;  %v2266_v38 = vsub.f32 %v2262_v27, %v5437_v37 }
0x10cd   :  { %v2271_v7 = vadd.f32 %v2267_v29, %v5392_v49  ;;  %v2270_v31 = vadd.f32 %v2266_v38, %v5399_v33 }
0x10ce   :  { %v2245_v30 = vpop.permute.xlu1 %2244  ;;  %v2243_v63 = vpop.permute.xlu0 %2242 }
0x10cf   :  { %v2253_v58 = vmul.f32 %v2249_v57, %v2245_v30  ;;  %v2252_v9 = vmul.f32 %v2248_v53, %v2243_v63  ;;  %2284 = vrot.lane.b32.xlu1 %v2271_v7, %s4414_s6  ;;  %2276 = vrot.lane.b32.xlu0 %v2271_v7, %s4413_s30 }
0x10d1   :  { %v2257_v43 = vsub.f32 %v2253_v58, %v2221_v40  ;;  %v2256_v10 = vsub.f32 %v2252_v9, %v2220_v36  ;;  %v2315_v40 = vsub.f32 %v5431_v13, %v5464_v56 }
0x10d3   :  { %v5475_v2 = vadd.f32 8.0, %v2257_v43  ;;  %v5477_v0 = vadd.f32 8.0, %v2256_v10  ;;  %2282 = vrot.lane.b32.xlu1 %v2270_v31, %s4414_s6  ;;  %2274 = vrot.lane.b32.xlu0 %v2270_v31, %s4413_s30 }
0x10d5   :  { %v2265_v11 = vmul.f32 0.01, %v5475_v2  ;;  %v2264_v47 = vmul.f32 0.01, %v5477_v0  ;;  %v2317_v29 = vsub.f32 %v5448_v5, %v5475_v2  ;;  %v2316_v53 = vsub.f32 %v5450_v6, %v5477_v0 }
0x10d7   :  { %2292 = vrot.lane.b32.xlu1 %v2271_v7, %s4415_s2  ;;  %2290 = vrot.lane.b32.xlu0 %v2270_v31, %s4415_s2  ;;  %v2269_v12 = vsub.f32 %v2265_v11, %v2217_v21  ;;  %v2268_v14 = vsub.f32 %v2264_v47, %v2216_v62 }
0x10d9   :  { %v2273_v32 = vadd.f32 %v2269_v12, %v5412_v35  ;;  %v2272_v34 = vadd.f32 %v2268_v14, %v5419_v8 }
0x10db   :  { %2288 = vrot.lane.b32.xlu1 %v2273_v32, %s4414_s6  ;;  %2280 = vrot.lane.b32.xlu0 %v2273_v32, %s4413_s30 }
0x10df   :  { %2286 = vrot.lane.b32.xlu1 %v2272_v34, %s4414_s6  ;;  %2278 = vrot.lane.b32.xlu0 %v2272_v34, %s4413_s30 }
0x10e3   :  { %2296 = vrot.lane.b32.xlu1 %v2273_v32, %s4415_s2  ;;  %2294 = vrot.lane.b32.xlu0 %v2272_v34, %s4415_s2 }
0x1141   :  { %v2285_v16 = vpop.permute.xlu1 %2284  ;;  %v2277_v37 = vpop.permute.xlu0 %2276 }
0x1142   :  { %v2299_v20 = vsub.f32 %v2277_v37, %v2285_v16 }
0x1145   :  { %v2283_v18 = vpop.permute.xlu1 %2282  ;;  %v2275_v42 = vpop.permute.xlu0 %2274 }
0x1146   :  { %v2298_v45 = vsub.f32 %v2275_v42, %v2283_v18 }
0x1149   :  { %v2293_v52 = vpop.permute.xlu1 %2292  ;;  %v2291_v54 = vpop.permute.xlu0 %2290 }
0x114a   :  { %v2303_v59 = vmul.f32 %v2299_v20, %v2293_v52  ;;  %v2302_v60 = vmul.f32 %v2298_v45, %v2291_v54 }
0x114c   :  { %v2307_v1 = vsub.f32 %v2303_v59, %v2271_v7  ;;  %v2306_v3 = vsub.f32 %v2302_v60, %v2270_v31 }
0x114d   :  { %v2289_v21 = vpop.permute.xlu1 %2288  ;;  %v2281_v62 = vpop.permute.xlu0 %2280 }
0x114e   :  { %v2311_v36 = vadd.f32 8.0, %v2307_v1  ;;  %v2310_v41 = vadd.f32 8.0, %v2306_v3  ;;  %v2301_v15 = vsub.f32 %v2281_v62, %v2289_v21 }
0x1150   :  { %v2319_v26 = vadd.f32 %v2315_v40, %v2311_v36  ;;  %v2318_v44 = vadd.f32 %v2314_v24, %v2310_v41  ;;  %v2371_v12 = vadd.f32 %v2311_v36, %v5464_v56 }
0x1151   :  { %v2287_v28 = vpop.permute.xlu1 %2286  ;;  %v2279_v46 = vpop.permute.xlu0 %2278 }
0x1152   :  { %v2323_v39 = vmul.f32 0.01, %v2319_v26  ;;  %v2322_v22 = vmul.f32 0.01, %v2318_v44  ;;  %v2300_v23 = vsub.f32 %v2279_v46, %v2287_v28  ;;  %v2375_v18 = vmul.f32 3.0, %v2371_v12 }
0x1154   :  { %v2327_v17 = vadd.f32 %v2323_v39, %v5392_v49  ;;  %v2326_v51 = vadd.f32 %v2322_v22, %v5399_v33  ;;  %v2379_v1 = vadd.f32 %v2375_v18, %v5431_v13 }
0x1155   :  { %v2297_v61 = vpop.permute.xlu1 %2296  ;;  %v2295_v25 = vpop.permute.xlu0 %2294 }
0x1156   :  { %v2305_v19 = vmul.f32 %v2301_v15, %v2297_v61  ;;  %v2304_v48 = vmul.f32 %v2300_v23, %v2295_v25  ;;  %2340 = vrot.lane.b32.xlu1 %v2327_v17, %s4414_s6  ;;  %2332 = vrot.lane.b32.xlu0 %v2327_v17, %s4413_s30 }
0x1158   :  { %v2309_v27 = vsub.f32 %v2305_v19, %v2273_v32  ;;  %v2308_v50 = vsub.f32 %v2304_v48, %v2272_v34  ;;  %v2370_v32 = vadd.f32 %v2310_v41, %v5466_v4 }
0x115a   :  { %v2313_v57 = vadd.f32 8.0, %v2309_v27  ;;  %v2312_v7 = vadd.f32 8.0, %v2308_v50  ;;  %2338 = vrot.lane.b32.xlu1 %v2326_v51, %s4414_s6  ;;  %2330 = vrot.lane.b32.xlu0 %v2326_v51, %s4413_s30  ;;  %v2374_v42 = vmul.f32 3.0, %v2370_v32 }
0x115c   :  { %v2321_v38 = vadd.f32 %v2317_v29, %v2313_v57  ;;  %v2320_v30 = vadd.f32 %v2316_v53, %v2312_v7  ;;  %v2378_v21 = vadd.f32 %v2374_v42, %v5433_v55  ;;  %v2373_v24 = vadd.f32 %v2313_v57, %v5475_v2 }
0x115d   :  { %v2372_v41 = vadd.f32 %v2312_v7, %v5477_v0 }
0x115e   :  { %v2325_v63 = vmul.f32 0.01, %v2321_v38  ;;  %2348 = vrot.lane.b32.xlu1 %v2327_v17, %s4415_s2  ;;  %2346 = vrot.lane.b32.xlu0 %v2326_v51, %s4415_s2  ;;  %v2324_v58 = vmul.f32 0.01, %v2320_v30  ;;  %v2377_v15 = vmul.f32 3.0, %v2373_v24 }
0x115f   :  { %v2376_v55 = vmul.f32 3.0, %v2372_v41 }
0x1160   :  { %v2329_v9 = vadd.f32 %v2325_v63, %v5412_v35  ;;  %v2328_v43 = vadd.f32 %v2324_v58, %v5419_v8  ;;  %v2381_v61 = vadd.f32 %v2377_v15, %v5448_v5 }
0x1161   :  { %v2380_v19 = vadd.f32 %v2376_v55, %v5450_v6 }
0x1162   :  { %2344 = vrot.lane.b32.xlu1 %v2329_v9, %s4414_s6  ;;  %2336 = vrot.lane.b32.xlu0 %v2329_v9, %s4413_s30 }
0x1166   :  { %2342 = vrot.lane.b32.xlu1 %v2328_v43, %s4414_s6  ;;  %2334 = vrot.lane.b32.xlu0 %v2328_v43, %s4413_s30 }
0x116a   :  { %2352 = vrot.lane.b32.xlu1 %v2329_v9, %s4415_s2  ;;  %2350 = vrot.lane.b32.xlu0 %v2328_v43, %s4415_s2 }
0x11c8   :  { %v2341_v10 = vpop.permute.xlu1 %2340  ;;  %v2333_v31 = vpop.permute.xlu0 %2332 }
0x11c9   :  { %v2355_v14 = vsub.f32 %v2333_v31, %v2341_v10 }
0x11cc   :  { %v2339_v11 = vpop.permute.xlu1 %2338  ;;  %v2331_v47 = vpop.permute.xlu0 %2330 }
0x11cd   :  { %v2354_v34 = vsub.f32 %v2331_v47, %v2339_v11 }
0x11d0   :  { %v2349_v16 = vpop.permute.xlu1 %2348  ;;  %v2347_v37 = vpop.permute.xlu0 %2346 }
0x11d1   :  { %v2359_v20 = vmul.f32 %v2355_v14, %v2349_v16  ;;  %v2358_v45 = vmul.f32 %v2354_v34, %v2347_v37 }
0x11d3   :  { %v2363_v52 = vsub.f32 %v2359_v20, %v2327_v17  ;;  %v2362_v54 = vsub.f32 %v2358_v45, %v2326_v51 }
0x11d4   :  { %v2345_v59 = vpop.permute.xlu1 %2344  ;;  %v2337_v60 = vpop.permute.xlu0 %2336 }
0x11d5   :  { %v2367_v3 = vadd.f32 8.0, %v2363_v52  ;;  %v2366_v56 = vadd.f32 8.0, %v2362_v54  ;;  %v2357_v46 = vsub.f32 %v2337_v60, %v2345_v59 }
0x11d7   :  { %v2383_v62 = vadd.f32 %v2379_v1, %v2367_v3  ;;  %v2382_v4 = vadd.f32 %v2378_v21, %v2366_v56 }
0x11d8   :  { %v2343_v40 = vpop.permute.xlu1 %2342  ;;  %v2335_v36 = vpop.permute.xlu0 %2334 }
0x11d9   :  { %v2387_v26 = vmul.f32 0.00125, %v2383_v62  ;;  %v2386_v28 = vmul.f32 0.00125, %v2382_v4  ;;  %v2356_v39 = vsub.f32 %v2335_v36, %v2343_v40 }
0x11db   :  { %v5524_v44 = vadd.f32 %v2387_v26, %v5392_v49  ;;  %v5531_v2 = vadd.f32 %v2386_v28, %v5399_v33 }
0x11dc   :  { %v2353_v13 = vpop.permute.xlu1 %2352  ;;  %v2351_v22 = vpop.permute.xlu0 %2350 }
0x11dd   :  { %v2361_v23 = vmul.f32 %v2357_v46, %v2353_v13  ;;  %v2360_v17 = vmul.f32 %v2356_v39, %v2351_v22  ;;  %2404 = vrot.lane.b32.xlu1 %v5524_v44, %s4414_s6  ;;  %2396 = vrot.lane.b32.xlu0 %v5524_v44, %s4413_s30 }
0x11df   :  { %v2365_v49 = vsub.f32 %v2361_v23, %v2329_v9  ;;  %v2364_v0 = vsub.f32 %v2360_v17, %v2328_v43 }
0x11e1   :  { %v2369_v25 = vadd.f32 8.0, %v2365_v49  ;;  %v2368_v48 = vadd.f32 8.0, %v2364_v0  ;;  %2402 = vrot.lane.b32.xlu1 %v5531_v2, %s4414_s6  ;;  %2394 = vrot.lane.b32.xlu0 %v5531_v2, %s4413_s30 }
0x11e3   :  { %v2385_v27 = vadd.f32 %v2381_v61, %v2369_v25  ;;  %v2384_v50 = vadd.f32 %v2380_v19, %v2368_v48 }
0x11e5   :  { %v2389_v51 = vmul.f32 0.00125, %v2385_v27  ;;  %2412 = vrot.lane.b32.xlu1 %v5524_v44, %s4415_s2  ;;  %2410 = vrot.lane.b32.xlu0 %v5531_v2, %s4415_s2  ;;  %v2388_v5 = vmul.f32 0.00125, %v2384_v50 }
0x11e7   :  { %v5544_v33 = vadd.f32 %v2389_v51, %v5412_v35  ;;  %v5551_v6 = vadd.f32 %v2388_v5, %v5419_v8 }
0x11e9   :  { %2408 = vrot.lane.b32.xlu1 %v5544_v33, %s4414_s6  ;;  %2400 = vrot.lane.b32.xlu0 %v5544_v33, %s4413_s30 }
0x11ed   :  { %2406 = vrot.lane.b32.xlu1 %v5551_v6, %s4414_s6  ;;  %2398 = vrot.lane.b32.xlu0 %v5551_v6, %s4413_s30 }
0x11f1   :  { %2416 = vrot.lane.b32.xlu1 %v5544_v33, %s4415_s2  ;;  %2414 = vrot.lane.b32.xlu0 %v5551_v6, %s4415_s2 }
0x124f   :  { %v2405_v35 = vpop.permute.xlu1 %2404  ;;  %v2397_v29 = vpop.permute.xlu0 %2396 }
0x1250   :  { %v2419_v7 = vsub.f32 %v2397_v29, %v2405_v35 }
0x1253   :  { %v2403_v57 = vpop.permute.xlu1 %2402  ;;  %v2395_v53 = vpop.permute.xlu0 %2394 }
0x1254   :  { %v2418_v38 = vsub.f32 %v2395_v53, %v2403_v57 }
0x1257   :  { %v2413_v8 = vpop.permute.xlu1 %2412  ;;  %v2411_v30 = vpop.permute.xlu0 %2410 }
0x1258   :  { %v2423_v63 = vmul.f32 %v2419_v7, %v2413_v8  ;;  %v2422_v58 = vmul.f32 %v2418_v38, %v2411_v30 }
0x125a   :  { %v2427_v9 = vsub.f32 %v2423_v63, %v5524_v44  ;;  %v2426_v43 = vsub.f32 %v2422_v58, %v5531_v2 }
0x125b   :  { %v2409_v10 = vpop.permute.xlu1 %2408  ;;  %v2401_v31 = vpop.permute.xlu0 %2400 }
0x125c   :  { %v5563_v11 = vadd.f32 8.0, %v2427_v9  ;;  %v5565_v47 = vadd.f32 8.0, %v2426_v43  ;;  %v2421_v37 = vsub.f32 %v2401_v31, %v2409_v10 }
0x125e   :  { %v2435_v12 = vmul.f32 0.0033333334, %v5563_v11  ;;  %v5569_v34 = vmul.f32 0.0033333334, %v5565_v47 }
0x125f   :  { %v2407_v32 = vpop.permute.xlu1 %2406  ;;  %v2399_v14 = vpop.permute.xlu0 %2398 }
0x1260   :  { %v2439_v16 = vadd.f32 %v2435_v12, %v5524_v44  ;;  %v2420_v18 = vsub.f32 %v2399_v14, %v2407_v32  ;;  %v2438_v54 = vadd.f32 %v5569_v34, %v5531_v2 }
0x1262   :  { %2452 = vrot.lane.b32.xlu1 %v2439_v16, %s4414_s6  ;;  %2444 = vrot.lane.b32.xlu0 %v2439_v16, %s4413_s30 }
0x1263   :  { %v2417_v42 = vpop.permute.xlu1 %2416  ;;  %v2415_v20 = vpop.permute.xlu0 %2414 }
0x1264   :  { %v2425_v45 = vmul.f32 %v2421_v37, %v2417_v42  ;;  %v2424_v52 = vmul.f32 %v2420_v18, %v2415_v20 }
0x1266   :  { %v2429_v59 = vsub.f32 %v2425_v45, %v5544_v33  ;;  %v2428_v60 = vsub.f32 %v2424_v52, %v5551_v6  ;;  %2450 = vrot.lane.b32.xlu1 %v2438_v54, %s4414_s6  ;;  %2442 = vrot.lane.b32.xlu0 %v2438_v54, %s4413_s30 }
0x1268   :  { %v5580_v1 = vadd.f32 8.0, %v2429_v59  ;;  %v5582_v3 = vadd.f32 8.0, %v2428_v60 }
0x126a   :  { %v2437_v21 = vmul.f32 0.0033333334, %v5580_v1  ;;  %2460 = vrot.lane.b32.xlu1 %v2439_v16, %s4415_s2  ;;  %2458 = vrot.lane.b32.xlu0 %v2438_v54, %s4415_s2  ;;  %v2436_v56 = vmul.f32 0.0033333334, %v5582_v3 }
0x126c   :  { %v2441_v62 = vadd.f32 %v2437_v21, %v5544_v33  ;;  %v2440_v4 = vadd.f32 %v2436_v56, %v5551_v6 }
0x126e   :  { %2456 = vrot.lane.b32.xlu1 %v2441_v62, %s4414_s6  ;;  %2448 = vrot.lane.b32.xlu0 %v2441_v62, %s4413_s30 }
0x1272   :  { %2454 = vrot.lane.b32.xlu1 %v2440_v4, %s4414_s6  ;;  %2446 = vrot.lane.b32.xlu0 %v2440_v4, %s4413_s30 }
0x1276   :  { %2464 = vrot.lane.b32.xlu1 %v2441_v62, %s4415_s2  ;;  %2462 = vrot.lane.b32.xlu0 %v2440_v4, %s4415_s2 }
0x12d4   :  { %v2453_v40 = vpop.permute.xlu1 %2452  ;;  %v2445_v36 = vpop.permute.xlu0 %2444 }
0x12d5   :  { %v2467_v26 = vsub.f32 %v2445_v36, %v2453_v40 }
0x12d8   :  { %v2451_v24 = vpop.permute.xlu1 %2450  ;;  %v2443_v41 = vpop.permute.xlu0 %2442 }
0x12d9   :  { %v2466_v28 = vsub.f32 %v2443_v41, %v2451_v24 }
0x12dc   :  { %v2461_v46 = vpop.permute.xlu1 %2460  ;;  %v2459_v39 = vpop.permute.xlu0 %2458 }
0x12dd   :  { %v2471_v13 = vmul.f32 %v2467_v26, %v2461_v46  ;;  %v2470_v22 = vmul.f32 %v2466_v28, %v2459_v39 }
0x12df   :  { %v2475_v15 = vsub.f32 %v2471_v13, %v2439_v16  ;;  %v2474_v55 = vsub.f32 %v2470_v22, %v2438_v54 }
0x12e0   :  { %v2457_v23 = vpop.permute.xlu1 %2456  ;;  %v2449_v17 = vpop.permute.xlu0 %2448 }
0x12e1   :  { %v5596_v49 = vadd.f32 8.0, %v2475_v15  ;;  %v5598_v0 = vadd.f32 8.0, %v2474_v55  ;;  %v2469_v50 = vsub.f32 %v2449_v17, %v2457_v23 }
0x12e3   :  { %v2483_v61 = vmul.f32 0.01, %v5596_v49  ;;  %v2482_v25 = vmul.f32 0.01, %v5598_v0  ;;  %v2534_v40 = vsub.f32 %v5565_v47, %v5598_v0 }
0x12e4   :  { %v2455_v19 = vpop.permute.xlu1 %2454  ;;  %v2447_v48 = vpop.permute.xlu0 %2446 }
0x12e5   :  { %v2487_v27 = vsub.f32 %v2483_v61, %v2435_v12  ;;  %v2468_v51 = vsub.f32 %v2447_v48, %v2455_v19  ;;  %v2486_v35 = vsub.f32 %v2482_v25, %v5569_v34 }
0x12e7   :  { %v2491_v5 = vadd.f32 %v2487_v27, %v5524_v44  ;;  %v2490_v30 = vadd.f32 %v2486_v35, %v5531_v2 }
0x12e8   :  { %v2465_v29 = vpop.permute.xlu1 %2464  ;;  %v2463_v57 = vpop.permute.xlu0 %2462 }
0x12e9   :  { %v2473_v53 = vmul.f32 %v2469_v50, %v2465_v29  ;;  %v2472_v7 = vmul.f32 %v2468_v51, %v2463_v57  ;;  %2504 = vrot.lane.b32.xlu1 %v2491_v5, %s4414_s6  ;;  %2496 = vrot.lane.b32.xlu0 %v2491_v5, %s4413_s30 }
0x12eb   :  { %v2477_v38 = vsub.f32 %v2473_v53, %v2441_v62  ;;  %v2476_v8 = vsub.f32 %v2472_v7, %v2440_v4  ;;  %v2535_v62 = vsub.f32 %v5563_v11, %v5596_v49 }
0x12ed   :  { %v5607_v63 = vadd.f32 8.0, %v2477_v38  ;;  %v5609_v58 = vadd.f32 8.0, %v2476_v8  ;;  %2502 = vrot.lane.b32.xlu1 %v2490_v30, %s4414_s6  ;;  %2494 = vrot.lane.b32.xlu0 %v2490_v30, %s4413_s30 }
0x12ef   :  { %v2485_v9 = vmul.f32 0.01, %v5607_v63  ;;  %v2484_v43 = vmul.f32 0.01, %v5609_v58  ;;  %v2537_v27 = vsub.f32 %v5580_v1, %v5607_v63  ;;  %v2536_v51 = vsub.f32 %v5582_v3, %v5609_v58 }
0x12f1   :  { %2512 = vrot.lane.b32.xlu1 %v2491_v5, %s4415_s2  ;;  %2510 = vrot.lane.b32.xlu0 %v2490_v30, %s4415_s2  ;;  %v2489_v10 = vsub.f32 %v2485_v9, %v2437_v21  ;;  %v2488_v12 = vsub.f32 %v2484_v43, %v2436_v56 }
0x12f3   :  { %v2493_v31 = vadd.f32 %v2489_v10, %v5544_v33  ;;  %v2492_v32 = vadd.f32 %v2488_v12, %v5551_v6 }
0x12f5   :  { %2508 = vrot.lane.b32.xlu1 %v2493_v31, %s4414_s6  ;;  %2500 = vrot.lane.b32.xlu0 %v2493_v31, %s4413_s30 }
0x12f9   :  { %2506 = vrot.lane.b32.xlu1 %v2492_v32, %s4414_s6  ;;  %2498 = vrot.lane.b32.xlu0 %v2492_v32, %s4413_s30 }
0x12fd   :  { %2516 = vrot.lane.b32.xlu1 %v2493_v31, %s4415_s2  ;;  %2514 = vrot.lane.b32.xlu0 %v2492_v32, %s4415_s2 }
0x135b   :  { %v2505_v14 = vpop.permute.xlu1 %2504  ;;  %v2497_v34 = vpop.permute.xlu0 %2496 }
0x135c   :  { %v2519_v18 = vsub.f32 %v2497_v34, %v2505_v14 }
0x135f   :  { %v2503_v16 = vpop.permute.xlu1 %2502  ;;  %v2495_v37 = vpop.permute.xlu0 %2494 }
0x1360   :  { %v2518_v42 = vsub.f32 %v2495_v37, %v2503_v16 }
0x1363   :  { %v2513_v20 = vpop.permute.xlu1 %2512  ;;  %v2511_v45 = vpop.permute.xlu0 %2510 }
0x1364   :  { %v2523_v52 = vmul.f32 %v2519_v18, %v2513_v20  ;;  %v2522_v54 = vmul.f32 %v2518_v42, %v2511_v45 }
0x1366   :  { %v2527_v59 = vsub.f32 %v2523_v52, %v2491_v5  ;;  %v2526_v60 = vsub.f32 %v2522_v54, %v2490_v30 }
0x1367   :  { %v2509_v21 = vpop.permute.xlu1 %2508  ;;  %v2501_v56 = vpop.permute.xlu0 %2500 }
0x1368   :  { %v2531_v4 = vadd.f32 8.0, %v2527_v59  ;;  %v2530_v36 = vadd.f32 8.0, %v2526_v60  ;;  %v2521_v13 = vsub.f32 %v2501_v56, %v2509_v21 }
0x136a   :  { %v2539_v24 = vadd.f32 %v2535_v62, %v2531_v4  ;;  %v2538_v41 = vadd.f32 %v2534_v40, %v2530_v36  ;;  %v2591_v10 = vadd.f32 %v2531_v4, %v5596_v49 }
0x136b   :  { %v2507_v26 = vpop.permute.xlu1 %2506  ;;  %v2499_v28 = vpop.permute.xlu0 %2498 }
0x136c   :  { %v2543_v46 = vmul.f32 0.01, %v2539_v24  ;;  %v2542_v39 = vmul.f32 0.01, %v2538_v41  ;;  %v2520_v22 = vsub.f32 %v2499_v28, %v2507_v26  ;;  %v2595_v16 = vmul.f32 3.0, %v2591_v10 }
0x136e   :  { %v2547_v15 = vadd.f32 %v2543_v46, %v5524_v44  ;;  %v2546_v48 = vadd.f32 %v2542_v39, %v5531_v2  ;;  %v2599_v59 = vadd.f32 %v2595_v16, %v5563_v11 }
0x136f   :  { %v2517_v55 = vpop.permute.xlu1 %2516  ;;  %v2515_v23 = vpop.permute.xlu0 %2514 }
0x1370   :  { %v2525_v17 = vmul.f32 %v2521_v13, %v2517_v55  ;;  %v2524_v61 = vmul.f32 %v2520_v22, %v2515_v23  ;;  %2560 = vrot.lane.b32.xlu1 %v2547_v15, %s4414_s6  ;;  %2552 = vrot.lane.b32.xlu0 %v2547_v15, %s4413_s30 }
0x1372   :  { %v2529_v25 = vsub.f32 %v2525_v17, %v2493_v31  ;;  %v2528_v19 = vsub.f32 %v2524_v61, %v2492_v32  ;;  %v2590_v31 = vadd.f32 %v2530_v36, %v5598_v0 }
0x1374   :  { %v2533_v50 = vadd.f32 8.0, %v2529_v25  ;;  %v2532_v5 = vadd.f32 8.0, %v2528_v19  ;;  %2558 = vrot.lane.b32.xlu1 %v2546_v48, %s4414_s6  ;;  %2550 = vrot.lane.b32.xlu0 %v2546_v48, %s4413_s30  ;;  %v2594_v37 = vmul.f32 3.0, %v2590_v31 }
0x1376   :  { %v2541_v35 = vadd.f32 %v2537_v27, %v2533_v50  ;;  %v2540_v29 = vadd.f32 %v2536_v51, %v2532_v5  ;;  %v2598_v21 = vadd.f32 %v2594_v37, %v5565_v47  ;;  %v2593_v40 = vadd.f32 %v2533_v50, %v5607_v63 }
0x1377   :  { %v2592_v36 = vadd.f32 %v2532_v5, %v5609_v58 }
0x1378   :  { %v2545_v57 = vmul.f32 0.01, %v2541_v35  ;;  %2568 = vrot.lane.b32.xlu1 %v2547_v15, %s4415_s2  ;;  %2566 = vrot.lane.b32.xlu0 %v2546_v48, %s4415_s2  ;;  %v2544_v53 = vmul.f32 0.01, %v2540_v29  ;;  %v2597_v13 = vmul.f32 3.0, %v2593_v40 }
0x1379   :  { %v2596_v47 = vmul.f32 3.0, %v2592_v36 }
0x137a   :  { %v2549_v7 = vadd.f32 %v2545_v57, %v5544_v33  ;;  %v2548_v38 = vadd.f32 %v2544_v53, %v5551_v6  ;;  %v2601_v55 = vadd.f32 %v2597_v13, %v5580_v1 }
0x137b   :  { %v2600_v17 = vadd.f32 %v2596_v47, %v5582_v3 }
0x137c   :  { %2564 = vrot.lane.b32.xlu1 %v2549_v7, %s4414_s6  ;;  %2556 = vrot.lane.b32.xlu0 %v2549_v7, %s4413_s30 }
0x1380   :  { %2562 = vrot.lane.b32.xlu1 %v2548_v38, %s4414_s6  ;;  %2554 = vrot.lane.b32.xlu0 %v2548_v38, %s4413_s30 }
0x1384   :  { %2572 = vrot.lane.b32.xlu1 %v2549_v7, %s4415_s2  ;;  %2570 = vrot.lane.b32.xlu0 %v2548_v38, %s4415_s2 }
0x13e2   :  { %v2561_v8 = vpop.permute.xlu1 %2560  ;;  %v2553_v30 = vpop.permute.xlu0 %2552 }
0x13e3   :  { %v2575_v12 = vsub.f32 %v2553_v30, %v2561_v8 }
0x13e6   :  { %v2559_v9 = vpop.permute.xlu1 %2558  ;;  %v2551_v43 = vpop.permute.xlu0 %2550 }
0x13e7   :  { %v2574_v32 = vsub.f32 %v2551_v43, %v2559_v9 }
0x13ea   :  { %v2569_v14 = vpop.permute.xlu1 %2568  ;;  %v2567_v34 = vpop.permute.xlu0 %2566 }
0x13eb   :  { %v2579_v18 = vmul.f32 %v2575_v12, %v2569_v14  ;;  %v2578_v42 = vmul.f32 %v2574_v32, %v2567_v34 }
0x13ed   :  { %v2583_v20 = vsub.f32 %v2579_v18, %v2547_v15  ;;  %v2582_v45 = vsub.f32 %v2578_v42, %v2546_v48 }
0x13ee   :  { %v2565_v52 = vpop.permute.xlu1 %2564  ;;  %v2557_v54 = vpop.permute.xlu0 %2556 }
0x13ef   :  { %v2587_v60 = vadd.f32 8.0, %v2583_v20  ;;  %v2586_v49 = vadd.f32 8.0, %v2582_v45  ;;  %v2577_v28 = vsub.f32 %v2557_v54, %v2565_v52 }
0x13f1   :  { %v2603_v56 = vadd.f32 %v2599_v59, %v2587_v60  ;;  %v2602_v0 = vadd.f32 %v2598_v21, %v2586_v49 }
0x13f2   :  { %v2563_v62 = vpop.permute.xlu1 %2562  ;;  %v2555_v4 = vpop.permute.xlu0 %2554 }
0x13f3   :  { %v2607_v24 = vmul.f32 0.00125, %v2603_v56  ;;  %v2606_v26 = vmul.f32 0.00125, %v2602_v0  ;;  %v2576_v46 = vsub.f32 %v2555_v4, %v2563_v62 }
0x13f5   :  { %v5656_v41 = vadd.f32 %v2607_v24, %v5524_v44  ;;  %v5663_v63 = vadd.f32 %v2606_v26, %v5531_v2 }
0x13f6   :  { %v2573_v11 = vpop.permute.xlu1 %2572  ;;  %v2571_v39 = vpop.permute.xlu0 %2570 }
0x13f7   :  { %v2581_v22 = vmul.f32 %v2577_v28, %v2573_v11  ;;  %v2580_v15 = vmul.f32 %v2576_v46, %v2571_v39  ;;  %2624 = vrot.lane.b32.xlu1 %v5656_v41, %s4414_s6  ;;  %2616 = vrot.lane.b32.xlu0 %v5656_v41, %s4413_s30 }
0x13f9   :  { %v2585_v44 = vsub.f32 %v2581_v22, %v2549_v7  ;;  %v2584_v58 = vsub.f32 %v2580_v15, %v2548_v38 }
0x13fb   :  { %v2589_v23 = vadd.f32 8.0, %v2585_v44  ;;  %v2588_v61 = vadd.f32 8.0, %v2584_v58  ;;  %2622 = vrot.lane.b32.xlu1 %v5663_v63, %s4414_s6  ;;  %2614 = vrot.lane.b32.xlu0 %v5663_v63, %s4413_s30 }
0x13fd   :  { %v2605_v25 = vadd.f32 %v2601_v55, %v2589_v23  ;;  %v2604_v19 = vadd.f32 %v2600_v17, %v2588_v61 }
0x13ff   :  { %v2609_v48 = vmul.f32 0.00125, %v2605_v25  ;;  %2632 = vrot.lane.b32.xlu1 %v5656_v41, %s4415_s2  ;;  %2630 = vrot.lane.b32.xlu0 %v5663_v63, %s4415_s2  ;;  %v2608_v1 = vmul.f32 0.00125, %v2604_v19 }
0x1401   :  { %v5676_v2 = vadd.f32 %v2609_v48, %v5544_v33  ;;  %v5683_v3 = vadd.f32 %v2608_v1, %v5551_v6 }
0x1403   :  { %2628 = vrot.lane.b32.xlu1 %v5676_v2, %s4414_s6  ;;  %2620 = vrot.lane.b32.xlu0 %v5676_v2, %s4413_s30 }
0x1407   :  { %2626 = vrot.lane.b32.xlu1 %v5683_v3, %s4414_s6  ;;  %2618 = vrot.lane.b32.xlu0 %v5683_v3, %s4413_s30 }
0x140b   :  { %2636 = vrot.lane.b32.xlu1 %v5676_v2, %s4415_s2  ;;  %2634 = vrot.lane.b32.xlu0 %v5683_v3, %s4415_s2 }
0x1469   :  { %v2625_v33 = vpop.permute.xlu1 %2624  ;;  %v2617_v27 = vpop.permute.xlu0 %2616 }
0x146a   :  { %v2639_v5 = vsub.f32 %v2617_v27, %v2625_v33 }
0x146d   :  { %v2623_v50 = vpop.permute.xlu1 %2622  ;;  %v2615_v51 = vpop.permute.xlu0 %2614 }
0x146e   :  { %v2638_v35 = vsub.f32 %v2615_v51, %v2623_v50 }
0x1471   :  { %v2633_v6 = vpop.permute.xlu1 %2632  ;;  %v2631_v29 = vpop.permute.xlu0 %2630 }
0x1472   :  { %v2643_v57 = vmul.f32 %v2639_v5, %v2633_v6  ;;  %v2642_v53 = vmul.f32 %v2638_v35, %v2631_v29 }
0x1474   :  { %v2647_v7 = vsub.f32 %v2643_v57, %v5656_v41  ;;  %v2646_v38 = vsub.f32 %v2642_v53, %v5663_v63 }
0x1475   :  { %v2629_v8 = vpop.permute.xlu1 %2628  ;;  %v2621_v30 = vpop.permute.xlu0 %2620 }
0x1476   :  { %v5695_v9 = vadd.f32 8.0, %v2647_v7  ;;  %v5697_v43 = vadd.f32 8.0, %v2646_v38  ;;  %v2641_v34 = vsub.f32 %v2621_v30, %v2629_v8 }
0x1478   :  { %v2655_v10 = vmul.f32 0.0033333334, %v5695_v9  ;;  %v5701_v32 = vmul.f32 0.0033333334, %v5697_v43 }
0x1479   :  { %v2627_v31 = vpop.permute.xlu1 %2626  ;;  %v2619_v12 = vpop.permute.xlu0 %2618 }
0x147a   :  { %v2659_v14 = vadd.f32 %v2655_v10, %v5656_v41  ;;  %v2640_v16 = vsub.f32 %v2619_v12, %v2627_v31  ;;  %v2658_v45 = vadd.f32 %v5701_v32, %v5663_v63  ;;  %v2834_v12 = vld [vmem:[%s6176_s3] sm:$0xff] }
0x147c   :  { %2672 = vrot.lane.b32.xlu1 %v2659_v14, %s4414_s6  ;;  %2664 = vrot.lane.b32.xlu0 %v2659_v14, %s4413_s30 }
0x147d   :  { %v2637_v37 = vpop.permute.xlu1 %2636  ;;  %v2635_v18 = vpop.permute.xlu0 %2634 }
0x147e   :  { %v2645_v42 = vmul.f32 %v2641_v34, %v2637_v37  ;;  %v2644_v20 = vmul.f32 %v2640_v16, %v2635_v18  ;;  %v2858_v34 = vand.u32 4294901760, %v2834_v12  ;;  %v2837_v37 = vld [vmem:[%s6176_s3 + $0x18] sm:$0xff] }
0x1480   :  { %v2649_v52 = vsub.f32 %v2645_v42, %v5676_v2  ;;  %v2648_v54 = vsub.f32 %v2644_v20, %v5683_v3  ;;  %2670 = vrot.lane.b32.xlu1 %v2658_v45, %s4414_s6  ;;  %2662 = vrot.lane.b32.xlu0 %v2658_v45, %s4413_s30  ;;  %v2867_v42 = vand.u32 4294901760, %v2837_v37 }
0x1482   :  { %v5712_v59 = vadd.f32 8.0, %v2649_v52  ;;  %v5714_v60 = vadd.f32 8.0, %v2648_v54 }
0x1484   :  { %v2657_v21 = vmul.f32 0.0033333334, %v5712_v59  ;;  %2680 = vrot.lane.b32.xlu1 %v2659_v14, %s4415_s2  ;;  %2678 = vrot.lane.b32.xlu0 %v2658_v45, %s4415_s2  ;;  %v2656_v49 = vmul.f32 0.0033333334, %v5714_v60 }
0x1486   :  { %v2661_v56 = vadd.f32 %v2657_v21, %v5676_v2  ;;  %v2660_v0 = vadd.f32 %v2656_v49, %v5683_v3 }
0x1488   :  { %2676 = vrot.lane.b32.xlu1 %v2661_v56, %s4414_s6  ;;  %2668 = vrot.lane.b32.xlu0 %v2661_v56, %s4413_s30 }
0x148c   :  { %2674 = vrot.lane.b32.xlu1 %v2660_v0, %s4414_s6  ;;  %2666 = vrot.lane.b32.xlu0 %v2660_v0, %s4413_s30 }
0x1490   :  { %2684 = vrot.lane.b32.xlu1 %v2661_v56, %s4415_s2  ;;  %2682 = vrot.lane.b32.xlu0 %v2660_v0, %s4415_s2 }
0x14ee   :  { %v2673_v62 = vpop.permute.xlu1 %2672  ;;  %v2665_v4 = vpop.permute.xlu0 %2664 }
0x14ef   :  { %v2687_v24 = vsub.f32 %v2665_v4, %v2673_v62 }
0x14f2   :  { %v2671_v40 = vpop.permute.xlu1 %2670  ;;  %v2663_v36 = vpop.permute.xlu0 %2662 }
0x14f3   :  { %v2686_v26 = vsub.f32 %v2663_v36, %v2671_v40  ;;  %v2838_v40 = vld [vmem:[%s6176_s3 + $0x20] sm:$0xff]  ;;  %v2839_v36 = vld [vmem:[%s6176_s3 + $0x28] sm:$0xff] }
0x14f6   :  { %v2681_v28 = vpop.permute.xlu1 %2680  ;;  %v2679_v46 = vpop.permute.xlu0 %2678 }
0x14f7   :  { %v2691_v11 = vmul.f32 %v2687_v24, %v2681_v28  ;;  %v2690_v39 = vmul.f32 %v2686_v26, %v2679_v46  ;;  %v2870_v24 = vand.u32 4294901760, %v2838_v40  ;;  %v2873_v26 = vand.u32 4294901760, %v2839_v36 }
0x14f9   :  { %v2695_v13 = vsub.f32 %v2691_v11, %v2659_v14  ;;  %v2694_v47 = vsub.f32 %v2690_v39, %v2658_v45  ;;  %v2836_v14 = vld [vmem:[%s6176_s3 + $0x10] sm:$0xff]  ;;  %v5791_v45 = vsub.f32 %v2834_v12, %v2858_v34  ;;  %v5815_v11 = vsub.f32 %v2838_v40, %v2870_v24 }
0x14fa   :  { %v2677_v22 = vpop.permute.xlu1 %2676  ;;  %v2669_v15 = vpop.permute.xlu0 %2668  ;;  %v2864_v18 = vand.u32 4294901760, %v2836_v14  ;;  %v5817_v39 = vsub.f32 %v2839_v36, %v2873_v26 }
0x14fb   :  { %v5728_v44 = vadd.f32 8.0, %v2695_v13  ;;  %v5730_v58 = vadd.f32 8.0, %v2694_v47  ;;  %v2689_v19 = vsub.f32 %v2669_v15, %v2677_v22  ;;  %v2840_v47 = vld [vmem:[%s6176_s3 + $0x30] sm:$0xff]  ;;  %v2841_v22 = vld [vmem:[%s6176_s3 + $0x38] sm:$0xff] }
0x14fc   :  { %v5795_v54 = vsub.f32 %v2836_v14, %v2864_v18 }
0x14fd   :  { %v2703_v55 = vmul.f32 0.01, %v5728_v44  ;;  %v2702_v23 = vmul.f32 0.01, %v5730_v58 }
0x14fe   :  { %v2675_v17 = vpop.permute.xlu1 %2674  ;;  %v2667_v61 = vpop.permute.xlu0 %2666 }
0x14ff   :  { %v2707_v25 = vsub.f32 %v2703_v55, %v2655_v10  ;;  %v2688_v48 = vsub.f32 %v2667_v61, %v2675_v17  ;;  %v2706_v33 = vsub.f32 %v2702_v23, %v5701_v32  ;;  %v2835_v32 = vld [vmem:[%s6176_s3 + $0x8] sm:$0xff]  ;;  %v4226_v55 = vpack.c.bf16 %v5817_v39, %v5815_v11 }
0x1500   :  { %v2861_v16 = vand.u32 4294901760, %v2835_v32  ;;  %v2876_v23 = vand.u32 4294901760, %v2840_v47  ;;  %v2879_v17 = vand.u32 4294901760, %v2841_v22 }
0x1501   :  { %v5735_v1 = vadd.f32 %v2707_v25, %v5656_v41  ;;  %v5743_v29 = vadd.f32 %v2706_v33, %v5663_v63 }
0x1502   :  { %v2685_v27 = vpop.permute.xlu1 %2684  ;;  %v2683_v50 = vpop.permute.xlu0 %2682  ;;  %v5789_v20 = vpack.c.bf16 %v2861_v16, %v2858_v34  ;;  %v5793_v52 = vsub.f32 %v2835_v32, %v2861_v16  ;;  %v5847_v32 = vpack.c.bf16 %v2879_v17, %v2876_v23 }
0x1503   :  { %v2693_v51 = vmul.f32 %v2689_v19, %v2685_v27  ;;  %v2692_v5 = vmul.f32 %v2688_v48, %v2683_v50  ;;  %2724 = vrot.lane.b32.xlu1 %v5735_v1, %s4414_s6  ;;  %2716 = vrot.lane.b32.xlu0 %v5735_v1, %s4413_s30  ;;  %v5827_v19 = vpack.c.bf16 %v2873_v26, %v2870_v24 }
0x1504   :  { %4155 = vmatprep.subr.bf16.mxu0 %v5789_v20  ;;  %v5829_v27 = vsub.f32 %v2840_v47, %v2876_v23  ;;  %v5831_v50 = vsub.f32 %v2841_v22, %v2879_v17  ;;  %v2846_v47 = vld [vmem:[%s6176_s3 + $0x60] sm:$0xff]  ;;  %v2847_v22 = vld [vmem:[%s6176_s3 + $0x68] sm:$0xff] }
0x1505   :  { %v2697_v35 = vsub.f32 %v2693_v51, %v2661_v56  ;;  %v2696_v6 = vsub.f32 %v2692_v5, %v2660_v0  ;;  %v4218_v56 = vpack.c.bf16 %v5793_v52, %v5791_v45  ;;  %4157 = vmatpush3.bf16.msra.mxu0 %v5789_v20  ;;  %v2842_v51 = vld [vmem:[%s6176_s3 + $0x40] sm:$0xff]  ;;  %v2843_v5 = vld [vmem:[%s6176_s3 + $0x48] sm:$0xff] }
0x1506   :  { %v2885_v14 = vand.u32 4294901760, %v2843_v5 }
0x1507   :  { %v5745_v57 = vadd.f32 8.0, %v2697_v35  ;;  %v5747_v53 = vadd.f32 8.0, %v2696_v6  ;;  %2722 = vrot.lane.b32.xlu1 %v5743_v29, %s4414_s6  ;;  %2714 = vrot.lane.b32.xlu0 %v5743_v29, %s4413_s30 }
0x1508   :  { %4219 = vmatprep.subr.bf16.mxu1 %v4218_v56 }
0x1509   :  { %v2705_v7 = vmul.f32 0.01, %v5745_v57  ;;  %v2704_v38 = vmul.f32 0.01, %v5747_v53  ;;  %4221 = vmatpush3.bf16.msra.mxu1 %v4218_v56 }
0x150b   :  { %2732 = vrot.lane.b32.xlu1 %v5735_v1, %s4415_s2  ;;  %2730 = vrot.lane.b32.xlu0 %v5743_v29, %s4415_s2  ;;  %v2709_v8 = vsub.f32 %v2705_v7, %v2657_v21  ;;  %v2708_v10 = vsub.f32 %v2704_v38, %v2656_v49  ;;  %v5797_v21 = vpack.c.bf16 %v2867_v42, %v2864_v18  ;;  %v2882_v38 = vand.u32 4294901760, %v2842_v51  ;;  %v2844_v18 = vld [vmem:[%s6176_s3 + $0x50] sm:$0xff] }
0x150c   :  { %v5799_v49 = vsub.f32 %v2837_v37, %v2867_v42  ;;  %v4230_v7 = vpack.c.bf16 %v5831_v50, %v5829_v27  ;;  %v5857_v37 = vsub.f32 %v2843_v5, %v2885_v14  ;;  %v2845_v42 = vld [vmem:[%s6176_s3 + $0x58] sm:$0xff]  ;;  %v2888_v36 = vand.u32 4294901760, %v2844_v18 }
0x150d   :  { %v5760_v30 = vadd.f32 %v2709_v8, %v5676_v2  ;;  %v5767_v31 = vadd.f32 %v2708_v10, %v5683_v3  ;;  %4159 = vmatprep.subr.bf16.mxu0 %v5797_v21  ;;  %v2755_v8 = vsub.f32 %v5695_v9, %v5728_v44  ;;  %v5855_v16 = vsub.f32 %v2842_v51, %v2882_v38 }
0x150e   :  { %v4222_v0 = vpack.c.bf16 %v5799_v49, %v5795_v54  ;;  %4161 = vmatpush3.bf16.msra.mxu0 %v5797_v21  ;;  %v2891_v24 = vand.u32 4294901760, %v2845_v42 }
0x150f   :  { %2728 = vrot.lane.b32.xlu1 %v5760_v30, %s4414_s6  ;;  %2720 = vrot.lane.b32.xlu0 %v5760_v30, %s4413_s30  ;;  %v4234_v40 = vpack.c.bf16 %v5857_v37, %v5855_v16 }
0x1510   :  { %4223 = vmatprep.subr.bf16.mxu1 %v4222_v0  ;;  %4163 = vmatprep.subr.bf16.mxu0 %v5827_v19 }
0x1511   :  { %4225 = vmatpush3.bf16.msra.mxu1 %v4222_v0 }
0x1512   :  { %4227 = vmatprep.subr.bf16.mxu1 %v4226_v55  ;;  %4165 = vmatpush3.bf16.msra.mxu0 %v5827_v19 }
0x1513   :  { %2726 = vrot.lane.b32.xlu1 %v5767_v31, %s4414_s6  ;;  %2718 = vrot.lane.b32.xlu0 %v5767_v31, %s4413_s30 }
0x1514   :  { %4167 = vmatprep.subr.bf16.mxu0 %v5847_v32 }
0x1515   :  { %4229 = vmatpush3.bf16.msra.mxu1 %v4226_v55 }
0x1516   :  { %4231 = vmatprep.subr.bf16.mxu1 %v4230_v7  ;;  %4169 = vmatpush3.bf16.msra.mxu0 %v5847_v32 }
0x1517   :  { %2736 = vrot.lane.b32.xlu1 %v5760_v30, %s4415_s2  ;;  %2734 = vrot.lane.b32.xlu0 %v5767_v31, %s4415_s2 }
0x1519   :  { %4233 = vmatpush3.bf16.msra.mxu1 %v4230_v7 }
0x151a   :  { %4235 = vmatprep.subr.bf16.mxu1 %v4234_v40 }
0x151d   :  { %4237 = vmatpush3.bf16.msra.mxu1 %v4234_v40 }
0x1575   :  { %v2725_v62 = vpop.permute.xlu1 %2724  ;;  %v2717_v4 = vpop.permute.xlu0 %2716 }
0x1576   :  { %v2739_v13 = vsub.f32 %v2717_v4, %v2725_v62 }
0x1579   :  { %v2723_v28 = vpop.permute.xlu1 %2722  ;;  %v2715_v46 = vpop.permute.xlu0 %2714 }
0x157a   :  { %v2738_v15 = vsub.f32 %v2715_v46, %v2723_v28  ;;  %v5871_v46 = vsub.f32 %v2844_v18, %v2888_v36 }
0x157d   :  { %v2733_v61 = vpop.permute.xlu1 %2732  ;;  %v2731_v25 = vpop.permute.xlu0 %2730 }
0x157e   :  { %v2743_v48 = vmul.f32 %v2739_v13, %v2733_v61  ;;  %v2742_v33 = vmul.f32 %v2738_v15, %v2731_v25  ;;  %v5873_v13 = vsub.f32 %v2845_v42, %v2891_v24  ;;  %v2757_v42 = vsub.f32 %v5712_v59, %v5745_v57 }
0x1580   :  { %v2747_v35 = vsub.f32 %v2743_v48, %v5735_v1  ;;  %v2746_v6 = vsub.f32 %v2742_v33, %v5743_v29  ;;  %v2754_v1 = vsub.f32 %v5697_v43, %v5730_v58  ;;  %v4238_v25 = vpack.c.bf16 %v5873_v13, %v5871_v46 }
0x1581   :  { %v2729_v10 = vpop.permute.xlu1 %2728  ;;  %v2721_v12 = vpop.permute.xlu0 %2720  ;;  %v2894_v48 = vand.u32 4294901760, %v2846_v47  ;;  %v2897_v33 = vand.u32 4294901760, %v2847_v22 }
0x1582   :  { %v5849_v34 = vadd.f32 8.0, %v2747_v35  ;;  %v5853_v29 = vadd.f32 8.0, %v2746_v6  ;;  %v2741_v15 = vsub.f32 %v2721_v12, %v2729_v10  ;;  %v5890_v35 = vpack.c.bf16 %v2885_v14, %v2882_v38  ;;  %4239 = vmatprep.subr.bf16.mxu1 %v4238_v25  ;;  %v2848_v10 = vld [vmem:[%s6176_s3 + $0x70] sm:$0xff]  ;;  %v2849_v12 = vld [vmem:[%s6176_s3 + $0x78] sm:$0xff] }
0x1583   :  { %v5895_v7 = vsub.f32 %v2846_v47, %v2894_v48  ;;  %4241 = vmatpush3.bf16.msra.mxu1 %v4238_v25  ;;  %v2900_v14 = vand.u32 4294901760, %v2848_v10  ;;  %v2903_v18 = vand.u32 4294901760, %v2849_v12 }
0x1584   :  { %v2759_v56 = vadd.f32 %v2755_v8, %v5849_v34  ;;  %v2758_v0 = vadd.f32 %v2754_v1, %v5853_v29  ;;  %v5897_v8 = vsub.f32 %v2847_v22, %v2897_v33  ;;  %4171 = vmatprep.subr.bf16.mxu0 %v5890_v35 }
0x1585   :  { %v2727_v62 = vpop.permute.xlu1 %2726  ;;  %v2719_v4 = vpop.permute.xlu0 %2718  ;;  %4173 = vmatpush3.bf16.msra.mxu0 %v5890_v35  ;;  %v5927_v40 = vsub.f32 %v2849_v12, %v2903_v18 }
0x1586   :  { %v2763_v26 = vmul.f32 0.01, %v2759_v56  ;;  %v2762_v28 = vmul.f32 0.01, %v2758_v0  ;;  %v2740_v55 = vsub.f32 %v2719_v4, %v2727_v62  ;;  %v2756_v56 = vsub.f32 %v5714_v60, %v5747_v53 }
0x1587   :  { %v5912_v0 = vpack.c.bf16 %v2891_v24, %v2888_v36  ;;  %v5925_v4 = vsub.f32 %v2848_v10, %v2900_v14  ;;  %v5929_v36 = vpack.c.bf16 %v2897_v33, %v2894_v48 }
0x1588   :  { %v5882_v23 = vadd.f32 %v2763_v26, %v5656_v41  ;;  %v5893_v6 = vadd.f32 %v2762_v28, %v5663_v63 }
0x1589   :  { %v2737_v17 = vpop.permute.xlu1 %2736  ;;  %v2735_v61 = vpop.permute.xlu0 %2734  ;;  %4175 = vmatprep.subr.bf16.mxu0 %v5912_v0  ;;  %v4246_v28 = vpack.c.bf16 %v5927_v40, %v5925_v4 }
0x158a   :  { %v2745_v51 = vmul.f32 %v2741_v15, %v2737_v17  ;;  %v2744_v5 = vmul.f32 %v2740_v55, %v2735_v61  ;;  %2780 = vrot.lane.b32.xlu1 %v5882_v23, %s4414_s6  ;;  %2772 = vrot.lane.b32.xlu0 %v5882_v23, %s4413_s30  ;;  %v2981_v55 = vand.u32 4294901760, %v5791_v45  ;;  %v2988_v17 = vand.u32 4294901760, %v5793_v52 }
0x158b   :  { %4177 = vmatpush3.bf16.msra.mxu0 %v5912_v0  ;;  %v5953_v61 = vpack.c.bf16 %v2903_v18, %v2900_v14  ;;  %v3023_v18 = vand.u32 4294901760, %v5829_v27 }
0x158c   :  { %v2749_v1 = vsub.f32 %v2745_v51, %v5760_v30  ;;  %v2748_v38 = vsub.f32 %v2744_v5, %v5767_v31  ;;  %v4242_v30 = vpack.c.bf16 %v5897_v8, %v5895_v7  ;;  %4179 = vmatprep.subr.bf16.mxu0 %v5929_v36  ;;  %v2982_v25 = vsub.f32 %v5791_v45, %v2981_v55 }
0x158d   :  { %v2989_v48 = vsub.f32 %v5793_v52, %v2988_v17  ;;  %v3009_v45 = vand.u32 4294901760, %v5815_v11  ;;  %v3016_v52 = vand.u32 4294901760, %v5817_v39 }
0x158e   :  { %v5917_v62 = vadd.f32 8.0, %v2749_v1  ;;  %v5919_v31 = vadd.f32 8.0, %v2748_v38  ;;  %2778 = vrot.lane.b32.xlu1 %v5893_v6, %s4414_s6  ;;  %2770 = vrot.lane.b32.xlu0 %v5893_v6, %s4413_s30  ;;  %v2983_v51 = vand.u32 4294901760, %v2982_v25 }
0x158f   :  { %4243 = vmatprep.subr.bf16.mxu1 %v4242_v30  ;;  %4181 = vmatpush3.bf16.msra.mxu0 %v5929_v36  ;;  %v2990_v5 = vand.u32 4294901760, %v2989_v48  ;;  %v3010_v12 = vsub.f32 %v5815_v11, %v3009_v45  ;;  %v3017_v1 = vsub.f32 %v5817_v39, %v3016_v52  ;;  %v3044_v11 = vand.u32 4294901760, %v5857_v37 }
0x1590   :  { %v2761_v24 = vadd.f32 %v2757_v42, %v5917_v62  ;;  %v2760_v26 = vadd.f32 %v2756_v56, %v5919_v31  ;;  %4245 = vmatpush3.bf16.msra.mxu1 %v4242_v30  ;;  %4183 = vmatprep.subr.bf16.mxu0 %v5953_v61  ;;  %v3030_v42 = vand.u32 4294901760, %v5831_v50  ;;  %v3024_v30 = vsub.f32 %v5829_v27, %v3023_v18 }
0x1591   :  { %4247 = vmatprep.subr.bf16.mxu1 %v4246_v28  ;;  %v5966_v10 = vpack.c.bf16 %v2990_v5, %v2983_v51  ;;  %v3011_v38 = vand.u32 4294901760, %v3010_v12  ;;  %v3018_v14 = vand.u32 4294901760, %v3017_v1  ;;  %v3045_v25 = vsub.f32 %v5857_v37, %v3044_v11 }
0x1592   :  { %v2765_v47 = vmul.f32 0.01, %v2761_v24  ;;  %2788 = vrot.lane.b32.xlu1 %v5882_v23, %s4415_s2  ;;  %2786 = vrot.lane.b32.xlu0 %v5893_v6, %s4415_s2  ;;  %v2764_v22 = vmul.f32 0.01, %v2760_v26  ;;  %v3031_v24 = vsub.f32 %v5831_v50, %v3030_v42  ;;  %v3025_v26 = vand.u32 4294901760, %v3024_v30 }
0x1593   :  { %4185 = vmatpush3.bf16.msra.mxu0 %v5953_v61  ;;  %v5979_v56 = vpack.c.bf16 %v3018_v14, %v3011_v38  ;;  %v3046_v51 = vand.u32 4294901760, %v3045_v25  ;;  %v3051_v5 = vand.u32 4294901760, %v5871_v46  ;;  %v3058_v27 = vand.u32 4294901760, %v5873_v13 }
0x1594   :  { %v5943_v15 = vadd.f32 %v2765_v47, %v5676_v2  ;;  %4249 = vmatpush3.bf16.msra.mxu1 %v4246_v28  ;;  %v5958_v33 = vadd.f32 %v2764_v22, %v5683_v3  ;;  %4187 = vmatprep.subr.bf16.mxu0 %v5966_v10  ;;  %v3032_v28 = vand.u32 4294901760, %v3031_v24  ;;  %v3037_v47 = vand.u32 4294901760, %v5855_v16 }
0x1595   :  { %4251 = vmatprep.subr.bf16.mxu1 %v5789_v20  ;;  %v3052_v50 = vsub.f32 %v5871_v46, %v3051_v5  ;;  %v3059_v1 = vsub.f32 %v5873_v13, %v3058_v27  ;;  %v3065_v30 = vand.u32 4294901760, %v5895_v7  ;;  %v3079_v25 = vand.u32 4294901760, %v5925_v4 }
0x1596   :  { %2784 = vrot.lane.b32.xlu1 %v5943_v15, %s4414_s6  ;;  %2776 = vrot.lane.b32.xlu0 %v5943_v15, %s4413_s30  ;;  %v5985_v22 = vpack.c.bf16 %v3032_v28, %v3025_v26  ;;  %v3038_v39 = vsub.f32 %v5855_v16, %v3037_v47  ;;  %v3072_v16 = vand.u32 4294901760, %v5897_v8  ;;  %v3086_v46 = vand.u32 4294901760, %v5927_v40 }
0x1597   :  { %v3053_v38 = vand.u32 4294901760, %v3052_v50  ;;  %v3060_v14 = vand.u32 4294901760, %v3059_v1  ;;  %v3066_v37 = vsub.f32 %v5895_v7, %v3065_v30  ;;  %v3080_v13 = vsub.f32 %v5925_v4, %v3079_v25 }
0x1598   :  { %v3039_v48 = vand.u32 4294901760, %v3038_v39  ;;  %v3073_v26 = vsub.f32 %v5897_v8, %v3072_v16  ;;  %v6007_v50 = vpack.c.bf16 %v2988_v17, %v2981_v55  ;;  %v6011_v7 = vpack.c.bf16 %v3016_v52, %v3009_v45 }
0x1599   :  { %v5997_v24 = vpack.c.bf16 %v3060_v14, %v3053_v38  ;;  %v3067_v28 = vand.u32 4294901760, %v3066_v37  ;;  %v3081_v1 = vand.u32 4294901760, %v3080_v13  ;;  %v6013_v8 = vpack.c.bf16 %v3030_v42, %v3023_v18 }
0x159a   :  { %2782 = vrot.lane.b32.xlu1 %v5958_v33, %s4414_s6  ;;  %2774 = vrot.lane.b32.xlu0 %v5958_v33, %s4413_s30  ;;  %v5991_v12 = vpack.c.bf16 %v3046_v51, %v3039_v48  ;;  %v3074_v39 = vand.u32 4294901760, %v3073_v26  ;;  %v3087_v51 = vsub.f32 %v5927_v40, %v3086_v46  ;;  %v6015_v37 = vpack.c.bf16 %v3044_v11, %v3037_v47 }
0x159b   :  { %v6017_v26 = vpack.c.bf16 %v3058_v27, %v3051_v5  ;;  %v2811_v13 = vadd.f32 %v5849_v34, %v5728_v44  ;;  %v2810_v45 = vadd.f32 %v5853_v29, %v5730_v58 }
0x159c   :  { %v6003_v48 = vpack.c.bf16 %v3074_v39, %v3067_v28  ;;  %v3088_v38 = vand.u32 4294901760, %v3087_v51  ;;  %v6019_v28 = vpack.c.bf16 %v3072_v16, %v3065_v30  ;;  %v6021_v39 = vpack.c.bf16 %v3086_v46, %v3079_v25 }
0x159d   :  { %v2815_v11 = vmul.f32 3.0, %v2811_v13  ;;  %v2814_v5 = vmul.f32 3.0, %v2810_v45  ;;  %v2995_v13 = vand.u32 4294901760, %v5795_v54 }
0x159e   :  { %2792 = vrot.lane.b32.xlu1 %v5943_v15, %s4415_s2  ;;  %2790 = vrot.lane.b32.xlu0 %v5958_v33, %s4415_s2  ;;  %v6009_v14 = vpack.c.bf16 %v3088_v38, %v3081_v1 }
0x159f   :  { %v2819_v1 = vadd.f32 %v2815_v11, %v5695_v9  ;;  %v2818_v34 = vadd.f32 %v2814_v5, %v5697_v43  ;;  %v3002_v9 = vand.u32 4294901760, %v5799_v49 }
0x15fc   :  { %v2781_v4 = vpop.permute.xlu1 %2780  ;;  %v2773_v40 = vpop.permute.xlu0 %2772 }
0x15fd   :  { %v2795_v52 = vsub.f32 %v2773_v40, %v2781_v4  ;;  %v2813_v4 = vadd.f32 %v5917_v62, %v5745_v57  ;;  %v2812_v40 = vadd.f32 %v5919_v31, %v5747_v53 }
0x1600   :  { %v2779_v55 = vpop.permute.xlu1 %2778  ;;  %v2771_v17 = vpop.permute.xlu0 %2770 }
0x1601   :  { %v2794_v18 = vsub.f32 %v2771_v17, %v2779_v55 }
0x1604   :  { %v2789_v42 = vpop.permute.xlu1 %2788  ;;  %v2787_v47 = vpop.permute.xlu0 %2786 }
0x1605   :  { %v2799_v27 = vmul.f32 %v2795_v52, %v2789_v42  ;;  %v2798_v30 = vmul.f32 %v2794_v18, %v2787_v47  ;;  %v2817_v42 = vmul.f32 3.0, %v2813_v4  ;;  %v2816_v47 = vmul.f32 3.0, %v2812_v40 }
0x1607   :  { %v2803_v16 = vsub.f32 %v2799_v27, %v5882_v23  ;;  %v2802_v25 = vsub.f32 %v2798_v30, %v5893_v6  ;;  %v2996_v27 = vsub.f32 %v5795_v54, %v2995_v13 }
0x1608   :  { %v2785_v46 = vpop.permute.xlu1 %2784  ;;  %v2777_v51 = vpop.permute.xlu0 %2776 }
0x1609   :  { %v2807_v44 = vadd.f32 8.0, %v2803_v16  ;;  %v2806_v58 = vadd.f32 8.0, %v2802_v25  ;;  %v2797_v45 = vsub.f32 %v2777_v51, %v2785_v46  ;;  %v2821_v46 = vadd.f32 %v2817_v42, %v5712_v59 }
0x160a   :  { %v2820_v51 = vadd.f32 %v2816_v47, %v5714_v60 }
0x160b   :  { %v2823_v29 = vadd.f32 %v2819_v1, %v2807_v44  ;;  %v2822_v38 = vadd.f32 %v2818_v34, %v2806_v58 }
0x160c   :  { %v2783_v55 = vpop.permute.xlu1 %2782  ;;  %v2775_v23 = vpop.permute.xlu0 %2774 }
0x160d   :  { %v2827_v17 = vmul.f32 0.00125, %v2823_v29  ;;  %v2826_v6 = vmul.f32 0.00125, %v2822_v38  ;;  %v2796_v52 = vsub.f32 %v2775_v23, %v2783_v55 }
0x160f   :  { %v2830_v43 = vadd.f32 %v2826_v6, %v5663_v63  ;;  %v2831_v18 = vadd.f32 %v2827_v17, %v5656_v41  ;;  %v3003_v63 = vsub.f32 %v5799_v49, %v3002_v9 }
0x1610   :  { %v2793_v57 = vpop.permute.xlu1 %2792  ;;  %v2791_v62 = vpop.permute.xlu0 %2790 }
0x1611   :  { %v2801_v11 = vmul.f32 %v2797_v45, %v2793_v57  ;;  %v2800_v53 = vmul.f32 %v2796_v52, %v2791_v62  ;;  %v6039_v31 = vand.u32 4294901760, %v2830_v43  ;;  %v6041_v5 = vand.u32 4294901760, %v2831_v18 }
0x1612   :  { %v3004_v29 = vand.u32 4294901760, %v3003_v63 }
0x1613   :  { %v2805_v41 = vsub.f32 %v2801_v11, %v5943_v15  ;;  %v2804_v30 = vsub.f32 %v2800_v53, %v5958_v33  ;;  %v2939_v16 = vsub.f32 %v2830_v43, %v6039_v31  ;;  %v6053_v25 = vsub.f32 %v2831_v18, %v6041_v5 }
0x1614   :  { %v2997_v15 = vand.u32 4294901760, %v2996_v27 }
0x1615   :  { %v2809_v1 = vadd.f32 8.0, %v2805_v41  ;;  %v2808_v44 = vadd.f32 8.0, %v2804_v30  ;;  %4010 = vmatprep.mubr.f32.mxu1 %v2939_v16  ;;  %v2950_v34 = vand.u32 4294901760, %v6053_v25  ;;  %v2940_v58 = vand.u32 4294901760, %v2939_v16 }
0x1616   :  { %4011 = vmatmul.mubr.f32.vlgmr.msra.gmra.mrb[0].mxu1 %v6053_v25  ;;  %v4190_v17 = vpack.c.bf16 %v3004_v29, %v2997_v15 }
0x1617   :  { %v2825_v33 = vadd.f32 %v2821_v46, %v2809_v1  ;;  %v2824_v38 = vadd.f32 %v2820_v51, %v2808_v44  ;;  %v2951_v4 = vsub.f32 %v6053_v25, %v2950_v34  ;;  %4253 = vmatpush3.bf16.msra.mxu1 %v5789_v20  ;;  %v2941_v59 = vsub.f32 %v2939_v16, %v2940_v58 }
0x1618   :  { %4255 = vmatprep.subr.bf16.mxu1 %v5797_v21 }
0x1619   :  { %v2829_v60 = vmul.f32 0.00125, %v2825_v33  ;;  %v2828_v40 = vmul.f32 0.00125, %v2824_v38  ;;  %v2952_v55 = vand.u32 4294901760, %v2951_v4  ;;  %v2942_v23 = vand.u32 4294901760, %v2941_v59 }
0x161b   :  { %4257 = vmatpush3.bf16.msra.mxu1 %v5797_v21  ;;  %3934 = vmatprep.mubr.f32.mxu0 %v2942_v23  ;;  %v2832_v6 = vadd.f32 %v2828_v40, %v5683_v3  ;;  %v2833_v45 = vadd.f32 %v2829_v60, %v5676_v2 }
0x161c   :  { %3935 = vmatmul.mubr.f32.vlgmr.msra.gmra.mrb[4].mxu0 %v2952_v55  ;;  %4259 = vmatprep.subr.bf16.mxu1 %v5827_v19 }
0x161d   :  { %4189 = vmatpush3.bf16.msra.mxu0 %v5966_v10  ;;  %v6069_v52 = vand.u32 4294901760, %v2832_v6  ;;  %v6071_v43 = vand.u32 4294901760, %v2833_v45 }
0x161e   :  { %4191 = vmatprep.subr.bf16.mxu0 %v4190_v17 }
0x161f   :  { %4261 = vmatpush3.bf16.msra.mxu1 %v5827_v19  ;;  %v2959_v18 = vsub.f32 %v2832_v6, %v6069_v52  ;;  %v2969_v42 = vsub.f32 %v2833_v45, %v6071_v43 }
0x1620   :  { %4263 = vmatprep.subr.bf16.mxu1 %v5847_v32 }
0x1621   :  { %4193 = vmatpush3.bf16.msra.mxu0 %v4190_v17  ;;  %4013 = vmatprep.mubr.f32.mxu1 %v2959_v18  ;;  %v2960_v2 = vand.u32 4294901760, %v2959_v18  ;;  %v2970_v3 = vand.u32 4294901760, %v2969_v42 }
0x1622   :  { %4014 = vmatmul.mubr.f32.gmra.mrb[2].mxu1 %v2969_v42  ;;  %4195 = vmatprep.subr.bf16.mxu0 %v5979_v56 }
0x1623   :  { %4265 = vmatpush3.bf16.msra.mxu1 %v5847_v32  ;;  %4048 = vmatprep.mubr.f32.mxu1 %v2940_v58  ;;  %v2961_v10 = vsub.f32 %v2959_v18, %v2960_v2  ;;  %v2971_v47 = vsub.f32 %v2969_v42, %v2970_v3 }
0x1624   :  { %4267 = vmatprep.subr.bf16.mxu1 %v5890_v35 }
0x1625   :  { %4197 = vmatpush3.bf16.msra.mxu0 %v5979_v56  ;;  %v2962_v57 = vand.u32 4294901760, %v2961_v10  ;;  %v2972_v62 = vand.u32 4294901760, %v2971_v47  ;;  %v4286_v56 = vpack.c.bf16 %v3002_v9, %v2995_v13 }
0x1626   :  { %4199 = vmatprep.subr.bf16.mxu0 %v5985_v22 }
0x1627   :  { %4269 = vmatpush3.bf16.msra.mxu1 %v5890_v35  ;;  %3937 = vmatprep.mubr.f32.mxu0 %v2962_v57 }
0x1628   :  { %3938 = vmatmul.mubr.f32.gmra.mrb[6].mxu0 %v2972_v62  ;;  %4271 = vmatprep.subr.bf16.mxu1 %v5912_v0 }
0x1629   :  { %4201 = vmatpush3.bf16.msra.mxu0 %v5985_v22  ;;  %3972 = vmatprep.mubr.f32.mxu0 %v6039_v31 }
0x162a   :  { %4203 = vmatprep.subr.bf16.mxu0 %v5991_v12 }
0x162b   :  { %4273 = vmatpush3.bf16.msra.mxu1 %v5912_v0 }
0x162c   :  { %4275 = vmatprep.subr.bf16.mxu1 %v5929_v36 }
0x162d   :  { %4205 = vmatpush3.bf16.msra.mxu0 %v5991_v12 }
0x162e   :  { %4207 = vmatprep.subr.bf16.mxu0 %v5997_v24 }
0x162f   :  { %4277 = vmatpush3.bf16.msra.mxu1 %v5929_v36 }
0x1630   :  { %4279 = vmatprep.subr.bf16.mxu1 %v5953_v61 }
0x1631   :  { %4209 = vmatpush3.bf16.msra.mxu0 %v5997_v24 }
0x1632   :  { %4211 = vmatprep.subr.bf16.mxu0 %v6003_v48 }
0x1633   :  { %4281 = vmatpush3.bf16.msra.mxu1 %v5953_v61 }
0x1634   :  { %4283 = vmatprep.subr.bf16.mxu1 %v6007_v50 }
0x1635   :  { %4213 = vmatpush3.bf16.msra.mxu0 %v6003_v48 }
0x1636   :  { %4049 = vmatmul.mubr.f32.vlgmr.msra.gmra.mrb[0].mxu1 %v2950_v34  ;;  %4215 = vmatprep.subr.bf16.mxu0 %v6009_v14 }
0x1637   :  { %4051 = vmatprep.mubr.f32.mxu1 %v2960_v2  ;;  %4285 = vmatpush3.bf16.msra.mxu1 %v6007_v50 }
0x1638   :  { %4287 = vmatprep.subr.bf16.mxu1 %v4286_v56 }
0x1639   :  { %4217 = vmatpush3.bf16.msra.mxu0 %v6009_v14 }
0x163a   :  { %4052 = vmatmul.mubr.f32.gmra.mrb[2].mxu1 %v2970_v3 }
0x163b   :  { %4289 = vmatpush3.bf16.msra.mxu1 %v4286_v56  ;;  %4086 = vmatprep.mubr.f32.mxu1 %v6039_v31 }
0x163c   :  { %3973 = vmatmul.mubr.f32.vlgmr.msra.gmra.mrb[4].mxu0 %v6041_v5  ;;  %4291 = vmatprep.subr.bf16.mxu1 %v6011_v7 }
0x163d   :  { %3975 = vmatprep.mubr.f32.mxu0 %v6069_v52 }
0x163f   :  { %4293 = vmatpush3.bf16.msra.mxu1 %v6011_v7 }
0x1640   :  { %3976 = vmatmul.mubr.f32.gmra.mrb[6].mxu0 %v6071_v43  ;;  %4295 = vmatprep.subr.bf16.mxu1 %v6013_v8 }
0x1643   :  { %4297 = vmatpush3.bf16.msra.mxu1 %v6013_v8 }
0x1644   :  { %4299 = vmatprep.subr.bf16.mxu1 %v6015_v37 }
0x1647   :  { %4301 = vmatpush3.bf16.msra.mxu1 %v6015_v37 }
0x1648   :  { %4303 = vmatprep.subr.bf16.mxu1 %v6017_v26 }
0x164b   :  { %4305 = vmatpush3.bf16.msra.mxu1 %v6017_v26 }
0x164c   :  { %4307 = vmatprep.subr.bf16.mxu1 %v6019_v28 }
0x164f   :  { %4309 = vmatpush3.bf16.msra.mxu1 %v6019_v28 }
0x1650   :  { %4311 = vmatprep.subr.bf16.mxu1 %v6021_v39 }
0x1653   :  { %4313 = vmatpush3.bf16.msra.mxu1 %v6021_v39 }
0x1654   :  { %4315 = vmatprep.subr.bf16.mxu1 %v5789_v20 }
0x1656   :  { %4087 = vmatmul.mubr.f32.vlgmr.msra.gmra.mrb[0].mxu1 %v6041_v5 }
0x1657   :  { %4089 = vmatprep.mubr.f32.mxu1 %v6069_v52  ;;  %4317 = vmatpush3.bf16.msra.mxu1 %v5789_v20 }
0x1658   :  { %4319 = vmatprep.subr.bf16.mxu1 %v5797_v21 }
0x165a   :  { %4090 = vmatmul.mubr.f32.gmra.mrb[2].mxu1 %v6071_v43 }
0x165b   :  { %4321 = vmatpush3.bf16.msra.mxu1 %v5797_v21  ;;  %4124 = vmatprep.mubr.f32.mxu1 %v6039_v31 }
0x165c   :  { %4323 = vmatprep.subr.bf16.mxu1 %v5827_v19 }
0x165f   :  { %4325 = vmatpush3.bf16.msra.mxu1 %v5827_v19  ;;  %v3685_v19 = vld [vmem:[%s6177_s4] ss:$0 sm:$0xff] }
0x1660   :  { %4327 = vmatprep.subr.bf16.mxu1 %v5847_v32 }
0x1663   :  { %4329 = vmatpush3.bf16.msra.mxu1 %v5847_v32 }
0x1664   :  { %4331 = vmatprep.subr.bf16.mxu1 %v5890_v35 }
0x1667   :  { %4333 = vmatpush3.bf16.msra.mxu1 %v5890_v35 }
0x1668   :  { %4335 = vmatprep.subr.bf16.mxu1 %v5912_v0 }
0x166b   :  { %4337 = vmatpush3.bf16.msra.mxu1 %v5912_v0 }
0x166c   :  { %4339 = vmatprep.subr.bf16.mxu1 %v5929_v36 }
0x166f   :  { %4341 = vmatpush3.bf16.msra.mxu1 %v5929_v36 }
0x1670   :  { %4343 = vmatprep.subr.bf16.mxu1 %v5953_v61 }
0x1673   :  { %4345 = vmatpush3.bf16.msra.mxu1 %v5953_v61 }
0x1676   :  { %4125 = vmatmul.mubr.f32.vlgmr.msra.gmra.mrb[0].mxu1 %v6041_v5 }
0x1677   :  { %4127 = vmatprep.mubr.f32.mxu1 %v6069_v52 }
0x167a   :  { %4128 = vmatmul.mubr.f32.gmra.mrb[2].mxu1 %v6071_v43 }
0x170f   :  { %v3974_v20 = vpop.f32.mrb[4].mxu0 }
0x1710   :  { %v3125_v54 = vpop.f32.mrb[5].mxu0  ;;  %v4350_v32 = vadd.f32 %v3974_v20, %v3685_v19 }
0x1711   :  { %v4352_v35 = vadd.f32 %v3685_v19, %v3125_v54 }
0x1713   :  { %v3977_v21 = vpop.f32.mrb[6].mxu0 }
0x1714   :  { %v3137_v49 = vpop.f32.mrb[7].mxu0  ;;  %v4354_v12 = vadd.f32 %v3977_v21, %v3685_v19 }
0x1715   :  { %v4356_v48 = vadd.f32 %v3685_v19, %v3137_v49 }
0x1749   :  { %v4126_v0 = vpop.f32.mrb[0].mxu1 }
0x174a   :  { %v4351_v36 = vadd.f32 %v4350_v32, %v4126_v0  ;;  %v3605_v61 = vpop.f32.mrb[1].mxu1 }
0x174b   :  { %v4353_v22 = vadd.f32 %v4352_v35, %v3605_v61 }
0x174c   :  { %v3631_v24 = vsel %vm3627_vm1, %v4351_v36, -inf }
0x174d   :  { %v4129_v50 = vpop.f32.mrb[2].mxu1  ;;  %3632 = vmax.xlane.f32.xlu1 %v3631_v24  ;;  %v3628_v14 = vsel %vm3627_vm1, %v4353_v22, -inf }
0x174e   :  { %v4355_v7 = vadd.f32 %v4354_v12, %v4129_v50  ;;  %v3617_v8 = vpop.f32.mrb[3].mxu1  ;;  %3629 = vmax.xlane.f32.xlu0 %v3628_v14 }
0x174f   :  { %v4357_v37 = vadd.f32 %v4356_v48, %v3617_v8 }
0x1750   :  { %v3637_v28 = vsel %vm3627_vm1, %v4355_v7, -inf }
0x1751   :  { %v3634_v26 = vsel %vm3627_vm1, %v4357_v37, -inf }
0x1752   :  { %3635 = vmax.xlane.f32.xlu0 %v3634_v26 }
0x1756   :  { %3638 = vmax.xlane.f32.xlu0 %v3637_v28 }
0x17da   :  { %v3633_v39 = vpop.xlane.xlu1 %3632 }
0x17db   :  { %v3641_v13 = vsub.f32 %v4351_v36, %v3633_v39  ;;  %v3630_v9 = vpop.xlane.xlu0 %3629 }
0x17dc   :  { %v3640_v11 = vsub.f32 %v4353_v22, %v3630_v9 }
0x17dd   :  { %v3646_v53 = vmul.f32 1.442695, %v3641_v13 }
0x17de   :  { %v3644_v31 = vmul.f32 1.442695, %v3640_v11 }
0x17df   :  { %4397 = vpow2.f32 %v3646_v53  ;;  %v3636_v5 = vpop.xlane.xlu0 %3635 }
0x17e0   :  { %4399 = vpow2.f32 %v3644_v31  ;;  %v3642_v27 = vsub.f32 %v4357_v37, %v3636_v5 }
0x17e2   :  { %v3648_v63 = vmul.f32 1.442695, %v3642_v27 }
0x17e3   :  { %v3639_v41 = vpop.xlane.xlu0 %3638 }
0x17e4   :  { %4401 = vpow2.f32 %v3648_v63  ;;  %v3643_v30 = vsub.f32 %v4355_v7, %v3639_v41 }
0x17e6   :  { %v3650_v16 = vmul.f32 1.442695, %v3643_v30 }
0x17e8   :  { %4403 = vpow2.f32 %v3650_v16 }
0x17e9   :  { %v4398_v25 = vpop.eup %4397 }
0x17ea   :  { %v4400_v46 = vpop.eup %4399  ;;  %v3655_v51 = vsel %vm3627_vm1, %v4398_v25, 0.0 }
0x17eb   :  { %3656 = vadd.xlane.f32.xlu0 %v3655_v51  ;;  %v3652_v1 = vsel %vm3627_vm1, %v4400_v46, 0.0 }
0x17ec   :  { %3653 = vadd.xlane.f32.xlu1 %v3652_v1 }
0x17ee   :  { %v4402_v44 = vpop.eup %4401 }
0x17ef   :  { %v3658_v34 = vsel %vm3627_vm1, %v4402_v44, 0.0 }
0x17f0   :  { %3659 = vadd.xlane.f32.xlu1 %v3658_v34 }
0x17f2   :  { %v4404_v58 = vpop.eup %4403 }
0x17f3   :  { %v3661_v15 = vsel %vm3627_vm1, %v4404_v58, 0.0 }
0x17f4   :  { %3662 = vadd.xlane.f32.xlu0 %v3661_v15 }
0x1878   :  { %v3657_v29 = vpop.xlane.xlu0 %3656 }
0x1879   :  { %4405 = vlog2.f32 %v3657_v29  ;;  %v3654_v33 = vpop.xlane.xlu1 %3653 }
0x187a   :  { %4407 = vlog2.f32 %v3654_v33 }
0x187d   :  { %v3660_v38 = vpop.xlane.xlu1 %3659 }
0x187e   :  { %4409 = vlog2.f32 %v3660_v38 }
0x1881   :  { %v3663_v4 = vpop.xlane.xlu0 %3662 }
0x1882   :  { %4411 = vlog2.f32 %v3663_v4 }
0x1883   :  { %v4406_v59 = vpop.eup %4405 }
0x1884   :  { %v4408_v60 = vpop.eup %4407  ;;  %v3667_v40 = vmul.f32 0.6931472, %v4406_v59 }
0x1885   :  { %v3665_v55 = vmul.f32 0.6931472, %v4408_v60 }
0x1886   :  { %v3673_v23 = vsub.f32 %v3641_v13, %v3667_v40 }
0x1887   :  { %v3672_v17 = vsub.f32 %v3640_v11, %v3665_v55 }
0x1888   :  { %v4410_v6 = vpop.eup %4409  ;;  %3677 = vst.msk [vmem:[%s6178_s5 + $0x8] sm:$0xff] %vm3627_vm1, %v3673_v23 }
0x1889   :  { %3676 = vst.msk [vmem:[%s6178_s5] sm:$0xff] %vm3627_vm1, %v3672_v17  ;;  %v3669_v45 = vmul.f32 0.6931472, %v4410_v6 }
0x188b   :  { %v3674_v52 = vsub.f32 %v3642_v27, %v3669_v45 }
0x188c   :  { %v4412_v43 = vpop.eup %4411 }
0x188d   :  { %3678 = vst.msk [vmem:[%s6178_s5 + $0x10] sm:$0xff] %vm3627_vm1, %v3674_v52  ;;  %v3671_v18 = vmul.f32 0.6931472, %v4412_v43 }
0x188f   :  { %v3675_v42 = vsub.f32 %v3643_v30, %v3671_v18 }
0x1891   :  { %3679 = vst.msk [vmem:[%s6178_s5 + $0x18] sm:$0xff] %vm3627_vm1, %v3675_v42 }

</bundles_post_ra>
